<compile_context>
chip_gen: v5e
topology: v5e:2x2
jax: 0.10.0
libtpu: 0.0.40
codegen_flags: <defaults>
</compile_context>

<pallas_src>
import functools

import jax
import jax.numpy as jnp
from jax.experimental import pallas as pl
from jax.experimental.pallas import tpu as pltpu


def _basic_block_kernel(x_ref, w1_ref, w2_ref, s1_ref, b1_ref, s2_ref, b2_ref,
                        o_ref, pad1_ref, pad2_ref, *, H, W, C, KH, KW):
    """One batch element.  x_ref block: (1, C, H*W) channel-major."""
    Hp = H + KH - 1
    Wp = W + KW - 1
    HW = H * W

    x_cm = x_ref[0].astype(jnp.float32)       # (C, HW)   channel-major (lane-dense)
    x_sp = x_cm.T                             # (HW, C)   spatial-major for im2col

    # ---------------- conv1: zero-pad in VMEM, im2col, single MXU matmul ----
    pad1_ref[...] = jnp.zeros((Hp, Wp, C), jnp.float32)
    pad1_ref[KH // 2:KH // 2 + H, KW // 2:KW // 2 + W, :] = x_sp.reshape(H, W, C)

    cols = []
    for ky in range(KH):
        for kx in range(KW):
            cols.append(pad1_ref[ky:ky + H, kx:kx + W, :].reshape(HW, C))
    col1 = jnp.concatenate(cols, axis=-1)                     # (HW, KH*KW*C)
    out1 = jnp.dot(col1, w1_ref[...],
                   preferred_element_type=jnp.float32)        # (HW, C)

    # bn1 + relu (scale/shift broadcast per channel)
    out1 = jnp.maximum(out1 * s1_ref[...] + b1_ref[...], 0.0)

    # ---------------- conv2 -------------------------------------------------
    pad2_ref[...] = jnp.zeros((Hp, Wp, C), jnp.float32)
    pad2_ref[KH // 2:KH // 2 + H, KW // 2:KW // 2 + W, :] = out1.reshape(H, W, C)

    cols2 = []
    for ky in range(KH):
        for kx in range(KW):
            cols2.append(pad2_ref[ky:ky + H, kx:kx + W, :].reshape(HW, C))
    col2 = jnp.concatenate(cols2, axis=-1)                    # (HW, KH*KW*C)
    out2 = jnp.dot(col2, w2_ref[...],
                   preferred_element_type=jnp.float32)        # (HW, C)

    # Switch to channel-major (C, HW): bn2, residual add, relu and the store
    # all run lane-dense (256 lanes) and the output is NCHW-compatible.
    out2_cm = out2.T                                          # (C, HW)
    out2_cm = out2_cm * s2_ref[...] + b2_ref[...]             # (C,1) broadcast
    y = jnp.maximum(out2_cm + x_cm, 0.0)
    o_ref[0] = y.astype(o_ref.dtype)


def basic_block_forward(x_nchw, conv1_w, conv2_w, bn1_params, bn2_params,
                        *, eps=1e-5):
    """BasicBlock forward (stride=1, downsample=None), inference-mode BN.

    x_nchw:  (B, C, H, W)
    conv*_w: (Cout, Cin, KH, KW) PyTorch OIHW layout, no bias
    bn*_params: (gamma, beta, running_mean, running_var), each shape (C,)
    """
    B, C, H, W = x_nchw.shape
    Cout, Cin, KH, KW = conv1_w.shape
    assert Cin == C and Cout == C, "residual path requires inplanes == planes"
    HW = H * W
    K = KH * KW * C

    # Fold BatchNorm (eval mode) into per-channel scale / shift.
    def fold(bn):
        g, b, m, v = bn
        s = g * jax.lax.rsqrt(v.astype(jnp.float32) + eps)
        return s.astype(jnp.float32), (b - m * s).astype(jnp.float32)

    s1, b1 = fold(bn1_params)
    s2, b2 = fold(bn2_params)

    # Pre-flatten weights: OIHW -> (KH*KW*Cin, Cout); row index = (ky*KW+kx)*Cin+ci
    def flat_w(w):
        return jnp.transpose(w, (2, 3, 1, 0)).reshape(K, C).astype(jnp.float32)

    w1f = flat_w(conv1_w)
    w2f = flat_w(conv2_w)

    x_flat = x_nchw.reshape(B, C, HW)          # free reshape, no transpose

    kernel = functools.partial(_basic_block_kernel,
                               H=H, W=W, C=C, KH=KH, KW=KW)

    out = pl.pallas_call(
        kernel,
        out_shape=jax.ShapeDtypeStruct((B, C, HW), x_nchw.dtype),
        grid_spec=pltpu.PrefetchScalarGridSpec(
            num_scalar_prefetch=0,
            grid=(B,),
            in_specs=[
                pl.BlockSpec((1, C, HW), lambda b: (b, 0, 0)),   # x
                pl.BlockSpec((K, C), lambda b: (0, 0)),          # w1 (VMEM resident)
                pl.BlockSpec((K, C), lambda b: (0, 0)),          # w2
                pl.BlockSpec((1, C), lambda b: (0, 0)),          # bn1 scale
                pl.BlockSpec((1, C), lambda b: (0, 0)),          # bn1 shift
                pl.BlockSpec((C, 1), lambda b: (0, 0)),          # bn2 scale
                pl.BlockSpec((C, 1), lambda b: (0, 0)),          # bn2 shift
            ],
            out_specs=pl.BlockSpec((1, C, HW), lambda b: (b, 0, 0)),
            scratch_shapes=[
                pltpu.VMEM((H + KH - 1, W + KW - 1, C), jnp.float32),
                pltpu.VMEM((H + KH - 1, W + KW - 1, C), jnp.float32),
            ],
        ),
        compiler_params=pltpu.CompilerParams(
            dimension_semantics=("parallel",)),   # batch across TCs on v7x
    )(x_flat, w1f, w2f,
      s1.reshape(1, C), b1.reshape(1, C),
      s2.reshape(C, 1), b2.reshape(C, 1))

    return out.reshape(B, C, H, W)


def _reference(x, w1, w2, bn1, bn2, eps=1e-5):
    """Pure-JAX reference (lax.conv) for correctness checking."""
    def conv(inp, w):
        return jax.lax.conv_general_dilated(
            inp, w, window_strides=(1, 1), padding=((1, 1), (1, 1)),
            dimension_numbers=("NCHW", "OIHW", "NCHW"),
            precision=jax.lax.Precision.HIGHEST)

    def bn(inp, p):
        g, b, m, v = p
        s = g * jax.lax.rsqrt(v + eps)
        return inp * s[None, :, None, None] + (b - m * s)[None, :, None, None]

    out = jax.nn.relu(bn(conv(x, w1), bn1))
    out = bn(conv(out, w2), bn2)
    return jax.nn.relu(out + x)


if __name__ == "__main__":
    # BasicBlock(inplanes=32, planes=32, stride=1, downsample=None)
    B, C, H, W = 2, 32, 16, 16
    KH, KW = 3, 3
    dtype = jnp.float32

    key = jax.random.PRNGKey(0)
    (kx, kw1, kw2, kg1, kb1, km1, kv1, kg2, kb2, km2, kv2) = jax.random.split(key, 11)

    x = jax.random.normal(kx, (B, C, H, W), dtype)

    fan_in = C * KH * KW
    bound = 1.0 / (fan_in ** 0.5)
    w1 = jax.random.uniform(kw1, (C, C, KH, KW), dtype, minval=-bound, maxval=bound)
    w2 = jax.random.uniform(kw2, (C, C, KH, KW), dtype, minval=-bound, maxval=bound)

    bn1 = (jax.random.uniform(kg1, (C,), dtype, minval=0.5, maxval=1.5),
           0.1 * jax.random.normal(kb1, (C,), dtype),
           0.1 * jax.random.normal(km1, (C,), dtype),
           jax.random.uniform(kv1, (C,), dtype, minval=0.5, maxval=1.5))
    bn2 = (jax.random.uniform(kg2, (C,), dtype, minval=0.5, maxval=1.5),
           0.1 * jax.random.normal(kb2, (C,), dtype),
           0.1 * jax.random.normal(km2, (C,), dtype),
           jax.random.uniform(kv2, (C,), dtype, minval=0.5, maxval=1.5))

    out = basic_block_forward(x, w1, w2, bn1, bn2)
    jax.block_until_ready(out)

    ref = _reference(x, w1, w2, bn1, bn2)
    assert out.shape == ref.shape
    assert jnp.allclose(out, ref, atol=1e-3, rtol=1e-3), (
        float(jnp.max(jnp.abs(out - ref))))

    print("KERNEL_OK")
</pallas_src>

<mosaic_0001>
module attributes {stable_mosaic.version = 11 : i64} {
  func.func @_basic_block_kernel(%arg0: i32, %arg1: memref<1x32x256xf32, #tpu.memory_space<vmem>>, %arg2: memref<288x32xf32, #tpu.memory_space<vmem>>, %arg3: memref<288x32xf32, #tpu.memory_space<vmem>>, %arg4: memref<1x32xf32, #tpu.memory_space<vmem>>, %arg5: memref<1x32xf32, #tpu.memory_space<vmem>>, %arg6: memref<32x1xf32, #tpu.memory_space<vmem>>, %arg7: memref<32x1xf32, #tpu.memory_space<vmem>>, %arg8: memref<1x32x256xf32, #tpu.memory_space<vmem>>, %arg9: memref<18x18x32xf32, #tpu.memory_space<vmem>>, %arg10: memref<18x18x32xf32, #tpu.memory_space<vmem>>) attributes {dimension_semantics = [#tpu.dimension_semantics<parallel>], iteration_bounds = array<i64: 2>, scalar_prefetch = 0 : i64, scratch_operands = 2 : i64, tpu.core_type = #tpu.core_type<tc>, window_params = [{transform_indices = @transform_0, window_bounds = array<i64: 1, 32, 256>}, {pipeline_mode = #tpu.pipeline_mode<synchronous>, transform_indices = @transform_1, window_bounds = array<i64: 288, 32>}, {pipeline_mode = #tpu.pipeline_mode<synchronous>, transform_indices = @transform_2, window_bounds = array<i64: 288, 32>}, {pipeline_mode = #tpu.pipeline_mode<synchronous>, transform_indices = @transform_3, window_bounds = array<i64: 1, 32>}, {pipeline_mode = #tpu.pipeline_mode<synchronous>, transform_indices = @transform_4, window_bounds = array<i64: 1, 32>}, {pipeline_mode = #tpu.pipeline_mode<synchronous>, transform_indices = @transform_5, window_bounds = array<i64: 32, 1>}, {pipeline_mode = #tpu.pipeline_mode<synchronous>, transform_indices = @transform_6, window_bounds = array<i64: 32, 1>}, {transform_indices = @transform_7, window_bounds = array<i64: 1, 32, 256>}]} {
    %c0 = arith.constant 0 : index
    %c0_0 = arith.constant 0 : index
    %c0_1 = arith.constant 0 : index
    %0 = vector.load %arg1[%c0, %c0_0, %c0_1] : memref<1x32x256xf32, #tpu.memory_space<vmem>>, vector<1x32x256xf32>
    %1 = vector.shape_cast %0 : vector<1x32x256xf32> to vector<32x256xf32>
    %2 = tpu.transpose %1, [1, 0] : vector<32x256xf32> -> vector<256x32xf32>
    %cst = arith.constant 0.000000e+00 : f32
    %3 = vector.broadcast %cst : f32 to vector<18x18x32xf32>
    %c0_2 = arith.constant 0 : index
    %c0_3 = arith.constant 0 : index
    %c0_4 = arith.constant 0 : index
    %4 = vector.load %arg9[%c0_2, %c0_3, %c0_4] : memref<18x18x32xf32, #tpu.memory_space<vmem>>, vector<18x18x32xf32>
    tpu.vector_store %arg9[%c0_2, %c0_3, %c0_4], %3 {strides = array<i32>} : memref<18x18x32xf32, #tpu.memory_space<vmem>>, vector<18x18x32xf32>,
    %5 = vector.shape_cast %2 : vector<256x32xf32> to vector<16x16x32xf32>
    %c1 = arith.constant 1 : index
    %c1_5 = arith.constant 1 : index
    %c0_6 = arith.constant 0 : index
    %6 = vector.load %arg9[%c1, %c1_5, %c0_6] : memref<18x18x32xf32, #tpu.memory_space<vmem>>, vector<16x16x32xf32>
    tpu.vector_store %arg9[%c1, %c1_5, %c0_6], %5 {strides = array<i32>} : memref<18x18x32xf32, #tpu.memory_space<vmem>>, vector<16x16x32xf32>,
    %c0_7 = arith.constant 0 : index
    %c0_8 = arith.constant 0 : index
    %c0_9 = arith.constant 0 : index
    %7 = vector.load %arg9[%c0_7, %c0_8, %c0_9] : memref<18x18x32xf32, #tpu.memory_space<vmem>>, vector<16x16x32xf32>
    %8 = vector.shape_cast %7 : vector<16x16x32xf32> to vector<256x32xf32>
    %c0_10 = arith.constant 0 : index
    %c1_11 = arith.constant 1 : index
    %c0_12 = arith.constant 0 : index
    %9 = vector.load %arg9[%c0_10, %c1_11, %c0_12] : memref<18x18x32xf32, #tpu.memory_space<vmem>>, vector<16x16x32xf32>
    %10 = vector.shape_cast %9 : vector<16x16x32xf32> to vector<256x32xf32>
    %c0_13 = arith.constant 0 : index
    %c2 = arith.constant 2 : index
    %c0_14 = arith.constant 0 : index
    %11 = vector.load %arg9[%c0_13, %c2, %c0_14] : memref<18x18x32xf32, #tpu.memory_space<vmem>>, vector<16x16x32xf32>
    %12 = vector.shape_cast %11 : vector<16x16x32xf32> to vector<256x32xf32>
    %c1_15 = arith.constant 1 : index
    %c0_16 = arith.constant 0 : index
    %c0_17 = arith.constant 0 : index
    %13 = vector.load %arg9[%c1_15, %c0_16, %c0_17] : memref<18x18x32xf32, #tpu.memory_space<vmem>>, vector<16x16x32xf32>
    %14 = vector.shape_cast %13 : vector<16x16x32xf32> to vector<256x32xf32>
    %c1_18 = arith.constant 1 : index
    %c1_19 = arith.constant 1 : index
    %c0_20 = arith.constant 0 : index
    %15 = vector.load %arg9[%c1_18, %c1_19, %c0_20] : memref<18x18x32xf32, #tpu.memory_space<vmem>>, vector<16x16x32xf32>
    %16 = vector.shape_cast %15 : vector<16x16x32xf32> to vector<256x32xf32>
    %c1_21 = arith.constant 1 : index
    %c2_22 = arith.constant 2 : index
    %c0_23 = arith.constant 0 : index
    %17 = vector.load %arg9[%c1_21, %c2_22, %c0_23] : memref<18x18x32xf32, #tpu.memory_space<vmem>>, vector<16x16x32xf32>
    %18 = vector.shape_cast %17 : vector<16x16x32xf32> to vector<256x32xf32>
    %c2_24 = arith.constant 2 : index
    %c0_25 = arith.constant 0 : index
    %c0_26 = arith.constant 0 : index
    %19 = vector.load %arg9[%c2_24, %c0_25, %c0_26] : memref<18x18x32xf32, #tpu.memory_space<vmem>>, vector<16x16x32xf32>
    %20 = vector.shape_cast %19 : vector<16x16x32xf32> to vector<256x32xf32>
    %c2_27 = arith.constant 2 : index
    %c1_28 = arith.constant 1 : index
    %c0_29 = arith.constant 0 : index
    %21 = vector.load %arg9[%c2_27, %c1_28, %c0_29] : memref<18x18x32xf32, #tpu.memory_space<vmem>>, vector<16x16x32xf32>
    %22 = vector.shape_cast %21 : vector<16x16x32xf32> to vector<256x32xf32>
    %c2_30 = arith.constant 2 : index
    %c2_31 = arith.constant 2 : index
    %c0_32 = arith.constant 0 : index
    %23 = vector.load %arg9[%c2_30, %c2_31, %c0_32] : memref<18x18x32xf32, #tpu.memory_space<vmem>>, vector<16x16x32xf32>
    %24 = vector.shape_cast %23 : vector<16x16x32xf32> to vector<256x32xf32>
    %25 = tpu.concatenate %8, %10, %12, %14, %16, %18, %20, %22, %24 in 1 : vector<256x32xf32>, vector<256x32xf32>, vector<256x32xf32>, vector<256x32xf32>, vector<256x32xf32>, vector<256x32xf32>, vector<256x32xf32>, vector<256x32xf32>, vector<256x32xf32> -> vector<256x288xf32>
    %c0_33 = arith.constant 0 : index
    %c0_34 = arith.constant 0 : index
    %26 = vector.load %arg2[%c0_33, %c0_34] : memref<288x32xf32, #tpu.memory_space<vmem>>, vector<288x32xf32>
    %cst_35 = arith.constant dense<0.000000e+00> : vector<256x32xf32>
    %27 = tpu.matmul %25, %26, %cst_35 {dimension_numbers = #tpu.dot_dimension_numbers<[1], [0], [0], [1], [0, 0, 1, 1], [], []>} : vector<256x288xf32>, vector<288x32xf32>, vector<256x32xf32> -> vector<256x32xf32>
    %c0_36 = arith.constant 0 : index
    %c0_37 = arith.constant 0 : index
    %28 = vector.load %arg4[%c0_36, %c0_37] : memref<1x32xf32, #tpu.memory_space<vmem>>, vector<1x32xf32>
    %29 = vector.broadcast %28 : vector<1x32xf32> to vector<256x32xf32>
    %30 = arith.mulf %27, %29 : vector<256x32xf32>
    %c0_38 = arith.constant 0 : index
    %c0_39 = arith.constant 0 : index
    %31 = vector.load %arg5[%c0_38, %c0_39] : memref<1x32xf32, #tpu.memory_space<vmem>>, vector<1x32xf32>
    %32 = vector.broadcast %31 : vector<1x32xf32> to vector<256x32xf32>
    %33 = arith.addf %30, %32 : vector<256x32xf32>
    %cst_40 = arith.constant 0.000000e+00 : f32
    %34 = vector.broadcast %cst_40 : f32 to vector<256x32xf32>
    %35 = arith.maximumf %33, %34 : vector<256x32xf32>
    %cst_41 = arith.constant 0.000000e+00 : f32
    %36 = vector.broadcast %cst_41 : f32 to vector<18x18x32xf32>
    %c0_42 = arith.constant 0 : index
    %c0_43 = arith.constant 0 : index
    %c0_44 = arith.constant 0 : index
    %37 = vector.load %arg10[%c0_42, %c0_43, %c0_44] : memref<18x18x32xf32, #tpu.memory_space<vmem>>, vector<18x18x32xf32>
    tpu.vector_store %arg10[%c0_42, %c0_43, %c0_44], %36 {strides = array<i32>} : memref<18x18x32xf32, #tpu.memory_space<vmem>>, vector<18x18x32xf32>,
    %38 = vector.shape_cast %35 : vector<256x32xf32> to vector<16x16x32xf32>
    %c1_45 = arith.constant 1 : index
    %c1_46 = arith.constant 1 : index
    %c0_47 = arith.constant 0 : index
    %39 = vector.load %arg10[%c1_45, %c1_46, %c0_47] : memref<18x18x32xf32, #tpu.memory_space<vmem>>, vector<16x16x32xf32>
    tpu.vector_store %arg10[%c1_45, %c1_46, %c0_47], %38 {strides = array<i32>} : memref<18x18x32xf32, #tpu.memory_space<vmem>>, vector<16x16x32xf32>,
    %c0_48 = arith.constant 0 : index
    %c0_49 = arith.constant 0 : index
    %c0_50 = arith.constant 0 : index
    %40 = vector.load %arg10[%c0_48, %c0_49, %c0_50] : memref<18x18x32xf32, #tpu.memory_space<vmem>>, vector<16x16x32xf32>
    %41 = vector.shape_cast %40 : vector<16x16x32xf32> to vector<256x32xf32>
    %c0_51 = arith.constant 0 : index
    %c1_52 = arith.constant 1 : index
    %c0_53 = arith.constant 0 : index
    %42 = vector.load %arg10[%c0_51, %c1_52, %c0_53] : memref<18x18x32xf32, #tpu.memory_space<vmem>>, vector<16x16x32xf32>
    %43 = vector.shape_cast %42 : vector<16x16x32xf32> to vector<256x32xf32>
    %c0_54 = arith.constant 0 : index
    %c2_55 = arith.constant 2 : index
    %c0_56 = arith.constant 0 : index
    %44 = vector.load %arg10[%c0_54, %c2_55, %c0_56] : memref<18x18x32xf32, #tpu.memory_space<vmem>>, vector<16x16x32xf32>
    %45 = vector.shape_cast %44 : vector<16x16x32xf32> to vector<256x32xf32>
    %c1_57 = arith.constant 1 : index
    %c0_58 = arith.constant 0 : index
    %c0_59 = arith.constant 0 : index
    %46 = vector.load %arg10[%c1_57, %c0_58, %c0_59] : memref<18x18x32xf32, #tpu.memory_space<vmem>>, vector<16x16x32xf32>
    %47 = vector.shape_cast %46 : vector<16x16x32xf32> to vector<256x32xf32>
    %c1_60 = arith.constant 1 : index
    %c1_61 = arith.constant 1 : index
    %c0_62 = arith.constant 0 : index
    %48 = vector.load %arg10[%c1_60, %c1_61, %c0_62] : memref<18x18x32xf32, #tpu.memory_space<vmem>>, vector<16x16x32xf32>
    %49 = vector.shape_cast %48 : vector<16x16x32xf32> to vector<256x32xf32>
    %c1_63 = arith.constant 1 : index
    %c2_64 = arith.constant 2 : index
    %c0_65 = arith.constant 0 : index
    %50 = vector.load %arg10[%c1_63, %c2_64, %c0_65] : memref<18x18x32xf32, #tpu.memory_space<vmem>>, vector<16x16x32xf32>
    %51 = vector.shape_cast %50 : vector<16x16x32xf32> to vector<256x32xf32>
    %c2_66 = arith.constant 2 : index
    %c0_67 = arith.constant 0 : index
    %c0_68 = arith.constant 0 : index
    %52 = vector.load %arg10[%c2_66, %c0_67, %c0_68] : memref<18x18x32xf32, #tpu.memory_space<vmem>>, vector<16x16x32xf32>
    %53 = vector.shape_cast %52 : vector<16x16x32xf32> to vector<256x32xf32>
    %c2_69 = arith.constant 2 : index
    %c1_70 = arith.constant 1 : index
    %c0_71 = arith.constant 0 : index
    %54 = vector.load %arg10[%c2_69, %c1_70, %c0_71] : memref<18x18x32xf32, #tpu.memory_space<vmem>>, vector<16x16x32xf32>
    %55 = vector.shape_cast %54 : vector<16x16x32xf32> to vector<256x32xf32>
    %c2_72 = arith.constant 2 : index
    %c2_73 = arith.constant 2 : index
    %c0_74 = arith.constant 0 : index
    %56 = vector.load %arg10[%c2_72, %c2_73, %c0_74] : memref<18x18x32xf32, #tpu.memory_space<vmem>>, vector<16x16x32xf32>
    %57 = vector.shape_cast %56 : vector<16x16x32xf32> to vector<256x32xf32>
    %58 = tpu.concatenate %41, %43, %45, %47, %49, %51, %53, %55, %57 in 1 : vector<256x32xf32>, vector<256x32xf32>, vector<256x32xf32>, vector<256x32xf32>, vector<256x32xf32>, vector<256x32xf32>, vector<256x32xf32>, vector<256x32xf32>, vector<256x32xf32> -> vector<256x288xf32>
    %c0_75 = arith.constant 0 : index
    %c0_76 = arith.constant 0 : index
    %59 = vector.load %arg3[%c0_75, %c0_76] : memref<288x32xf32, #tpu.memory_space<vmem>>, vector<288x32xf32>
    %cst_77 = arith.constant dense<0.000000e+00> : vector<256x32xf32>
    %60 = tpu.matmul %58, %59, %cst_77 {dimension_numbers = #tpu.dot_dimension_numbers<[1], [0], [0], [1], [0, 0, 1, 1], [], []>} : vector<256x288xf32>, vector<288x32xf32>, vector<256x32xf32> -> vector<256x32xf32>
    %61 = tpu.transpose %60, [1, 0] : vector<256x32xf32> -> vector<32x256xf32>
    %c0_78 = arith.constant 0 : index
    %c0_79 = arith.constant 0 : index
    %62 = vector.load %arg6[%c0_78, %c0_79] : memref<32x1xf32, #tpu.memory_space<vmem>>, vector<32x1xf32>
    %63 = vector.broadcast %62 : vector<32x1xf32> to vector<32x256xf32>
    %64 = arith.mulf %61, %63 : vector<32x256xf32>
    %c0_80 = arith.constant 0 : index
    %c0_81 = arith.constant 0 : index
    %65 = vector.load %arg7[%c0_80, %c0_81] : memref<32x1xf32, #tpu.memory_space<vmem>>, vector<32x1xf32>
    %66 = vector.broadcast %65 : vector<32x1xf32> to vector<32x256xf32>
    %67 = arith.addf %64, %66 : vector<32x256xf32>
    %68 = arith.addf %67, %1 : vector<32x256xf32>
    %cst_82 = arith.constant 0.000000e+00 : f32
    %69 = vector.broadcast %cst_82 : f32 to vector<32x256xf32>
    %70 = arith.maximumf %68, %69 : vector<32x256xf32>
    %c0_83 = arith.constant 0 : index
    %c0_84 = arith.constant 0 : index
    %c0_85 = arith.constant 0 : index
    %71 = vector.load %arg8[%c0_83, %c0_84, %c0_85] : memref<1x32x256xf32, #tpu.memory_space<vmem>>, vector<1x32x256xf32>
    %72 = vector.shape_cast %71 : vector<1x32x256xf32> to vector<32x256xf32>
    %73 = vector.shape_cast %70 : vector<32x256xf32> to vector<1x32x256xf32>
    tpu.vector_store %arg8[%c0_83, %c0_84, %c0_85], %73 {strides = array<i32>} : memref<1x32x256xf32, #tpu.memory_space<vmem>>, vector<1x32x256xf32>,
    return
  }
  func.func @transform_0(%arg0: i32) -> (i32, i32, i32) {
    %c0_i32 = arith.constant 0 : i32
    %c0_i32_0 = arith.constant 0 : i32
    %c0_i32_1 = arith.constant 0 : i32
    return %arg0, %c0_i32, %c0_i32_0 : i32, i32, i32
  }
  func.func @transform_1(%arg0: i32) -> (i32, i32) {
    %c0_i32 = arith.constant 0 : i32
    %c0_i32_0 = arith.constant 0 : i32
    %c0_i32_1 = arith.constant 0 : i32
    return %c0_i32, %c0_i32_0 : i32, i32
  }
  func.func @transform_2(%arg0: i32) -> (i32, i32) {
    %c0_i32 = arith.constant 0 : i32
    %c0_i32_0 = arith.constant 0 : i32
    %c0_i32_1 = arith.constant 0 : i32
    return %c0_i32, %c0_i32_0 : i32, i32
  }
  func.func @transform_3(%arg0: i32) -> (i32, i32) {
    %c0_i32 = arith.constant 0 : i32
    %c0_i32_0 = arith.constant 0 : i32
    %c0_i32_1 = arith.constant 0 : i32
    return %c0_i32, %c0_i32_0 : i32, i32
  }
  func.func @transform_4(%arg0: i32) -> (i32, i32) {
    %c0_i32 = arith.constant 0 : i32
    %c0_i32_0 = arith.constant 0 : i32
    %c0_i32_1 = arith.constant 0 : i32
    return %c0_i32, %c0_i32_0 : i32, i32
  }
  func.func @transform_5(%arg0: i32) -> (i32, i32) {
    %c0_i32 = arith.constant 0 : i32
    %c0_i32_0 = arith.constant 0 : i32
    %c0_i32_1 = arith.constant 0 : i32
    return %c0_i32, %c0_i32_0 : i32, i32
  }
  func.func @transform_6(%arg0: i32) -> (i32, i32) {
    %c0_i32 = arith.constant 0 : i32
    %c0_i32_0 = arith.constant 0 : i32
    %c0_i32_1 = arith.constant 0 : i32
    return %c0_i32, %c0_i32_0 : i32, i32
  }
  func.func @transform_7(%arg0: i32) -> (i32, i32, i32) {
    %c0_i32 = arith.constant 0 : i32
    %c0_i32_0 = arith.constant 0 : i32
    %c0_i32_1 = arith.constant 0 : i32
    return %arg0, %c0_i32, %c0_i32_0 : i32, i32, i32
  }
}

</mosaic_0001>

<bundles_post_ra>
// kernel: tpu_custom_call.1
= control target key start
LH: loop header
LB: loop body
LE: loop exit
PB: predicated region body
PF: predicated region fallthrough
CT: control target
= control target key end

     0   :  { %12 = vsyncpa [#allocation5], 0  ;;  %s7904_s0 = inlined_call_operand.vmem [shape: f32[2,32,256], index: 0, kind: input, shape index: {}]   ;;  %s7905_s1 = inlined_call_operand.vmem [shape: f32[288,32], index: 1, kind: input, shape index: {}]   ;;  %s7906_s2 = inlined_call_operand.vmem [shape: f32[288,32], index: 2, kind: input, shape index: {}]   ;;  %s7907_s3 = inlined_call_operand.vmem [shape: f32[1,32], index: 3, kind: input, shape index: {}]   ;;  %s7908_s4 = inlined_call_operand.vmem [shape: f32[1,32], index: 4, kind: input, shape index: {}]   ;;  %s7909_s5 = inlined_call_operand.vmem [shape: f32[32,1], index: 5, kind: input, shape index: {}]   ;;  %s7910_s6 = inlined_call_operand.vmem [shape: f32[32,1], index: 6, kind: input, shape index: {}]   ;;  %s7911_s7 = inlined_call_operand.hbm [shape: f32[2,32,256], index: 7, kind: output, shape index: {}]  }
   0x1   :  { %14 = vsyncpa [#allocation5 + $0x1], 0  ;;  %s5503_s24 = smov 0   ;;  %s5505_s25 = smov 0  }
   0x2   :  { %s5507_s26 = smov 0   ;;  %s5509_s27 = smov 0  }
   0x3 LB: > { %s5524_s28 = sadd.s32 4294967295, %s5454_s27   ;;  %s4301_s29 = sadd.s32 4294967294, %s5454_s27   ;;  %s5454_s27 = sphi %s5509_s27, %s7935_s27   ;;  %s5450_s26 = sphi %s5507_s26, %s7934_s26   ;;  %s5446_s25 = sphi %s5505_s25, %s7933_s25   ;;  %s5442_s24 = sphi %s5503_s24, %s7932_s24  }
   0x4   : > { %s5528_s30 = sadd.s32 1, %s5454_s27   ;;  %s179_s8 = sadd.s32 1, %s5450_s26 }
   0x5   : > { %s176_s9 = ssub.s32 %s5454_s27, %s5528_s30  ;;  %p189_p0 = scmp.ne.s32.totalorder %s5450_s26, %s5446_s25 }
   0x6   : > { %p177_p1 = scmp.eq.s32.totalorder %s176_s9, 0  ;;  %p190_p2 = scmp.eq.s32.totalorder %s5524_s28, 1 }
   0x7   : > { %p195_p3 = scmp.ne.s32.totalorder %s5446_s25, %s5442_s24  ;;  %p196_p4 = scmp.eq.s32.totalorder %s4301_s29, 1 }
   0x8   : > { %s5539_s10 = scalar_select %p177_p1, %s5450_s26, %s179_s8  }
   0x9   : > { %p5541_p5 = por %p190_p2, %p189_p0  ;;  %p5545_p6 = por %p196_p4, %p195_p3 }
   0xa   : > { %p4304_p7 = scmp.ge.s32.totalorder %s5454_s27, 1  ;;  %p240_p8 = scmp.lt.s32.totalorder %s5454_s27, 3 }
   0xc   : > { %p241_p9 = pnand %p4304_p7, %p240_p8 }
   0xe   : > { %244 = sbr.rel (%p241_p9) target bundleno = 1444 (0x5a4), region = 48 }
  0x13   : > { %p272_p10 = scmp.lt.s32.totalorder %s5524_s28, 1  ;;  %vm349_vm0 = vcmask 261120   ;;  %v5456_v0 = vmov 0.0   ;;  %vm352_vm1 = vcmask 254976   ;;  %s5457_s18 = smov 32   ;;  %v1724_v12 = vld [vmem:[%s7905_s1 + $0x118] sm:$0xff] }
  0x14   : > { %378 = vst.msk [vmem:[#allocation2 + $0xd8] sm:$0xff] %vm349_vm0, %v5456_v0  ;;  %v1723_v13 = vld [vmem:[%s7905_s1 + $0x110] sm:$0xff]  ;;  %2059 = vmatpush.msra.mxu2 %v1724_v12  ;;  %4395 = vmatpush.msra.mxu3 %v1724_v12  ;;  %v1722_v14 = vld [vmem:[%s7905_s1 + $0x108] sm:$0xff]  ;;  %v1721_v15 = vld [vmem:[%s7905_s1 + $0x100] sm:$0xff]  ;;  %vm1527_vm2 = vcmask 523264   ;;  %vm1560_vm3 = vcmask 785408  }
  0x15   : > { %s273_s13 = scalar_select %p272_p10, %s5524_s28, 1  ;;  %379 = vst.msk [vmem:[#allocation2 + $0xe0] sm:$0xff] %vm349_vm0, %v5456_v0 }
  0x16   : > { %350 = vst.msk [vmem:[#allocation2] sm:$0xff] %vm349_vm0, %v5456_v0  ;;  %2060 = vmatpush.msra.mxu2 %v1723_v13  ;;  %4396 = vmatpush.msra.mxu3 %v1723_v13  ;;  %s269_s21 = sand.u32 1, %s5446_s25   ;;  %s4378_s29 = sshll.u32 %s5524_s28, 6 }
  0x17   : > { %s4377_s14 = sshll.u32 %s273_s13, 6  ;;  %351 = vst.msk [vmem:[#allocation2 + $0x8] sm:$0xff] %vm349_vm0, %v5456_v0  ;;  %s5458_s13 = smov 96  }
  0x18   : > { %s5564_s17 = scalar_lea.vmem %s7904_s0, %s4377_s14  ;;  %354 = vst.msk [vmem:[#allocation2 + $0x18] sm:$0xff] %vm349_vm0, %v5456_v0  ;;  %2061 = vmatpush.msra.mxu2 %v1722_v14  ;;  %4397 = vmatpush.msra.mxu3 %v1722_v14  ;;  %s5459_s14 = smov 64  }
  0x19   : > { %v278_v1 = vld [vmem:[%s5564_s17 + $0x8] sm:$0xff]  ;;  %v277_v2 = vld [vmem:[%s5564_s17] sm:$0xff]  ;;  %355 = vst.msk [vmem:[#allocation2 + $0x20] sm:$0xff] %vm349_vm0, %v5456_v0  ;;  %v280_v3 = vld [vmem:[%s5564_s17 + $0x18] sm:$0xff]  ;;  %s4305_s22 = sshll.u32 %s269_s21, 6  ;;  %s4235_s15 = scalar_lea.hbm %s7911_s7, %s4378_s29 }
  0x1a   : > { %317 = vxpose.xlu1.b32.start [1/4] (short) %v278_v1, 128  ;;  %285 = vxpose.xlu0.b32.start [1/4] (short) %v277_v2, 128  ;;  %357 = vst.msk [vmem:[#allocation2 + $0x30] sm:$0xff] %vm349_vm0, %v5456_v0  ;;  %v279_v4 = vld [vmem:[%s5564_s17 + $0x10] sm:$0xff]  ;;  %v282_v5 = vld [vmem:[%s5564_s17 + $0x28] sm:$0xff]  ;;  %v281_v6 = vld [vmem:[%s5564_s17 + $0x20] sm:$0xff]  ;;  %s7847_s23 = scalar_lea.vmem [#allocation4], %s4305_s22  ;;  %s4238_s19 = sshll.u32 %s4235_s15, 4  ;;  %s4239_s19 = int_to_ptr.hbm [resolvable:$true] %s4238_s19 }
  0x1b   : > { %358 = vst.msk [vmem:[#allocation2 + $0x38] sm:$0xff] %vm349_vm0, %v5456_v0  ;;  %v284_v7 = vld [vmem:[%s5564_s17 + $0x38] sm:$0xff]  ;;  %v283_v8 = vld [vmem:[%s5564_s17 + $0x30] sm:$0xff]  ;;  %2062 = vmatpush.msra.mxu2 %v1721_v15  ;;  %4398 = vmatpush.msra.mxu3 %v1721_v15  ;;  %s4236_s16 = sshll.u32 %s7847_s23, 4  ;;  %s4224_s28 = scalar_lea.sflag [#allocation5], %s269_s21  ;;  %s4237_s16 = int_to_ptr.vmem [resolvable:$true] %s4236_s16 }
  0x1c   : > { %360 = vst.msk [vmem:[#allocation2 + $0x48] sm:$0xff] %vm349_vm0, %v5456_v0  ;;  %s5406_s20 = sshra.s32 %s4239_s19, 4  ;;  %s5412_s22 = scalar_lea.hbm %s7911_s7, 128  ;;  %s5407_s20 = int_to_ptr.hbm [resolvable:$true] %s5406_s20 }
  0x1d   : > { %361 = vst.msk [vmem:[#allocation2 + $0x50] sm:$0xff] %vm349_vm0, %v5456_v0  ;;  %p5413_p0 = scmp.lt.s32.totalorder %s5407_s20, %s7911_s7 }
  0x1e   : > { %363 = vst.msk [vmem:[#allocation2 + $0x60] sm:$0xff] %vm349_vm0, %v5456_v0  ;;  %v470_v9 = vld [vmem:[#allocation2 + $0x1] sm:$0xff] }
  0x1f   : > { %364 = vst.msk [vmem:[#allocation2 + $0x68] sm:$0xff] %vm349_vm0, %v5456_v0 }
  0x20   : > { %366 = vst.msk [vmem:[#allocation2 + $0x78] sm:$0xff] %vm349_vm0, %v5456_v0 }
  0x21   : > { %367 = vst.msk [vmem:[#allocation2 + $0x80] sm:$0xff] %vm349_vm0, %v5456_v0 }
  0x22   : > { %318 = vxpose.xlu1.b32.cont [2/4] (short) %v280_v3, 128  ;;  %286 = vxpose.xlu0.b32.cont [2/4] (short) %v279_v4, 128  ;;  %369 = vst.msk [vmem:[#allocation2 + $0x90] sm:$0xff] %vm349_vm0, %v5456_v0 }
  0x23   : > { %370 = vst.msk [vmem:[#allocation2 + $0x98] sm:$0xff] %vm349_vm0, %v5456_v0 }
  0x24   : > { %372 = vst.msk [vmem:[#allocation2 + $0xa8] sm:$0xff] %vm349_vm0, %v5456_v0 }
  0x25   : > { %373 = vst.msk [vmem:[#allocation2 + $0xb0] sm:$0xff] %vm349_vm0, %v5456_v0 }
  0x26   : > { %375 = vst.msk [vmem:[#allocation2 + $0xc0] sm:$0xff] %vm349_vm0, %v5456_v0 }
  0x27   : > { %376 = vst.msk [vmem:[#allocation2 + $0xc8] sm:$0xff] %vm349_vm0, %v5456_v0 }
  0x28   : > { %381 = vst.msk [vmem:[#allocation2 + $0xf0] sm:$0xff] %vm349_vm0, %v5456_v0 }
  0x29   : > { %382 = vst.msk [vmem:[#allocation2 + $0xf8] sm:$0xff] %vm349_vm0, %v5456_v0 }
  0x2a   : > { %319 = vxpose.xlu1.b32.cont [3/4] (short) %v282_v5, 128  ;;  %287 = vxpose.xlu0.b32.cont [3/4] (short) %v281_v6, 128  ;;  %384 = vst.msk [vmem:[#allocation2 + $0x108] sm:$0xff] %vm349_vm0, %v5456_v0 }
  0x2b   : > { %385 = vst.msk [vmem:[#allocation2 + $0x110] sm:$0xff] %vm349_vm0, %v5456_v0 }
  0x2c   : > { %387 = vst.msk [vmem:[#allocation2 + $0x120] sm:$0xff] %vm349_vm0, %v5456_v0 }
  0x2d   : > { %388 = vst.msk [vmem:[#allocation2 + $0x128] sm:$0xff] %vm349_vm0, %v5456_v0 }
  0x2e   : > { %390 = vst.msk [vmem:[#allocation2 + $0x138] sm:$0xff] %vm349_vm0, %v5456_v0 }
  0x2f   : > { %391 = vst.msk [vmem:[#allocation2 + $0x140] sm:$0xff] %vm349_vm0, %v5456_v0 }
  0x30   : > { %393 = vst.msk [vmem:[#allocation2 + $0x150] sm:$0xff] %vm349_vm0, %v5456_v0 }
  0x31   : > { %394 = vst.msk [vmem:[#allocation2 + $0x158] sm:$0xff] %vm349_vm0, %v5456_v0 }
  0x32   : > { %320 = vxpose.xlu1.b32.end [4/4] (short) %v284_v7, 128  ;;  %288 = vxpose.xlu0.b32.end [4/4] (short) %v283_v8, 128  ;;  %396 = vst.msk [vmem:[#allocation2 + $0x168] sm:$0xff] %vm349_vm0, %v5456_v0 }
  0x33   : > { %397 = vst.msk [vmem:[#allocation2 + $0x170] sm:$0xff] %vm349_vm0, %v5456_v0 }
  0x34   : > { %399 = vst.msk [vmem:[#allocation2 + $0x180] sm:$0xff] %vm349_vm0, %v5456_v0 }
  0x35   : > { %400 = vst.msk [vmem:[#allocation2 + $0x188] sm:$0xff] %vm349_vm0, %v5456_v0 }
  0x36   : > { %402 = vst.msk [vmem:[#allocation2 + $0x198] sm:$0xff] %vm349_vm0, %v5456_v0 }
  0x37   : > { %403 = vst.msk [vmem:[#allocation2 + $0x1a0] sm:$0xff] %vm349_vm0, %v5456_v0 }
  0x38   : > { %2264 = vst.msk [vmem:[#allocation3] sm:$0xff] %vm349_vm0, %v5456_v0 }
  0x39   : > { %2265 = vst.msk [vmem:[#allocation3 + $0x8] sm:$0xff] %vm349_vm0, %v5456_v0 }
  0x3a   : > { %2267 = vst.msk [vmem:[#allocation3 + $0x18] sm:$0xff] %vm349_vm0, %v5456_v0 }
  0x3b   : > { %2268 = vst.msk [vmem:[#allocation3 + $0x20] sm:$0xff] %vm349_vm0, %v5456_v0 }
  0x3c   : > { %2270 = vst.msk [vmem:[#allocation3 + $0x30] sm:$0xff] %vm349_vm0, %v5456_v0 }
  0x3d   : > { %2271 = vst.msk [vmem:[#allocation3 + $0x38] sm:$0xff] %vm349_vm0, %v5456_v0 }
  0x3e   : > { %2273 = vst.msk [vmem:[#allocation3 + $0x48] sm:$0xff] %vm349_vm0, %v5456_v0 }
  0x3f   : > { %2274 = vst.msk [vmem:[#allocation3 + $0x50] sm:$0xff] %vm349_vm0, %v5456_v0 }
  0x40   : > { %2276 = vst.msk [vmem:[#allocation3 + $0x60] sm:$0xff] %vm349_vm0, %v5456_v0 }
  0x41   : > { %2277 = vst.msk [vmem:[#allocation3 + $0x68] sm:$0xff] %vm349_vm0, %v5456_v0 }
  0x42   : > { %2279 = vst.msk [vmem:[#allocation3 + $0x78] sm:$0xff] %vm349_vm0, %v5456_v0 }
  0x43   : > { %2280 = vst.msk [vmem:[#allocation3 + $0x80] sm:$0xff] %vm349_vm0, %v5456_v0 }
  0x44   : > { %2282 = vst.msk [vmem:[#allocation3 + $0x90] sm:$0xff] %vm349_vm0, %v5456_v0 }
  0x45   : > { %2283 = vst.msk [vmem:[#allocation3 + $0x98] sm:$0xff] %vm349_vm0, %v5456_v0 }
  0x46   : > { %2285 = vst.msk [vmem:[#allocation3 + $0xa8] sm:$0xff] %vm349_vm0, %v5456_v0 }
  0x47   : > { %2286 = vst.msk [vmem:[#allocation3 + $0xb0] sm:$0xff] %vm349_vm0, %v5456_v0 }
  0x48   : > { %2288 = vst.msk [vmem:[#allocation3 + $0xc0] sm:$0xff] %vm349_vm0, %v5456_v0 }
  0x49   : > { %2289 = vst.msk [vmem:[#allocation3 + $0xc8] sm:$0xff] %vm349_vm0, %v5456_v0 }
  0x4a   : > { %2291 = vst.msk [vmem:[#allocation3 + $0xd8] sm:$0xff] %vm349_vm0, %v5456_v0 }
  0x4b   : > { %2292 = vst.msk [vmem:[#allocation3 + $0xe0] sm:$0xff] %vm349_vm0, %v5456_v0 }
  0x4c   : > { %2294 = vst.msk [vmem:[#allocation3 + $0xf0] sm:$0xff] %vm349_vm0, %v5456_v0 }
  0x4d   : > { %2295 = vst.msk [vmem:[#allocation3 + $0xf8] sm:$0xff] %vm349_vm0, %v5456_v0 }
  0x4e   : > { %2297 = vst.msk [vmem:[#allocation3 + $0x108] sm:$0xff] %vm349_vm0, %v5456_v0 }
  0x4f   : > { %2298 = vst.msk [vmem:[#allocation3 + $0x110] sm:$0xff] %vm349_vm0, %v5456_v0 }
  0x50   : > { %2300 = vst.msk [vmem:[#allocation3 + $0x120] sm:$0xff] %vm349_vm0, %v5456_v0 }
  0x51   : > { %2301 = vst.msk [vmem:[#allocation3 + $0x128] sm:$0xff] %vm349_vm0, %v5456_v0 }
  0x52   : > { %2303 = vst.msk [vmem:[#allocation3 + $0x138] sm:$0xff] %vm349_vm0, %v5456_v0 }
  0x53   : > { %2304 = vst.msk [vmem:[#allocation3 + $0x140] sm:$0xff] %vm349_vm0, %v5456_v0 }
  0x54   : > { %2306 = vst.msk [vmem:[#allocation3 + $0x150] sm:$0xff] %vm349_vm0, %v5456_v0 }
  0x55   : > { %2307 = vst.msk [vmem:[#allocation3 + $0x158] sm:$0xff] %vm349_vm0, %v5456_v0 }
  0x56   : > { %2309 = vst.msk [vmem:[#allocation3 + $0x168] sm:$0xff] %vm349_vm0, %v5456_v0 }
  0x57   : > { %2310 = vst.msk [vmem:[#allocation3 + $0x170] sm:$0xff] %vm349_vm0, %v5456_v0 }
  0x58   : > { %2312 = vst.msk [vmem:[#allocation3 + $0x180] sm:$0xff] %vm349_vm0, %v5456_v0 }
  0x59   : > { %2313 = vst.msk [vmem:[#allocation3 + $0x188] sm:$0xff] %vm349_vm0, %v5456_v0 }
  0x5a   : > { %2315 = vst.msk [vmem:[#allocation3 + $0x198] sm:$0xff] %vm349_vm0, %v5456_v0 }
  0x5b   : > { %2316 = vst.msk [vmem:[#allocation3 + $0x1a0] sm:$0xff] %vm349_vm0, %v5456_v0 }
  0x5c   : > { %380 = vst.msk [vmem:[#allocation2 + $0xe8] sm:$0x3] %vm352_vm1, %v5456_v0 }
  0x5d   : > { %353 = vst.msk [vmem:[#allocation2 + $0x10] sm:$0x3] %vm352_vm1, %v5456_v0 }
  0x5e   : > { %356 = vst.msk [vmem:[#allocation2 + $0x28] sm:$0x3] %vm352_vm1, %v5456_v0 }
  0x5f   : > { %359 = vst.msk [vmem:[#allocation2 + $0x40] sm:$0x3] %vm352_vm1, %v5456_v0 }
  0x60   : > { %362 = vst.msk [vmem:[#allocation2 + $0x58] sm:$0x3] %vm352_vm1, %v5456_v0 }
  0x61   : > { %365 = vst.msk [vmem:[#allocation2 + $0x70] sm:$0x3] %vm352_vm1, %v5456_v0 }
  0x62   : > { %368 = vst.msk [vmem:[#allocation2 + $0x88] sm:$0x3] %vm352_vm1, %v5456_v0 }
  0x63   : > { %371 = vst.msk [vmem:[#allocation2 + $0xa0] sm:$0x3] %vm352_vm1, %v5456_v0 }
  0x64   : > { %374 = vst.msk [vmem:[#allocation2 + $0xb8] sm:$0x3] %vm352_vm1, %v5456_v0  ;;  %v471_v10 = vld [vmem:[#allocation2 + $0x9] sm:$0xff] }
  0x65   : > { %377 = vst.msk [vmem:[#allocation2 + $0xd0] sm:$0x3] %vm352_vm1, %v5456_v0  ;;  %v4449_v11 = vpack.i.bf16 %v471_v10, %v470_v9 }
  0x66   : > { %383 = vst.msk [vmem:[#allocation2 + $0x100] sm:$0x3] %vm352_vm1, %v5456_v0 }
  0x67   : > { %386 = vst.msk [vmem:[#allocation2 + $0x118] sm:$0x3] %vm352_vm1, %v5456_v0  ;;  %4450 = vrot.lane.b32.xlu2 %v4449_v11, %s5457_s18 }
  0x68   : > { %389 = vst.msk [vmem:[#allocation2 + $0x130] sm:$0x3] %vm352_vm1, %v5456_v0 }
  0x69   : > { %392 = vst.msk [vmem:[#allocation2 + $0x148] sm:$0x3] %vm352_vm1, %v5456_v0 }
  0x6a   : > { %395 = vst.msk [vmem:[#allocation2 + $0x160] sm:$0x3] %vm352_vm1, %v5456_v0 }
  0x6b   : > { %398 = vst.msk [vmem:[#allocation2 + $0x178] sm:$0x3] %vm352_vm1, %v5456_v0 }
  0x6c   : > { %401 = vst.msk [vmem:[#allocation2 + $0x190] sm:$0x3] %vm352_vm1, %v5456_v0 }
  0x6d   : > { %404 = vst.msk [vmem:[#allocation2 + $0x1a8] sm:$0x3] %vm352_vm1, %v5456_v0 }
  0x6e   : > { %2266 = vst.msk [vmem:[#allocation3 + $0x10] sm:$0x3] %vm352_vm1, %v5456_v0 }
  0x6f   : > { %2269 = vst.msk [vmem:[#allocation3 + $0x28] sm:$0x3] %vm352_vm1, %v5456_v0 }
  0x70   : > { %2272 = vst.msk [vmem:[#allocation3 + $0x40] sm:$0x3] %vm352_vm1, %v5456_v0 }
  0x71   : > { %2275 = vst.msk [vmem:[#allocation3 + $0x58] sm:$0x3] %vm352_vm1, %v5456_v0 }
  0x72   : > { %2278 = vst.msk [vmem:[#allocation3 + $0x70] sm:$0x3] %vm352_vm1, %v5456_v0 }
  0x73   : > { %2281 = vst.msk [vmem:[#allocation3 + $0x88] sm:$0x3] %vm352_vm1, %v5456_v0 }
  0x74   : > { %2284 = vst.msk [vmem:[#allocation3 + $0xa0] sm:$0x3] %vm352_vm1, %v5456_v0 }
  0x75   : > { %2287 = vst.msk [vmem:[#allocation3 + $0xb8] sm:$0x3] %vm352_vm1, %v5456_v0 }
  0x76   : > { %2290 = vst.msk [vmem:[#allocation3 + $0xd0] sm:$0x3] %vm352_vm1, %v5456_v0 }
  0x77   : > { %2293 = vst.msk [vmem:[#allocation3 + $0xe8] sm:$0x3] %vm352_vm1, %v5456_v0 }
  0x78   : > { %2296 = vst.msk [vmem:[#allocation3 + $0x100] sm:$0x3] %vm352_vm1, %v5456_v0 }
  0x79   : > { %2299 = vst.msk [vmem:[#allocation3 + $0x118] sm:$0x3] %vm352_vm1, %v5456_v0 }
  0x7a   : > { %2302 = vst.msk [vmem:[#allocation3 + $0x130] sm:$0x3] %vm352_vm1, %v5456_v0 }
  0x7b   : > { %2305 = vst.msk [vmem:[#allocation3 + $0x148] sm:$0x3] %vm352_vm1, %v5456_v0 }
  0x7c   : > { %2308 = vst.msk [vmem:[#allocation3 + $0x160] sm:$0x3] %vm352_vm1, %v5456_v0 }
  0x7d   : > { %2311 = vst.msk [vmem:[#allocation3 + $0x178] sm:$0x3] %vm352_vm1, %v5456_v0 }
  0x7e   : > { %2314 = vst.msk [vmem:[#allocation3 + $0x190] sm:$0x3] %vm352_vm1, %v5456_v0 }
  0x7f   : > { %2317 = vst.msk [vmem:[#allocation3 + $0x1a8] sm:$0x3] %vm352_vm1, %v5456_v0 }
  0xbe   : > { %v333_v16 = vpop.trf.xlu1  ;;  %v301_v17 = vpop.trf.xlu0 }
  0xbf   : > { %422 = vst.msk [vmem:[#allocation2 + $0xd9] sm:$0xff] %vm349_vm0, %v333_v16 }
  0xc0   : > { %406 = vst.msk [vmem:[#allocation2 + $0x19] sm:$0xff] %vm349_vm0, %v301_v17 }
  0xc6   : > { %v334_v18 = vpop.trf.xlu1  ;;  %v302_v19 = vpop.trf.xlu0  ;;  %v488_v46 = vld [vmem:[#allocation2 + $0xd9] sm:$0xff] }
  0xc7   : > { %423 = vst.msk [vmem:[#allocation2 + $0xe1] sm:$0xff] %vm349_vm0, %v334_v18  ;;  %v472_v22 = vld [vmem:[#allocation2 + $0x19] sm:$0xff]  ;;  %v502_v18 = vld [vmem:[#allocation2 + $0x2] sm:$0xff] }
  0xc8   : > { %407 = vst.msk [vmem:[#allocation2 + $0x21] sm:$0xff] %vm349_vm0, %v302_v19  ;;  %v503_v19 = vld [vmem:[#allocation2 + $0xa] sm:$0xff] }
  0xce   : > { %v335_v20 = vpop.trf.xlu1  ;;  %v303_v21 = vpop.trf.xlu0  ;;  %v489_v47 = vld [vmem:[#allocation2 + $0xe1] sm:$0xff] }
  0xcf   : > { %424 = vst.msk [vmem:[#allocation2 + $0xf1] sm:$0xff] %vm349_vm0, %v335_v20  ;;  %v473_v23 = vld [vmem:[#allocation2 + $0x21] sm:$0xff]  ;;  %v4479_v51 = vpack.i.bf16 %v489_v47, %v488_v46 }
  0xd0   : > { %408 = vst.msk [vmem:[#allocation2 + $0x31] sm:$0xff] %vm349_vm0, %v303_v21  ;;  %v4454_v24 = vpack.i.bf16 %v473_v23, %v472_v22  ;;  %v4499_v23 = vpack.i.bf16 %v503_v19, %v502_v18 }
  0xd2   : > { %4455 = vrot.lane.b32.xlu2 %v4454_v24, %s5457_s18  ;;  %v504_v24 = vld [vmem:[#allocation2 + $0x1a] sm:$0xff] }
  0xd6   : > { %v336_v25 = vpop.trf.xlu1  ;;  %v304_v26 = vpop.trf.xlu0  ;;  %v490_v52 = vld [vmem:[#allocation2 + $0xf1] sm:$0xff] }
  0xd7   : > { %425 = vst.msk [vmem:[#allocation2 + $0xf9] sm:$0xff] %vm349_vm0, %v336_v25  ;;  %v474_v29 = vld [vmem:[#allocation2 + $0x31] sm:$0xff]  ;;  %v505_v25 = vld [vmem:[#allocation2 + $0x22] sm:$0xff] }
  0xd8   : > { %409 = vst.msk [vmem:[#allocation2 + $0x39] sm:$0xff] %vm349_vm0, %v304_v26 }
  0xde   : > { %v337_v27 = vpop.trf.xlu1  ;;  %v305_v28 = vpop.trf.xlu0  ;;  %v491_v53 = vld [vmem:[#allocation2 + $0xf9] sm:$0xff] }
  0xdf   : > { %426 = vst.msk [vmem:[#allocation2 + $0x109] sm:$0xff] %vm349_vm0, %v337_v27  ;;  %v695_v30 = vld [vmem:[#allocation2 + $0x32] sm:$0xff]  ;;  %v696_v32 = vld [vmem:[#allocation2 + $0x3a] sm:$0xff]  ;;  %v5843_v62 = vpack.i.bf16 %v491_v53, %v490_v52 }
  0xe0   : > { %v475_v31 = vld [vmem:[#allocation2 + $0x39] sm:$0xff]  ;;  %410 = vst.msk [vmem:[#allocation2 + $0x49] sm:$0xff] %vm349_vm0, %v305_v28  ;;  %4308 = vmatmul.msk.f32.vlgmr.msra.gmra.mxu2 %vm349_vm0, %v695_v30  ;;  %v5809_v34 = vpack.i.bf16 %v696_v32, %v695_v30 }
  0xe1   : > { %v5807_v33 = vpack.i.bf16 %v475_v31, %v474_v29 }
  0xe3   : > { %4460 = vrot.lane.b32.xlu2 %v5807_v33, %s5457_s18 }
  0xe6   : > { %v338_v35 = vpop.trf.xlu1  ;;  %v306_v36 = vpop.trf.xlu0  ;;  %v492_v3 = vld [vmem:[#allocation2 + $0x109] sm:$0xff] }
  0xe7   : > { %427 = vst.msk [vmem:[#allocation2 + $0x111] sm:$0xff] %vm349_vm0, %v338_v35  ;;  %v476_v42 = vld [vmem:[#allocation2 + $0x49] sm:$0xff]  ;;  %v535_v35 = vld [vmem:[#allocation2 + $0x20] sm:$0xff] }
  0xe8   : > { %411 = vst.msk [vmem:[#allocation2 + $0x51] sm:$0xff] %vm349_vm0, %v306_v36  ;;  %4309 = vmatmul.msk.f32.gmra.mxu2 %vm349_vm0, %v696_v32  ;;  %v4504_v32 = vpack.i.bf16 %v505_v25, %v504_v24  ;;  %v538_v47 = vld [vmem:[#allocation2 + $0x48] sm:$0xff]  ;;  %v522_v25 = vld [vmem:[#allocation2 + $0xf2] sm:$0xff] }
  0xee   : > { %v339_v37 = vpop.trf.xlu1  ;;  %v307_v38 = vpop.trf.xlu0  ;;  %v713_v39 = vld [vmem:[#allocation2 + $0x10a] sm:$0xff]  ;;  %v714_v40 = vld [vmem:[#allocation2 + $0x112] sm:$0xff] }
  0xef   : > { %428 = vst.msk [vmem:[#allocation2 + $0x121] sm:$0xff] %vm349_vm0, %v339_v37  ;;  %v5817_v41 = vld [vmem:[#allocation2 + $0x4a] sm:$0xff]  ;;  %4326 = vmatmul.msk.f32.vlgmr.msra.gmra.mxu3 %vm349_vm0, %v713_v39  ;;  %v5820_v44 = vpack.i.bf16 %v714_v40, %v713_v39  ;;  %v5827_v50 = vld [vmem:[#allocation2 + $0x52] sm:$0xff] }
  0xf0   : > { %v477_v43 = vld [vmem:[#allocation2 + $0x51] sm:$0xff]  ;;  %412 = vst.msk [vmem:[#allocation2 + $0x61] sm:$0xff] %vm349_vm0, %v307_v38  ;;  %4310 = vmatmul.msk.f32.gmra.mxu2 %vm349_vm0, %v5817_v41  ;;  %v5910_v53 = vpack.i.bf16 %v5827_v50, %v5817_v41 }
  0xf1   : > { %v4464_v45 = vpack.i.bf16 %v477_v43, %v476_v42  ;;  %v493_v4 = vld [vmem:[#allocation2 + $0x111] sm:$0xff] }
  0xf2   : > { %v5858_v8 = vpack.i.bf16 %v493_v4, %v492_v3  ;;  %v534_v38 = vld [vmem:[#allocation2 + $0x18] sm:$0xff]  ;;  %v539_v42 = vld [vmem:[#allocation2 + $0x50] sm:$0xff] }
  0xf3   : > { %4465 = vrot.lane.b32.xlu2 %v4464_v45, %s5457_s18 }
  0xf6   : > { %v340_v48 = vpop.trf.xlu1  ;;  %v308_v49 = vpop.trf.xlu0  ;;  %v494_v9 = vld [vmem:[#allocation2 + $0x121] sm:$0xff] }
  0xf7   : > { %429 = vst.msk [vmem:[#allocation2 + $0x129] sm:$0xff] %vm349_vm0, %v340_v48  ;;  %4327 = vmatmul.msk.f32.gmra.mxu3 %vm349_vm0, %v714_v40  ;;  %v478_v54 = vld [vmem:[#allocation2 + $0x61] sm:$0xff]  ;;  %v4609_v40 = vpack.i.bf16 %v535_v35, %v534_v38 }
  0xf8   : > { %413 = vst.msk [vmem:[#allocation2 + $0x69] sm:$0xff] %vm349_vm0, %v308_v49  ;;  %4311 = vmatmul.msk.f32.gmra.mxu2 %vm349_vm0, %v5827_v50  ;;  %v540_v0 = vld [vmem:[#allocation2 + $0x60] sm:$0xff]  ;;  %v552_v50 = vld [vmem:[#allocation2 + $0xf0] sm:$0xff] }
  0xfb   : > { %4480 = vrot.lane.b32.xlu2 %v4479_v51, %s5457_s18  ;;  %v5904_v51 = vpack.i.bf16 %v539_v42, %v538_v47 }
  0xfe   : > { %v341_v55 = vpop.trf.xlu1  ;;  %v309_v56 = vpop.trf.xlu0  ;;  %v715_v57 = vld [vmem:[#allocation2 + $0x122] sm:$0xff]  ;;  %v716_v58 = vld [vmem:[#allocation2 + $0x12a] sm:$0xff] }
  0xff   : > { %430 = vst.msk [vmem:[#allocation2 + $0x139] sm:$0xff] %vm349_vm0, %v341_v55  ;;  %v5835_v59 = vld [vmem:[#allocation2 + $0x62] sm:$0xff]  ;;  %4328 = vmatmul.msk.f32.gmra.mxu3 %vm349_vm0, %v715_v57  ;;  %v5838_v61 = vpack.i.bf16 %v716_v58, %v715_v57  ;;  %v5851_v2 = vld [vmem:[#allocation2 + $0x6a] sm:$0xff]  ;;  %v5918_v57 = vpop.permute.xlu2 %4450 }
 0x100   : > { %v479_v60 = vld [vmem:[#allocation2 + $0x69] sm:$0xff]  ;;  %414 = vst.msk [vmem:[#allocation2 + $0x79] sm:$0xff] %vm349_vm0, %v309_v56  ;;  %4312 = vmatmul.msk.f32.gmra.mxu2 %vm349_vm0, %v5835_v59 }
 0x101   : > { %v5845_v63 = vpack.i.bf16 %v479_v60, %v478_v54  ;;  %v541_v1 = vld [vmem:[#allocation2 + $0x68] sm:$0xff] }
 0x102   : > { %v4624_v7 = vpack.i.bf16 %v541_v1, %v540_v0  ;;  %v495_v10 = vld [vmem:[#allocation2 + $0x129] sm:$0xff]  ;;  %v553_v0 = vld [vmem:[#allocation2 + $0xf8] sm:$0xff] }
 0x103   : > { %4485 = vrot.lane.b32.xlu2 %v5843_v62, %s5457_s18  ;;  %4470 = vrot.lane.b32.xlu0 %v5845_v63, %s5457_s18  ;;  %v4494_v16 = vpack.i.bf16 %v495_v10, %v494_v9 }
 0x106   : > { %v342_v5 = vpop.trf.xlu1  ;;  %v310_v6 = vpop.trf.xlu0  ;;  %v558_v9 = vld [vmem:[#allocation2 + $0x138] sm:$0xff] }
 0x107   : > { %431 = vst.msk [vmem:[#allocation2 + $0x141] sm:$0xff] %vm349_vm0, %v342_v5  ;;  %4329 = vmatmul.msk.f32.gmra.mxu3 %vm349_vm0, %v716_v58  ;;  %v480_v11 = vld [vmem:[#allocation2 + $0x79] sm:$0xff] }
 0x108   : > { %415 = vst.msk [vmem:[#allocation2 + $0x81] sm:$0xff] %vm349_vm0, %v310_v6  ;;  %4313 = vmatmul.msk.f32.gmra.mxu2 %vm349_vm0, %v5851_v2  ;;  %v4654_v6 = vpack.i.bf16 %v553_v0, %v552_v50  ;;  %v1699_v0 = vld [vmem:[%s7905_s1 + $0x50] sm:$0xff] }
 0x10b   : > { %4490 = vrot.lane.b32.xlu2 %v5858_v8, %s5457_s18  ;;  %4625 = vrot.lane.b32.xlu0 %v4624_v7, %s5458_s13  ;;  %v4519_v7 = vpack.i.bf16 %v5851_v2, %v5835_v59 }
 0x10e   : > { %v343_v12 = vpop.trf.xlu1  ;;  %v311_v13 = vpop.trf.xlu0  ;;  %v717_v54 = vld [vmem:[#allocation2 + $0x13a] sm:$0xff]  ;;  %v718_v55 = vld [vmem:[#allocation2 + $0x142] sm:$0xff] }
 0x10f   : > { %432 = vst.msk [vmem:[#allocation2 + $0x151] sm:$0xff] %vm349_vm0, %v343_v12  ;;  %v701_v14 = vld [vmem:[#allocation2 + $0x7a] sm:$0xff]  ;;  %v702_v20 = vld [vmem:[#allocation2 + $0x82] sm:$0xff]  ;;  %4330 = vmatmul.msk.f32.gmra.mxu3 %vm349_vm0, %v717_v54  ;;  %v5923_v41 = vpack.i.bf16 %v718_v55, %v717_v54 }
 0x110   : > { %v481_v15 = vld [vmem:[#allocation2 + $0x81] sm:$0xff]  ;;  %416 = vst.msk [vmem:[#allocation2 + $0x91] sm:$0xff] %vm349_vm0, %v311_v13  ;;  %4314 = vmatmul.msk.f32.gmra.mxu2 %vm349_vm0, %v701_v14  ;;  %v5916_v56 = vpack.i.bf16 %v702_v20, %v701_v14  ;;  %v550_v12 = vld [vmem:[#allocation2 + $0xd8] sm:$0xff] }
 0x111   : > { %v5866_v17 = vpack.i.bf16 %v481_v15, %v480_v11  ;;  %v559_v10 = vld [vmem:[#allocation2 + $0x140] sm:$0xff] }
 0x112   : > { %v551_v13 = vld [vmem:[#allocation2 + $0xe0] sm:$0xff]  ;;  %v4669_v59 = vpack.i.bf16 %v559_v10, %v558_v9  ;;  %v1698_v9 = vld [vmem:[%s7905_s1 + $0x48] sm:$0xff] }
 0x113   : > { %4495 = vrot.lane.b32.xlu2 %v4494_v16, %s5457_s18  ;;  %4475 = vrot.lane.b32.xlu1 %v5866_v17, %s5457_s18  ;;  %v520_v14 = vld [vmem:[#allocation2 + $0xda] sm:$0xff]  ;;  %v521_v15 = vld [vmem:[#allocation2 + $0xe2] sm:$0xff]  ;;  %v5942_v16 = vpack.i.bf16 %v551_v13, %v550_v12 }
 0x114   : > { %v4524_v18 = vpack.i.bf16 %v521_v15, %v520_v14  ;;  %v1697_v10 = vld [vmem:[%s7905_s1 + $0x40] sm:$0xff]  ;;  %v1696_v12 = vld [vmem:[%s7905_s1 + $0x38] sm:$0xff] }
 0x116   : > { %v344_v21 = vpop.trf.xlu1  ;;  %v312_v22 = vpop.trf.xlu0 }
 0x117   : > { %433 = vst.msk [vmem:[#allocation2 + $0x159] sm:$0xff] %vm349_vm0, %v344_v21  ;;  %v544_v58 = vld [vmem:[#allocation2 + $0x90] sm:$0xff]  ;;  %4331 = vmatmul.msk.f32.gmra.mxu3 %vm349_vm0, %v718_v55 }
 0x118   : > { %417 = vst.msk [vmem:[#allocation2 + $0x99] sm:$0xff] %vm349_vm0, %v312_v22  ;;  %4315 = vmatmul.msk.f32.gmra.mxu2 %vm349_vm0, %v702_v20  ;;  %v556_v22 = vld [vmem:[#allocation2 + $0x120] sm:$0xff] }
 0x11b   : > { %4500 = vrot.lane.b32.xlu2 %v4499_v23, %s5459_s14  ;;  %v557_v23 = vld [vmem:[#allocation2 + $0x128] sm:$0xff] }
 0x11e   : > { %v313_v26 = vpop.trf.xlu0  ;;  %v5875_v27 = vld [vmem:[#allocation2 + $0x152] sm:$0xff]  ;;  %v5877_v28 = vld [vmem:[#allocation2 + $0x15a] sm:$0xff]  ;;  %v345_v29 = vpop.trf.xlu1 }
 0x11f   : > { %418 = vst.msk [vmem:[#allocation2 + $0xa9] sm:$0xff] %vm349_vm0, %v313_v26  ;;  %v5880_v30 = vld [vmem:[#allocation2 + $0x92] sm:$0xff]  ;;  %v5884_v31 = vpack.i.bf16 %v5877_v28, %v5875_v27  ;;  %v5892_v36 = vld [vmem:[#allocation2 + $0x9a] sm:$0xff]  ;;  %4332 = vmatmul.msk.f32.gmra.mxu3 %vm349_vm0, %v5875_v27 }
 0x120   : > { %4316 = vmatmul.msk.f32.gmra.mxu2 %vm349_vm0, %v5880_v30  ;;  %434 = vst.msk [vmem:[#allocation2 + $0x169] sm:$0xff] %vm349_vm0, %v345_v29  ;;  %v545_v60 = vld [vmem:[#allocation2 + $0x98] sm:$0xff] }
 0x121   : > { %4600 = vrot.lane.b32.xlu1 %v5884_v31, %s5459_s14  ;;  %v5927_v3 = vpack.i.bf16 %v545_v60, %v544_v58  ;;  %v523_v26 = vld [vmem:[#allocation2 + $0xfa] sm:$0xff]  ;;  %v1702_v58 = vld [vmem:[%s7905_s1 + $0x68] sm:$0xff] }
 0x122   : > { %v5956_v35 = vpack.i.bf16 %v523_v26, %v522_v25  ;;  %v483_v54 = vld [vmem:[#allocation2 + $0x99] sm:$0xff] }
 0x123   : > { %4505 = vrot.lane.b32.xlu2 %v4504_v32, %s5459_s14  ;;  %v5953_v32 = vpack.i.bf16 %v557_v23, %v556_v22  ;;  %v1700_v60 = vld [vmem:[%s7905_s1 + $0x58] sm:$0xff] }
 0x124   : > { %v6077_v22 = vld [vmem:[#allocation2 + $0x38] sm:$0xff] }
 0x126   : > { %v314_v37 = vpop.trf.xlu0  ;;  %v346_v39 = vpop.trf.xlu1  ;;  %v546_v43 = vld [vmem:[#allocation2 + $0xa8] sm:$0xff] }
 0x127   : > { %419 = vst.msk [vmem:[#allocation2 + $0xb1] sm:$0xff] %vm349_vm0, %v314_v37  ;;  %v562_v27 = vld [vmem:[#allocation2 + $0x168] sm:$0xff]  ;;  %4333 = vmatmul.msk.f32.gmra.mxu3 %vm349_vm0, %v5877_v28  ;;  %v496_v28 = vld [vmem:[#allocation2 + $0x139] sm:$0xff] }
 0x128   : > { %4317 = vmatmul.msk.f32.gmra.mxu2 %vm349_vm0, %v5892_v36  ;;  %435 = vst.msk [vmem:[#allocation2 + $0x171] sm:$0xff] %vm349_vm0, %v346_v39 }
 0x129   : > { %4610 = vrot.lane.b32.xlu1 %v4609_v40, %s5458_s13 }
 0x12b   : > { %4510 = vrot.lane.b32.xlu2 %v5809_v34, %s5459_s14 }
 0x12c   : > { %v5940_v11 = vpop.permute.xlu2 %4455 }
 0x12e   : > { %v315_v45 = vpop.trf.xlu0  ;;  %v5901_v46 = vld [vmem:[#allocation2 + $0xaa] sm:$0xff]  ;;  %v347_v49 = vpop.trf.xlu1  ;;  %v5925_v1 = vld [vmem:[#allocation2 + $0xb2] sm:$0xff] }
 0x12f   : > { %v547_v48 = vld [vmem:[#allocation2 + $0xb0] sm:$0xff]  ;;  %420 = vst.msk [vmem:[#allocation2 + $0xc1] sm:$0xff] %vm349_vm0, %v315_v45  ;;  %v5981_v45 = vpack.i.bf16 %v5892_v36, %v5880_v30  ;;  %v1704_v36 = vld [vmem:[%s7905_s1 + $0x78] sm:$0xff] }
 0x130   : > { %v4639_v52 = vpack.i.bf16 %v547_v48, %v546_v43  ;;  %4318 = vmatmul.msk.f32.gmra.mxu2 %vm349_vm0, %v5901_v46  ;;  %436 = vst.msk [vmem:[#allocation2 + $0x181] sm:$0xff] %vm349_vm0, %v347_v49  ;;  %v563_v37 = vld [vmem:[#allocation2 + $0x170] sm:$0xff]  ;;  %v497_v43 = vld [vmem:[#allocation2 + $0x141] sm:$0xff]  ;;  %v4574_v49 = vpack.i.bf16 %v5925_v1, %v5901_v46  ;;  %1821 = vmatpush.msra.mxu0 %v1704_v36 }
 0x131   : > { %4620 = vrot.lane.b32.xlu1 %v5904_v51, %s5458_s13  ;;  %v5967_v39 = vpack.i.bf16 %v563_v37, %v562_v27  ;;  %v626_v40 = vld [vmem:[#allocation2 + $0x16a] sm:$0xff]  ;;  %v5984_v47 = vpack.i.bf16 %v497_v43, %v496_v28  ;;  %v627_v48 = vld [vmem:[#allocation2 + $0x172] sm:$0xff]  ;;  %4379 = vmatpush.msra.mxu1 %v1704_v36  ;;  %v638_v37 = vld [vmem:[#allocation2 + $0x80] sm:$0xff] }
 0x132   : > { %4640 = vrot.lane.b32.xlu0 %v4639_v52, %s5458_s13  ;;  %4334 = vmatmul.msk.f32.gmra.mxu3 %vm349_vm0, %v626_v40  ;;  %v485_v23 = vld [vmem:[#allocation2 + $0xb1] sm:$0xff] }
 0x133   : > { %4515 = vrot.lane.b32.xlu2 %v5910_v53, %s5459_s14  ;;  %v637_v27 = vld [vmem:[#allocation2 + $0x78] sm:$0xff] }
 0x134   : > { %v501_v28 = vld [vmem:[#allocation2 + $0x171] sm:$0xff]  ;;  %v6101_v43 = vpack.i.bf16 %v638_v37, %v637_v27  ;;  %v662_v37 = vld [vmem:[#allocation2 + $0x1a0] sm:$0xff] }
 0x135   : > { %v661_v27 = vld [vmem:[#allocation2 + $0x198] sm:$0xff] }
 0x136   : > { %v316_v4 = vpop.trf.xlu0  ;;  %v348_v5 = vpop.trf.xlu1 }
 0x137   : > { %421 = vst.msk [vmem:[#allocation2 + $0xc9] sm:$0xff] %vm349_vm0, %v316_v4  ;;  %v564_v19 = vld [vmem:[#allocation2 + $0x180] sm:$0xff] }
 0x138   : > { %4319 = vmatmul.msk.f32.gmra.mxu2 %vm349_vm0, %v5925_v1  ;;  %437 = vst.msk [vmem:[#allocation2 + $0x189] sm:$0xff] %vm349_vm0, %v348_v5  ;;  %v498_v5 = vld [vmem:[#allocation2 + $0x151] sm:$0xff]  ;;  %v438_v1 = vld [vmem:[#allocation2] sm:$0xff] }
 0x139   : > { %4635 = vrot.lane.b32.xlu1 %v5927_v3, %s5458_s13 }
 0x13a   : > { %4655 = vrot.lane.b32.xlu0 %v4654_v6, %s5458_s13  ;;  %4335 = vmatmul.msk.f32.gmra.mxu3 %vm349_vm0, %v627_v48  ;;  %v499_v6 = vld [vmem:[#allocation2 + $0x159] sm:$0xff] }
 0x13b   : > { %4520 = vrot.lane.b32.xlu2 %v4519_v7, %s5459_s14  ;;  %v6033_v7 = vpack.i.bf16 %v627_v48, %v626_v40  ;;  %v6044_v13 = vpack.i.bf16 %v499_v6, %v498_v5  ;;  %v500_v40 = vld [vmem:[#allocation2 + $0x169] sm:$0xff] }
 0x13d   : > { %v5951_v21 = vpop.permute.xlu2 %4460 }
 0x13e   : > { %v707_v2 = vld [vmem:[#allocation2 + $0xc2] sm:$0xff]  ;;  %v708_v24 = vld [vmem:[#allocation2 + $0xca] sm:$0xff] }
 0x13f   : > { %v565_v20 = vld [vmem:[#allocation2 + $0x188] sm:$0xff]  ;;  %v6011_v55 = vpack.i.bf16 %v708_v24, %v707_v2 }
 0x140   : > { %4320 = vmatmul.msk.f32.gmra.mxu2 %vm349_vm0, %v707_v2  ;;  %v4684_v29 = vpack.i.bf16 %v565_v20, %v564_v19  ;;  %v1692_v2 = vld [vmem:[%s7905_s1 + $0x18] sm:$0xff]  ;;  %v484_v20 = vld [vmem:[#allocation2 + $0xa9] sm:$0xff] }
 0x141   : > { %4650 = vrot.lane.b32.xlu1 %v5942_v16, %s5458_s13  ;;  %v6110_v48 = vld [vmem:[#allocation2 + $0xc8] sm:$0xff] }
 0x142   : > { %4670 = vrot.lane.b32.xlu0 %v4669_v59, %s5458_s13  ;;  %v1694_v59 = vld [vmem:[%s7905_s1 + $0x28] sm:$0xff] }
 0x143   : > { %4525 = vrot.lane.b32.xlu2 %v4524_v18, %s5459_s14 }
 0x148   : > { %4321 = vmatmul.msk.f32.gmra.mxu2 %vm349_vm0, %v708_v24  ;;  %v6085_v24 = vld [vmem:[#allocation2 + $0x30] sm:$0xff] }
 0x149   : > { %4665 = vrot.lane.b32.xlu1 %v5953_v32, %s5458_s13 }
 0x14a   : > { %4685 = vrot.lane.b32.xlu0 %v4684_v29, %s5458_s13 }
 0x14b   : > { %4530 = vrot.lane.b32.xlu2 %v5956_v35, %s5459_s14 }
 0x14d   : > { %v5965_v38 = vpop.permute.xlu2 %4465 }
 0x150   : > { %4322 = vmatmul.msk.f32.gmra.mxu2 %vm349_vm0, %v520_v14  ;;  %v1695_v14 = vld [vmem:[%s7905_s1 + $0x30] sm:$0xff] }
 0x151   : > { %4680 = vrot.lane.b32.xlu1 %v5967_v39, %s5458_s13 }
 0x152   : > { %4700 = vrot.lane.b32.xlu0 %v5910_v53, %s5457_s18  ;;  %v482_v53 = vld [vmem:[#allocation2 + $0x91] sm:$0xff] }
 0x153   : > { %4535 = vrot.lane.b32.xlu2 %v5820_v44, %s5459_s14  ;;  %v4549_v50 = vpack.i.bf16 %v483_v54, %v482_v53 }
 0x155   : > { %v5977_v42 = vpop.permute.xlu2 %4480 }
 0x158   : > { %4323 = vmatmul.msk.f32.gmra.mxu2 %vm349_vm0, %v521_v15 }
 0x159   : > { %4695 = vrot.lane.b32.xlu1 %v5809_v34, %s5457_s18  ;;  %v1703_v34 = vld [vmem:[%s7905_s1 + $0x70] sm:$0xff] }
 0x15a   : > { %4715 = vrot.lane.b32.xlu0 %v5981_v45, %s5457_s18  ;;  %1822 = vmatpush.msra.mxu0 %v1703_v34 }
 0x15b   : > { %4540 = vrot.lane.b32.xlu2 %v5984_v47, %s5457_s18  ;;  %4380 = vmatpush.msra.mxu1 %v1703_v34 }
 0x15c   : > { %1823 = vmatpush.msra.mxu0 %v1702_v58 }
 0x15d   : > { %v5995_v30 = vpop.permute.xlu2 %4485  ;;  %4381 = vmatpush.msra.mxu1 %v1702_v58  ;;  %v6132_v58 = vld [vmem:[#allocation2 + $0x108] sm:$0xff] }
 0x160   : > { %4324 = vmatmul.msk.f32.gmra.mxu2 %vm349_vm0, %v522_v25  ;;  %v6089_v25 = vpack.i.bf16 %v6077_v22, %v6085_v24 }
 0x161   : > { %4710 = vrot.lane.b32.xlu1 %v5916_v56, %s5457_s18 }
 0x162   : > { %4730 = vrot.lane.b32.xlu0 %v4524_v18, %s5457_s18  ;;  %v1691_v18 = vld [vmem:[%s7905_s1 + $0x10] sm:$0xff] }
 0x163   : > { %4545 = vrot.lane.b32.xlu2 %v5916_v56, %s5459_s14  ;;  %v1701_v56 = vld [vmem:[%s7905_s1 + $0x60] sm:$0xff] }
 0x164   : > { %1824 = vmatpush.msra.mxu0 %v1701_v56  ;;  %4382 = vmatpush.msra.mxu1 %v1701_v56  ;;  %v6134_v56 = vld [vmem:[#allocation2 + $0x110] sm:$0xff] }
 0x165   : > { %v6009_v52 = vpop.permute.xlu2 %4490 }
 0x166   : > { %1825 = vmatpush.msra.mxu0 %v1700_v60  ;;  %4383 = vmatpush.msra.mxu1 %v1700_v60  ;;  %v486_v60 = vld [vmem:[#allocation2 + $0xc1] sm:$0xff] }
 0x168   : > { %4325 = vmatmul.msk.f32.gmra.mxu2 %vm349_vm0, %v523_v26  ;;  %1826 = vmatpush.msra.mxu0 %v1699_v0  ;;  %v6091_v26 = vpack.i.bf16 %v485_v23, %v484_v20  ;;  %v6157_v20 = vld [vmem:[#allocation2 + $0x18a] sm:$0xff] }
 0x169   : > { %4725 = vrot.lane.b32.xlu1 %v6011_v55, %s5457_s18  ;;  %4384 = vmatpush.msra.mxu1 %v1699_v0  ;;  %v4452_v0 = vunpack.i.l.bf16 %v5918_v57 }
 0x16a   : > { %4745 = vrot.lane.b32.xlu0 %v5838_v61, %s5457_s18  ;;  %1827 = vmatpush.msra.mxu0 %v1698_v9 }
 0x16b   : > { %4550 = vrot.lane.b32.xlu2 %v4549_v50, %s5457_s18  ;;  %4385 = vmatpush.msra.mxu1 %v1698_v9  ;;  %v487_v50 = vld [vmem:[#allocation2 + $0xc9] sm:$0xff] }
 0x16c   : > { %1828 = vmatpush.msra.mxu0 %v1697_v10  ;;  %v4579_v5 = vpack.i.bf16 %v487_v50, %v486_v60 }
 0x16d   : > { %v6031_v4 = vpop.permute.xlu2 %4495  ;;  %4386 = vmatpush.msra.mxu1 %v1697_v10  ;;  %v1495_v10 = vsel %vm349_vm0, %v438_v1, %v4452_v0 }
 0x16e   : > { %1829 = vmatpush.msra.mxu0 %v1696_v12 }
 0x16f   : > { %4387 = vmatpush.msra.mxu1 %v1696_v12  ;;  %v655_v12 = vld [vmem:[#allocation2 + $0x150] sm:$0xff] }
 0x170   : > { %1830 = vmatpush.msra.mxu0 %v1695_v14 }
 0x171   : > { %4740 = vrot.lane.b32.xlu1 %v5820_v44, %s5457_s18  ;;  %v1693_v44 = vld [vmem:[%s7905_s1 + $0x20] sm:$0xff]  ;;  %4388 = vmatpush.msra.mxu1 %v1695_v14  ;;  %v656_v14 = vld [vmem:[#allocation2 + $0x158] sm:$0xff] }
 0x172   : > { %4760 = vrot.lane.b32.xlu0 %v6033_v7, %s5457_s18  ;;  %1831 = vmatpush.msra.mxu0 %v1694_v59 }
 0x173   : > { %4555 = vrot.lane.b32.xlu2 %v6044_v13, %s5457_s18  ;;  %4389 = vmatpush.msra.mxu1 %v1694_v59 }
 0x174   : > { %1832 = vmatpush.msra.mxu0 %v1693_v44 }
 0x175   : > { %v6055_v15 = vpop.permute.xlu2 %4500  ;;  %4390 = vmatpush.msra.mxu1 %v1693_v44  ;;  %v6151_v44 = vld [vmem:[#allocation2 + $0x182] sm:$0xff] }
 0x176   : > { %1833 = vmatpush.msra.mxu0 %v1692_v2  ;;  %v4502_v46 = vunpack.i.l.bf16 %v6055_v15  ;;  %4336 = vmatmul.msk.f32.gmra.mxu3 %vm349_vm0, %v6151_v44  ;;  %v4503_v23 = vunpack.i.h.bf16 %v6055_v15 }
 0x177   : > { %4391 = vmatpush.msra.mxu1 %v1692_v2  ;;  %v4829_v2 = vpack.i.bf16 %v656_v14, %v655_v12  ;;  %v6230_v12 = vpop.permute.xlu0 %4470 }
 0x178   : > { %1834 = vmatpush.msra.mxu0 %v1691_v18  ;;  %v1528_v59 = vsel %vm1527_vm2, %v1495_v10, %v4502_v46  ;;  %v599_v46 = vld [vmem:[#allocation2 + $0x22] sm:$0xff]  ;;  %v605_v10 = vld [vmem:[#allocation2 + $0x6a] sm:$0xff] }
 0x179   : > { %4755 = vrot.lane.b32.xlu1 %v5884_v31, %s5457_s18  ;;  %v1690_v31 = vld [vmem:[%s7905_s1 + $0x8] sm:$0xff]  ;;  %4392 = vmatpush.msra.mxu1 %v1691_v18  ;;  %v4453_v18 = vunpack.i.h.bf16 %v5918_v57 }
 0x17a   : > { %4775 = vrot.lane.b32.xlu0 %v5904_v51, %s5459_s14  ;;  %v1689_v51 = vld [vmem:[%s7905_s1] sm:$0xff]  ;;  %1835 = vmatpush.msra.mxu0 %v1690_v31 }
 0x17b   : > { %4560 = vrot.lane.b32.xlu2 %v5981_v45, %s5459_s14  ;;  %4393 = vmatpush.msra.mxu1 %v1690_v31  ;;  %v4569_v45 = vpack.i.bf16 %v501_v28, %v500_v40  ;;  %v439_v31 = vld [vmem:[#allocation2 + $0x8] sm:$0xff]  ;;  %v4764_v40 = vpack.i.bf16 %v6157_v20, %v6151_v44 }
 0x17c   : > { %1836 = vmatpush.msra.mxu0 %v1689_v51  ;;  %v1496_v28 = vsel %vm349_vm0, %v439_v31, %v4453_v18  ;;  %v611_v18 = vld [vmem:[#allocation2 + $0xb2] sm:$0xff] }
 0x17d   : > { %v6075_v19 = vpop.permute.xlu2 %4505  ;;  %4394 = vmatpush.msra.mxu1 %v1689_v51  ;;  %v1529_v15 = vsel %vm1527_vm2, %v1496_v28, %v4503_v23  ;;  %v1720_v23 = vld [vmem:[%s7905_s1 + $0xf8] sm:$0xff] }
 0x17e   : > { %4337 = vmatmul.msk.f32.gmra.mxu3 %vm349_vm0, %v6157_v20  ;;  %v4457_v20 = vunpack.i.l.bf16 %v5940_v11 }
 0x17f   : > { %1934 = vmatpush.msrb.mxu1 %v1720_v23  ;;  %v6238_v31 = vpop.permute.xlu0 %4625 }
 0x181   : > { %4770 = vrot.lane.b32.xlu1 %v6089_v25, %s5459_s14 }
 0x182   : > { %4790 = vrot.lane.b32.xlu0 %v5927_v3, %s5459_s14  ;;  %v6108_v3 = vld [vmem:[#allocation2 + $0xc0] sm:$0xff] }
 0x183   : > { %4565 = vrot.lane.b32.xlu2 %v6091_v26, %s5457_s18  ;;  %v6118_v53 = vpack.i.bf16 %v6110_v48, %v6108_v3 }
 0x185   : > { %v6099_v29 = vpop.permute.xlu2 %4510  ;;  %v6112_v36 = vpop.permute.xlu1 %4475 }
 0x189   : > { %4785 = vrot.lane.b32.xlu1 %v6101_v43, %s5459_s14 }
 0x18a   : > { %4805 = vrot.lane.b32.xlu0 %v5942_v16, %s5459_s14 }
 0x18b   : > { %4570 = vrot.lane.b32.xlu2 %v4569_v45, %s5457_s18  ;;  %v4844_v45 = vpack.i.bf16 %v662_v37, %v661_v27 }
 0x18d   : > { %v6114_v34 = vpop.permute.xlu2 %4515 }
 0x191   : > { %4800 = vrot.lane.b32.xlu1 %v6118_v53, %s5459_s14 }
 0x192   : > { %4820 = vrot.lane.b32.xlu0 %v5953_v32, %s5459_s14  ;;  %v6138_v32 = vpack.i.bf16 %v6134_v56, %v6132_v58 }
 0x193   : > { %4575 = vrot.lane.b32.xlu2 %v4574_v49, %s5459_s14  ;;  %v6128_v16 = vpop.permute.xlu1 %4600 }
 0x195   : > { %v6130_v54 = vpop.permute.xlu2 %4520 }
 0x199   : > { %4815 = vrot.lane.b32.xlu1 %v6138_v32, %s5459_s14 }
 0x19a   : > { %4835 = vrot.lane.b32.xlu0 %v5967_v39, %s5459_s14 }
 0x19b   : > { %4580 = vrot.lane.b32.xlu2 %v4579_v5, %s5457_s18  ;;  %v4611_v49 = vpop.permute.xlu1 %4610 }
 0x19c   : > { %v4612_v9 = vunpack.i.l.bf16 %v4611_v49  ;;  %v4613_v51 = vunpack.i.h.bf16 %v4611_v49 }
 0x19d   : > { %v6147_v6 = vpop.permute.xlu2 %4525 }
 0x19e   : > { %v1561_v39 = vsel %vm1560_vm3, %v1528_v59, %v4612_v9  ;;  %v604_v9 = vld [vmem:[#allocation2 + $0x62] sm:$0xff] }
 0x19f   : > { %1837 = vmatmul.f32.vlgmr.msra.gmra.mxu0 %v1561_v39  ;;  %v4704_v14 = vpack.i.bf16 %v605_v10, %v604_v9 }
 0x1a1   : > { %4830 = vrot.lane.b32.xlu1 %v4829_v2, %s5459_s14 }
 0x1a2   : > { %4850 = vrot.lane.b32.xlu0 %v5807_v33, %s5458_s13  ;;  %v1562_v33 = vsel %vm1560_vm3, %v1529_v15, %v4613_v51 }
 0x1a3   : > { %4585 = vrot.lane.b32.xlu2 %v6011_v55, %s5459_s14 }
 0x1a5   : > { %v6167_v57 = vpop.permute.xlu2 %4530 }
 0x1a7   : > { %1840 = vmatmul.f32.gmra.mxu0 %v1562_v33 }
 0x1a9   : > { %4845 = vrot.lane.b32.xlu1 %v4844_v45, %s5459_s14 }
 0x1aa   : > { %4865 = vrot.lane.b32.xlu0 %v5866_v17, %s5458_s13  ;;  %v691_v17 = vld [vmem:[#allocation2 + $0x181] sm:$0xff] }
 0x1ab   : > { %4590 = vrot.lane.b32.xlu2 %v5838_v61, %s5459_s14 }
 0x1ad   : > { %v6179_v55 = vpop.permute.xlu2 %4535 }
 0x1b1   : > { %4860 = vrot.lane.b32.xlu1 %v5845_v63, %s5458_s13 }
 0x1b2   : > { %4880 = vrot.lane.b32.xlu0 %v4579_v5, %s5458_s13 }
 0x1b3   : > { %4595 = vrot.lane.b32.xlu2 %v5923_v41, %s5459_s14 }
 0x1b5   : > { %v6186_v60 = vpop.permute.xlu2 %4540 }
 0x1b9   : > { %4875 = vrot.lane.b32.xlu1 %v6091_v26, %s5458_s13 }
 0x1ba   : > { %4895 = vrot.lane.b32.xlu0 %v5858_v8, %s5458_s13 }
 0x1bb   : > { %4605 = vrot.lane.b32.xlu2 %v6033_v7, %s5459_s14  ;;  %v692_v7 = vld [vmem:[#allocation2 + $0x189] sm:$0xff] }
 0x1bc   : > { %v4919_v26 = vpack.i.bf16 %v692_v7, %v691_v17  ;;  %v6245_v17 = vpop.permute.xlu0 %4640 }
 0x1bd   : > { %v6194_v61 = vpop.permute.xlu2 %4545 }
 0x1c1   : > { %4890 = vrot.lane.b32.xlu1 %v5843_v62, %s5458_s13 }
 0x1c2   : > { %4910 = vrot.lane.b32.xlu0 %v6044_v13, %s5458_s13  ;;  %v6215_v13 = vpop.permute.xlu1 %4620 }
 0x1c3   : > { %4615 = vrot.lane.b32.xlu2 %v6089_v25, %s5458_s13  ;;  %v694_v25 = vld [vmem:[#allocation2 + $0x1a1] sm:$0xff] }
 0x1c5   : > { %v6202_v63 = vpop.permute.xlu2 %4550 }
 0x1c9   : > { %4905 = vrot.lane.b32.xlu1 %v5984_v47, %s5458_s13  ;;  %v693_v47 = vld [vmem:[#allocation2 + $0x199] sm:$0xff] }
 0x1ca   : > { %v6222_v0 = vpop.permute.xlu1 %4635 }
 0x1cb   : > { %4630 = vrot.lane.b32.xlu2 %v6101_v43, %s5458_s13  ;;  %v4924_v43 = vpack.i.bf16 %v694_v25, %v693_v47  ;;  %v1719_v25 = vld [vmem:[%s7905_s1 + $0xf0] sm:$0xff] }
 0x1cc   : > { %1935 = vmatpush.msrb.mxu1 %v1719_v25  ;;  %v6289_v25 = vld [vmem:[#allocation2 + $0x68] sm:$0xff] }
 0x1cd   : > { %v6208_v8 = vpop.permute.xlu2 %4555  ;;  %4925 = vrot.lane.b32.xlu0 %v4924_v43, %s5458_s13 }
 0x1d1   : > { %4920 = vrot.lane.b32.xlu1 %v4919_v26, %s5458_s13 }
 0x1d2   : > { %v4651_v49 = vpop.permute.xlu1 %4650 }
 0x1d3   : > { %4645 = vrot.lane.b32.xlu2 %v6118_v53, %s5458_s13  ;;  %v598_v53 = vld [vmem:[#allocation2 + $0x1a] sm:$0xff]  ;;  %v4652_v45 = vunpack.i.l.bf16 %v4651_v49 }
 0x1d4   : > { %v4689_v1 = vpack.i.bf16 %v599_v46, %v598_v53 }
 0x1d5   : > { %v6213_v62 = vpop.permute.xlu2 %4560 }
 0x1da   : > { %v6233_v59 = vpop.permute.xlu1 %4665 }
 0x1db   : > { %4660 = vrot.lane.b32.xlu2 %v6138_v32, %s5458_s13 }
 0x1dd   : > { %v6219_v50 = vpop.permute.xlu2 %4565 }
 0x1e2   : > { %v6241_v28 = vpop.permute.xlu1 %4680 }
 0x1e3   : > { %4675 = vrot.lane.b32.xlu2 %v4829_v2, %s5458_s13  ;;  %v610_v2 = vld [vmem:[#allocation2 + $0xaa] sm:$0xff] }
 0x1e4   : > { %v4719_v51 = vpack.i.bf16 %v611_v18, %v610_v2  ;;  %v456_v18 = vld [vmem:[#allocation2 + $0xd8] sm:$0xff] }
 0x1e5   : > { %v6225_v5 = vpop.permute.xlu2 %4570 }
 0x1ea   : > { %v6259_v9 = vpop.permute.xlu1 %4695 }
 0x1eb   : > { %4690 = vrot.lane.b32.xlu2 %v4689_v1, %s5457_s18  ;;  %v4653_v1 = vunpack.i.h.bf16 %v4651_v49 }
 0x1ed   : > { %v6228_v32 = vpop.permute.xlu2 %4575 }
 0x1f3   : > { %4705 = vrot.lane.b32.xlu2 %v4704_v14, %s5457_s18  ;;  %v1718_v14 = vld [vmem:[%s7905_s1 + $0xe8] sm:$0xff] }
 0x1f4   : > { %1936 = vmatpush.msrb.mxu1 %v1718_v14  ;;  %v440_v14 = vld [vmem:[#allocation2 + $0x18] sm:$0xff] }
 0x1f5   : > { %v4581_v39 = vpop.permute.xlu2 %4580 }
 0x1f6   : > { %v4582_v27 = vunpack.i.l.bf16 %v4581_v39  ;;  %v4583_v26 = vunpack.i.h.bf16 %v4581_v39  ;;  %v4656_v39 = vpop.permute.xlu0 %4655 }
 0x1f7   : > { %v4657_v2 = vunpack.i.l.bf16 %v4656_v39 }
 0x1f8   : > { %v1511_v33 = vsel %vm349_vm0, %v6108_v3, %v4582_v27  ;;  %v1512_v3 = vsel %vm349_vm0, %v6110_v48, %v4583_v26  ;;  %v4527_v48 = vunpack.i.l.bf16 %v6147_v6  ;;  %v457_v26 = vld [vmem:[#allocation2 + $0xe0] sm:$0xff] }
 0x1fb   : > { %4720 = vrot.lane.b32.xlu2 %v4719_v51, %s5457_s18 }
 0x1fd   : > { %v4586_v37 = vpop.permute.xlu2 %4585 }
 0x1fe   : > { %v4587_v15 = vunpack.i.l.bf16 %v4586_v37  ;;  %v4588_v43 = vunpack.i.h.bf16 %v4586_v37  ;;  %v1717_v37 = vld [vmem:[%s7905_s1 + $0xe0] sm:$0xff] }
 0x1ff   : > { %1937 = vmatpush.msrb.mxu1 %v1717_v37  ;;  %v4458_v37 = vunpack.i.h.bf16 %v5940_v11 }
 0x200   : > { %v1544_v7 = vsel %vm1527_vm2, %v1511_v33, %v4587_v15  ;;  %v1545_v46 = vsel %vm1527_vm2, %v1512_v3, %v4588_v43  ;;  %v6277_v15 = vpop.permute.xlu1 %4710  ;;  %v4658_v33 = vunpack.i.h.bf16 %v4656_v39 }
 0x201   : > { %v1577_v47 = vsel %vm1560_vm3, %v1544_v7, %v4652_v45  ;;  %v1578_v10 = vsel %vm1560_vm3, %v1545_v46, %v4653_v1  ;;  %v4528_v45 = vunpack.i.h.bf16 %v6147_v6  ;;  %v1716_v6 = vld [vmem:[%s7905_s1 + $0xd8] sm:$0xff]  ;;  %v6301_v46 = vpop.permute.xlu0 %4670 }
 0x202   : > { %1885 = vmatmul.f32.vlgmr.msra.gmra.mxu1 %v1577_v47  ;;  %v6287_v47 = vld [vmem:[#allocation2 + $0x60] sm:$0xff] }
 0x203   : > { %4735 = vrot.lane.b32.xlu2 %v5956_v35, %s5457_s18  ;;  %v4482_v35 = vunpack.i.l.bf16 %v5977_v42  ;;  %v4779_v44 = vpack.i.bf16 %v6289_v25, %v6287_v47  ;;  %1938 = vmatpush.msrb.mxu1 %v1716_v6  ;;  %v648_v6 = vld [vmem:[#allocation2 + $0xf8] sm:$0xff] }
 0x205   : > { %v6254_v53 = vpop.permute.xlu2 %4590  ;;  %v1513_v23 = vsel %vm349_vm0, %v456_v18, %v4482_v35  ;;  %v1497_v35 = vsel %vm349_vm0, %v440_v14, %v4457_v20  ;;  %v4512_v14 = vunpack.i.l.bf16 %v6099_v29 }
 0x206   : > { %v1546_v51 = vsel %vm1527_vm2, %v1513_v23, %v4527_v48  ;;  %v6307_v48 = vld [vmem:[#allocation2 + $0xa8] sm:$0xff] }
 0x207   : > { %v1579_v27 = vsel %vm1560_vm3, %v1546_v51, %v4657_v2  ;;  %v6309_v2 = vld [vmem:[#allocation2 + $0xb0] sm:$0xff] }
 0x208   : > { %v6304_v1 = vpop.permute.xlu1 %4725  ;;  %v4794_v51 = vpack.i.bf16 %v6309_v2, %v6307_v48 }
 0x20a   : > { %1888 = vmatmul.f32.gmra.mxu1 %v1578_v10 }
 0x20b   : > { %4750 = vrot.lane.b32.xlu2 %v5923_v41, %s5457_s18  ;;  %v4483_v41 = vunpack.i.h.bf16 %v5977_v42 }
 0x20d   : > { %v6269_v49 = vpop.permute.xlu2 %4595  ;;  %v1514_v43 = vsel %vm349_vm0, %v457_v26, %v4483_v41  ;;  %v4508_v41 = vunpack.i.h.bf16 %v6075_v19 }
 0x20e   : > { %v1547_v42 = vsel %vm1527_vm2, %v1514_v43, %v4528_v45  ;;  %v441_v43 = vld [vmem:[#allocation2 + $0x20] sm:$0xff] }
 0x20f   : > { %v1580_v3 = vsel %vm1560_vm3, %v1547_v42, %v4658_v33  ;;  %v6321_v33 = vpop.permute.xlu0 %4685 }
 0x210   : > { %v6325_v42 = vpop.permute.xlu1 %4740 }
 0x211   : > { %7920 = vst [vmem:[#allocation7_spill] sm:$0xff] %v6325_v42 }
 0x212   : > { %1891 = vmatmul.f32.gmra.mxu1 %v1579_v27  ;;  %v1715_v27 = vld [vmem:[%s7905_s1 + $0xd0] sm:$0xff] }
 0x213   : > { %4765 = vrot.lane.b32.xlu2 %v4764_v40, %s5457_s18  ;;  %v4507_v40 = vunpack.i.l.bf16 %v6075_v19  ;;  %1939 = vmatpush.msrb.mxu1 %v1715_v27 }
 0x215   : > { %v6285_v7 = vpop.permute.xlu2 %4605  ;;  %v1530_v18 = vsel %vm1527_vm2, %v1497_v35, %v4507_v40  ;;  %v1714_v40 = vld [vmem:[%s7905_s1 + $0xc8] sm:$0xff] }
 0x216   : > { %1940 = vmatpush.msrb.mxu1 %v1714_v40  ;;  %v4623_v40 = vunpack.i.h.bf16 %v6215_v13 }
 0x217   : > { %v6345_v27 = vpop.permute.xlu0 %4700 }
 0x21a   : > { %1894 = vmatmul.f32.gmra.mxu1 %v1580_v3  ;;  %v1498_v3 = vsel %vm349_vm0, %v441_v43, %v4458_v37 }
 0x21b   : > { %4780 = vrot.lane.b32.xlu2 %v4779_v44, %s5459_s14  ;;  %v647_v44 = vld [vmem:[#allocation2 + $0xf0] sm:$0xff]  ;;  %v1531_v20 = vsel %vm1527_vm2, %v1498_v3, %v4508_v41  ;;  %v6348_v41 = vpop.permute.xlu1 %4755  ;;  %v4463_v3 = vunpack.i.h.bf16 %v5951_v21 }
 0x21c   : > { %v4809_v19 = vpack.i.bf16 %v648_v6, %v647_v44  ;;  %7921 = vst [vmem:[#allocation8_spill] sm:$0xff] %v6348_v41 }
 0x21d   : > { %v4616_v10 = vpop.permute.xlu2 %4615 }
 0x21e   : > { %v4617_v39 = vunpack.i.l.bf16 %v4616_v10  ;;  %v4618_v45 = vunpack.i.h.bf16 %v4616_v10  ;;  %v4462_v10 = vunpack.i.l.bf16 %v5951_v21  ;;  %v660_v21 = vld [vmem:[#allocation2 + $0x188] sm:$0xff] }
 0x21f   : > { %v6371_v42 = vpop.permute.xlu0 %4715 }
 0x220   : > { %v1563_v23 = vsel %vm1560_vm3, %v1530_v18, %v4617_v39  ;;  %v1564_v11 = vsel %vm1560_vm3, %v1531_v20, %v4618_v45  ;;  %v4622_v39 = vunpack.i.l.bf16 %v6215_v13  ;;  %v1499_v18 = vsel %vm349_vm0, %v6085_v24, %v4462_v10  ;;  %v1713_v24 = vld [vmem:[%s7905_s1 + $0xc0] sm:$0xff] }
 0x221   : > { %1843 = vmatmul.f32.gmra.mxu0 %v1563_v23  ;;  %v6341_v23 = vld [vmem:[#allocation2 + $0x138] sm:$0xff]  ;;  %v1532_v37 = vsel %vm1527_vm2, %v1499_v18, %v4512_v14  ;;  %v4487_v20 = vunpack.i.l.bf16 %v5995_v30  ;;  %1941 = vmatpush.msrb.mxu1 %v1713_v24  ;;  %v4517_v13 = vunpack.i.l.bf16 %v6114_v34 }
 0x222   : > { %v1565_v45 = vsel %vm1560_vm3, %v1532_v37, %v4622_v39  ;;  %v1500_v39 = vsel %vm349_vm0, %v6077_v22, %v4463_v3  ;;  %v659_v37 = vld [vmem:[#allocation2 + $0x180] sm:$0xff]  ;;  %v4488_v3 = vunpack.i.h.bf16 %v5995_v30  ;;  %v6387_v30 = vld [vmem:[#allocation2 + $0x51] sm:$0xff] }
 0x223   : > { %4795 = vrot.lane.b32.xlu2 %v4794_v51, %s5459_s14  ;;  %v6343_v51 = vld [vmem:[#allocation2 + $0x140] sm:$0xff]  ;;  %v1515_v18 = vsel %vm349_vm0, %v647_v44, %v4487_v20  ;;  %v4839_v22 = vpack.i.bf16 %v660_v21, %v659_v37  ;;  %v1712_v44 = vld [vmem:[%s7905_s1 + $0xb8] sm:$0xff]  ;;  %v6377_v20 = vpop.permute.xlu1 %4770 }
 0x224   : > { %v4824_v43 = vpack.i.bf16 %v6343_v51, %v6341_v23  ;;  %1942 = vmatpush.msrb.mxu1 %v1712_v44  ;;  %v1516_v37 = vsel %vm349_vm0, %v648_v6, %v4488_v3  ;;  %v1711_v6 = vld [vmem:[%s7905_s1 + $0xb0] sm:$0xff]  ;;  %v4667_v3 = vunpack.i.l.bf16 %v6233_v59 }
 0x225   : > { %v6323_v26 = vpop.permute.xlu2 %4630  ;;  %v445_v44 = vld [vmem:[#allocation2 + $0x50] sm:$0xff] }
 0x226   : > { %1943 = vmatpush.msrb.mxu1 %v1711_v6  ;;  %v4538_v6 = vunpack.i.h.bf16 %v6179_v55 }
 0x229   : > { %1846 = vmatmul.f32.gmra.mxu0 %v1564_v11  ;;  %v4513_v11 = vunpack.i.h.bf16 %v6099_v29  ;;  %v4467_v29 = vunpack.i.l.bf16 %v5965_v38 }
 0x22b   : > { %4810 = vrot.lane.b32.xlu2 %v4809_v19, %s5459_s14  ;;  %v4532_v19 = vunpack.i.l.bf16 %v6167_v57 }
 0x22d   : > { %v6337_v35 = vpop.permute.xlu2 %4645  ;;  %v1548_v24 = vsel %vm1527_vm2, %v1515_v18, %v4532_v19  ;;  %v444_v19 = vld [vmem:[#allocation2 + $0x48] sm:$0xff] }
 0x231   : > { %1849 = vmatmul.f32.gmra.mxu0 %v1565_v45  ;;  %v1533_v45 = vsel %vm1527_vm2, %v1500_v39, %v4513_v11  ;;  %v4533_v11 = vunpack.i.h.bf16 %v6167_v57  ;;  %v4468_v57 = vunpack.i.h.bf16 %v5965_v38  ;;  %v4537_v38 = vunpack.i.l.bf16 %v6179_v55  ;;  %v6445_v55 = vld [vmem:[#allocation2 + $0xe1] sm:$0xff] }
 0x232   : > { %v1566_v41 = vsel %vm1560_vm3, %v1533_v45, %v4623_v40  ;;  %v4627_v40 = vunpack.i.l.bf16 %v6238_v31 }
 0x233   : > { %4825 = vrot.lane.b32.xlu2 %v4824_v43, %s5459_s14  ;;  %v1549_v21 = vsel %vm1527_vm2, %v1516_v37, %v4533_v11  ;;  %v6408_v11 = vpop.permute.xlu1 %4785  ;;  %v6418_v37 = vld [vmem:[#allocation2 + $0x99] sm:$0xff] }
 0x235   : > { %v4661_v10 = vpop.permute.xlu2 %4660 }
 0x236   : > { %v4662_v14 = vunpack.i.l.bf16 %v4661_v10 }
 0x238   : > { %v1581_v43 = vsel %vm1560_vm3, %v1548_v24, %v4662_v14  ;;  %v4663_v14 = vunpack.i.h.bf16 %v4661_v10  ;;  %v4518_v10 = vunpack.i.h.bf16 %v6114_v34  ;;  %v4628_v34 = vunpack.i.h.bf16 %v6238_v31 }
 0x239   : > { %1852 = vmatmul.f32.gmra.mxu0 %v1566_v41  ;;  %1897 = vmatmul.f32.gmra.mxu1 %v1581_v43  ;;  %v1501_v41 = vsel %vm349_vm0, %v444_v19, %v4467_v29  ;;  %v6393_v43 = vld [vmem:[#allocation2 + $0x49] sm:$0xff]  ;;  %v1502_v19 = vsel %vm349_vm0, %v445_v44, %v4468_v57 }
 0x23a   : > { %v1534_v18 = vsel %vm1527_vm2, %v1501_v41, %v4517_v13  ;;  %v1582_v24 = vsel %vm1560_vm3, %v1549_v21, %v4663_v14  ;;  %v4854_v29 = vpack.i.bf16 %v6387_v30, %v6393_v43  ;;  %v4492_v13 = vunpack.i.l.bf16 %v6009_v52 }
 0x23b   : > { %4840 = vrot.lane.b32.xlu2 %v4839_v22, %s5459_s14  ;;  %v1567_v45 = vsel %vm1560_vm3, %v1534_v18, %v4627_v40  ;;  %v6403_v22 = vpop.permute.xlu0 %4730  ;;  %v1535_v14 = vsel %vm1527_vm2, %v1502_v19, %v4518_v10  ;;  %v6416_v18 = vld [vmem:[#allocation2 + $0x91] sm:$0xff]  ;;  %v4472_v10 = vunpack.i.l.bf16 %v6230_v12 }
 0x23c   : > { %v1517_v41 = vsel %vm349_vm0, %v6132_v58, %v4492_v13  ;;  %v1568_v31 = vsel %vm1560_vm3, %v1535_v14, %v4628_v34  ;;  %v4869_v57 = vpack.i.bf16 %v6418_v37, %v6416_v18  ;;  %v4493_v58 = vunpack.i.h.bf16 %v6009_v52  ;;  %v6443_v14 = vld [vmem:[#allocation2 + $0xd9] sm:$0xff] }
 0x23d   : > { %v6383_v39 = vpop.permute.xlu2 %4675  ;;  %v1550_v21 = vsel %vm1527_vm2, %v1517_v41, %v4537_v38  ;;  %v4668_v13 = vunpack.i.h.bf16 %v6233_v59  ;;  %v4632_v38 = vunpack.i.l.bf16 %v6323_v26  ;;  %v1503_v52 = vsel %vm349_vm0, %v6287_v47, %v4472_v10  ;;  %v1709_v47 = vld [vmem:[%s7905_s1 + $0xa0] sm:$0xff]  ;;  %v6461_v10 = vld [vmem:[#allocation2 + $0x129] sm:$0xff] }
 0x23e   : > { %v1518_v19 = vsel %vm349_vm0, %v6134_v56, %v4493_v58  ;;  %v4884_v56 = vpack.i.bf16 %v6445_v55, %v6443_v14  ;;  %v6459_v58 = vld [vmem:[#allocation2 + $0x121] sm:$0xff]  ;;  %7924 = vst [vmem:[#allocation11_spill] sm:$0xff] %v6461_v10 }
 0x23f   : > { %v1551_v59 = vsel %vm1527_vm2, %v1518_v19, %v4538_v6  ;;  %7923 = vst [vmem:[#allocation10_spill] sm:$0xff] %v6459_v58  ;;  %v462_v6 = vld [vmem:[#allocation2 + $0x120] sm:$0xff] }
 0x241   : > { %1855 = vmatmul.f32.gmra.mxu0 %v1567_v45  ;;  %1900 = vmatmul.f32.gmra.mxu1 %v1582_v24  ;;  %v1583_v45 = vsel %vm1560_vm3, %v1550_v21, %v4667_v3  ;;  %v1710_v24 = vld [vmem:[%s7905_s1 + $0xa8] sm:$0xff]  ;;  %v4801_v3 = vpop.permute.xlu1 %4800  ;;  %v4497_v21 = vunpack.i.l.bf16 %v6031_v4 }
 0x242   : > { %1944 = vmatpush.msrb.mxu1 %v1710_v24  ;;  %v4473_v24 = vunpack.i.h.bf16 %v6230_v12  ;;  %v4899_v12 = vpack.i.bf16 %v6461_v10, %v6459_v58 }
 0x243   : > { %4855 = vrot.lane.b32.xlu2 %v4854_v29, %s5458_s13  ;;  %v4522_v29 = vunpack.i.l.bf16 %v6130_v54  ;;  %v6435_v44 = vpop.permute.xlu0 %4745 }
 0x244   : > { %7922 = vst [vmem:[#allocation9_spill] sm:$0xff] %v6435_v44  ;;  %1945 = vmatpush.msrb.mxu1 %v1709_v47  ;;  %v4802_v47 = vunpack.i.l.bf16 %v4801_v3 }
 0x245   : > { %v6411_v40 = vpop.permute.xlu2 %4690  ;;  %v1536_v41 = vsel %vm1527_vm2, %v1503_v52, %v4522_v29  ;;  %v4523_v29 = vunpack.i.h.bf16 %v6130_v54  ;;  %v4498_v52 = vunpack.i.h.bf16 %v6031_v4  ;;  %v1504_v54 = vsel %vm349_vm0, %v6289_v25, %v4473_v24 }
 0x246   : > { %v4547_v25 = vunpack.i.l.bf16 %v6194_v61  ;;  %v4593_v24 = vunpack.i.h.bf16 %v6254_v53 }
 0x247   : > { %v1537_v4 = vsel %vm1527_vm2, %v1504_v54, %v4523_v29 }
 0x249   : > { %1858 = vmatmul.f32.gmra.mxu0 %v1568_v31  ;;  %1903 = vmatmul.f32.gmra.mxu1 %v1583_v45  ;;  %v1569_v31 = vsel %vm1560_vm3, %v1536_v41, %v4632_v38  ;;  %v1584_v45 = vsel %vm1560_vm3, %v1551_v59, %v4668_v13  ;;  %v4633_v13 = vunpack.i.h.bf16 %v6323_v26  ;;  %v1519_v38 = vsel %vm349_vm0, %v462_v6, %v4497_v21  ;;  %v578_v6 = vld [vmem:[#allocation2 + $0xa9] sm:$0xff] }
 0x24a   : > { %v4672_v59 = vunpack.i.l.bf16 %v6301_v46  ;;  %v4803_v21 = vunpack.i.h.bf16 %v4801_v3  ;;  %v1708_v3 = vld [vmem:[%s7905_s1 + $0x98] sm:$0xff] }
 0x24b   : > { %4870 = vrot.lane.b32.xlu2 %v4869_v57, %s5458_s13  ;;  %v4592_v57 = vunpack.i.l.bf16 %v6254_v53  ;;  %v6475_v26 = vpop.permute.xlu0 %4760  ;;  %v1570_v10 = vsel %vm1560_vm3, %v1537_v4, %v4633_v13  ;;  %1946 = vmatpush.msrb.mxu1 %v1708_v3  ;;  %v689_v4 = vld [vmem:[#allocation2 + $0x169] sm:$0xff]  ;;  %v584_v3 = vld [vmem:[#allocation2 + $0xf1] sm:$0xff] }
 0x24c   : > { %7925 = vst [vmem:[#allocation12_spill] sm:$0xff] %v6475_v26  ;;  %v585_v26 = vld [vmem:[#allocation2 + $0xf9] sm:$0xff] }
 0x24d   : > { %v6437_v34 = vpop.permute.xlu2 %4705  ;;  %v1552_v41 = vsel %vm1527_vm2, %v1519_v38, %v4592_v57  ;;  %v579_v57 = vld [vmem:[#allocation2 + $0xb1] sm:$0xff]  ;;  %v4816_v38 = vpop.permute.xlu1 %4815 }
 0x24e   : > { %v1585_v58 = vsel %vm1560_vm3, %v1552_v41, %v4672_v59  ;;  %v448_v41 = vld [vmem:[#allocation2 + $0x78] sm:$0xff]  ;;  %v463_v59 = vld [vmem:[#allocation2 + $0x128] sm:$0xff] }
 0x251   : > { %1861 = vmatmul.f32.gmra.mxu0 %v1569_v31  ;;  %1906 = vmatmul.f32.gmra.mxu1 %v1584_v45 }
 0x253   : > { %4885 = vrot.lane.b32.xlu2 %v4884_v56, %s5458_s13  ;;  %v4477_v56 = vunpack.i.l.bf16 %v6112_v36 }
 0x255   : > { %v4721_v19 = vpop.permute.xlu2 %4720  ;;  %v1505_v53 = vsel %vm349_vm0, %v448_v41, %v4477_v56  ;;  %v6506_v41 = vpop.permute.xlu0 %4775 }
 0x256   : > { %v4723_v31 = vunpack.i.h.bf16 %v4721_v19  ;;  %v4722_v45 = vunpack.i.l.bf16 %v4721_v19 }
 0x258   : > { %v1605_v19 = vsel %vm349_vm0, %v578_v6, %v4722_v45  ;;  %v1606_v44 = vsel %vm349_vm0, %v579_v57, %v4723_v31  ;;  %v4637_v31 = vunpack.i.l.bf16 %v6222_v0  ;;  %v1538_v45 = vsel %vm1527_vm2, %v1505_v53, %v4547_v25  ;;  %v690_v6 = vld [vmem:[#allocation2 + $0x171] sm:$0xff] }
 0x259   : > { %1864 = vmatmul.f32.gmra.mxu0 %v1570_v10  ;;  %1909 = vmatmul.f32.gmra.mxu1 %v1585_v58  ;;  %v6488_v29 = vsel %vm1527_vm2, %v1605_v19, %v4802_v47  ;;  %v6491_v13 = vsel %vm1527_vm2, %v1606_v44, %v4803_v21  ;;  %v1520_v58 = vsel %vm349_vm0, %v463_v59, %v4498_v52  ;;  %v4673_v47 = vunpack.i.h.bf16 %v6301_v46 }
 0x25a   : > { %v1553_v54 = vsel %vm1527_vm2, %v1520_v58, %v4593_v24  ;;  %v4818_v57 = vunpack.i.h.bf16 %v4816_v38  ;;  %v4817_v19 = vunpack.i.l.bf16 %v4816_v38  ;;  %v1571_v56 = vsel %vm1560_vm3, %v1538_v45, %v4637_v31  ;;  %v449_v58 = vld [vmem:[#allocation2 + $0x80] sm:$0xff] }
 0x25b   : > { %4900 = vrot.lane.b32.xlu2 %v4899_v12, %s5458_s13  ;;  %v4478_v12 = vunpack.i.h.bf16 %v6112_v36  ;;  %v1586_v52 = vsel %vm1560_vm3, %v1553_v54, %v4673_v47  ;;  %v4548_v46 = vunpack.i.h.bf16 %v6194_v61  ;;  %v4914_v59 = vpack.i.bf16 %v690_v6, %v689_v4  ;;  %v1707_v36 = vld [vmem:[%s7905_s1 + $0x90] sm:$0xff] }
 0x25c   : > { %v4542_v53 = vunpack.i.l.bf16 %v6186_v60  ;;  %1947 = vmatpush.msrb.mxu1 %v1707_v36  ;;  %v4597_v61 = vunpack.i.l.bf16 %v6269_v49  ;;  %v4677_v45 = vunpack.i.l.bf16 %v6383_v39  ;;  %v4552_v6 = vunpack.i.l.bf16 %v6202_v63 }
 0x25d   : > { %v4736_v10 = vpop.permute.xlu2 %4735  ;;  %v1506_v54 = vsel %vm349_vm0, %v449_v58, %v4478_v12  ;;  %v1706_v12 = vld [vmem:[%s7905_s1 + $0x88] sm:$0xff] }
 0x25e   : > { %v4738_v44 = vunpack.i.h.bf16 %v4736_v10  ;;  %v4737_v21 = vunpack.i.l.bf16 %v4736_v10  ;;  %v4638_v10 = vunpack.i.h.bf16 %v6222_v0  ;;  %v4562_v0 = vunpack.i.l.bf16 %v6213_v62  ;;  %1948 = vmatpush.msrb.mxu1 %v1706_v12 }
 0x25f   : > { %v4563_v12 = vunpack.i.h.bf16 %v6213_v62  ;;  %v4682_v62 = vunpack.i.l.bf16 %v6241_v28 }
 0x260   : > { %v1611_v25 = vsel %vm349_vm0, %v584_v3, %v4737_v21  ;;  %v1612_v24 = vsel %vm349_vm0, %v585_v26, %v4738_v44  ;;  %v6518_v26 = vpop.permute.xlu1 %4830  ;;  %v1539_v44 = vsel %vm1527_vm2, %v1506_v54, %v4548_v46  ;;  %v1521_v21 = vsel %vm349_vm0, %v6341_v23, %v4542_v53  ;;  %v6539_v23 = vpop.permute.xlu0 %4790 }
 0x261   : > { %1867 = vmatmul.f32.gmra.mxu0 %v1571_v56  ;;  %1912 = vmatmul.f32.gmra.mxu1 %v1586_v52  ;;  %v6512_v38 = vsel %vm1527_vm2, %v1611_v25, %v4817_v19  ;;  %v6515_v31 = vsel %vm1527_vm2, %v1612_v24, %v4818_v57  ;;  %v1554_v4 = vsel %vm1527_vm2, %v1521_v21, %v4597_v61  ;;  %v4543_v3 = vunpack.i.h.bf16 %v6186_v60  ;;  %v450_v52 = vld [vmem:[#allocation2 + $0x90] sm:$0xff]  ;;  %v596_v21 = vld [vmem:[#allocation2 + $0x181] sm:$0xff] }
 0x262   : > { %v1572_v57 = vsel %vm1560_vm3, %v1539_v44, %v4638_v10  ;;  %v1587_v19 = vsel %vm1560_vm3, %v1554_v4, %v4677_v45  ;;  %v4598_v56 = vunpack.i.h.bf16 %v6269_v49  ;;  %v4642_v25 = vunpack.i.l.bf16 %v6245_v17 }
 0x263   : > { %4915 = vrot.lane.b32.xlu2 %v4914_v59, %s5458_s13  ;;  %v4678_v46 = vunpack.i.h.bf16 %v6383_v39  ;;  %v1507_v59 = vsel %vm349_vm0, %v450_v52, %v4552_v6  ;;  %v4557_v60 = vunpack.i.l.bf16 %v6208_v8  ;;  %v1522_v49 = vsel %vm349_vm0, %v6343_v51, %v4543_v3  ;;  %v597_v39 = vld [vmem:[#allocation2 + $0x189] sm:$0xff] }
 0x264   : > { %v1540_v58 = vsel %vm1527_vm2, %v1507_v59, %v4562_v0  ;;  %v4553_v54 = vunpack.i.h.bf16 %v6202_v63  ;;  %v1555_v44 = vsel %vm1527_vm2, %v1522_v49, %v4598_v56  ;;  %v4602_v0 = vunpack.i.l.bf16 %v6128_v16  ;;  %v466_v51 = vld [vmem:[#allocation2 + $0x150] sm:$0xff]  ;;  %v1705_v63 = vld [vmem:[%s7905_s1 + $0x80] sm:$0xff] }
 0x265   : > { %v6525_v47 = vpop.permute.xlu2 %4750  ;;  %v1573_v4 = vsel %vm1560_vm3, %v1540_v58, %v4642_v25  ;;  %v1588_v6 = vsel %vm1560_vm3, %v1555_v44, %v4678_v46  ;;  %v1523_v52 = vsel %vm349_vm0, %v466_v51, %v4557_v60  ;;  %1949 = vmatpush.msrb.mxu1 %v1705_v63  ;;  %v451_v25 = vld [vmem:[#allocation2 + $0x98] sm:$0xff]  ;;  %v4567_v49 = vunpack.i.l.bf16 %v6219_v50 }
 0x266   : > { %v1508_v46 = vsel %vm349_vm0, %v451_v25, %v4553_v54  ;;  %v1556_v58 = vsel %vm1527_vm2, %v1523_v52, %v4602_v0  ;;  %v4577_v44 = vunpack.i.l.bf16 %v6228_v32  ;;  %v4568_v51 = vunpack.i.h.bf16 %v6219_v50  ;;  %v468_v52 = vld [vmem:[#allocation2 + $0x168] sm:$0xff] }
 0x267   : > { %v4578_v63 = vunpack.i.h.bf16 %v6228_v32  ;;  %v4648_v25 = vunpack.i.h.bf16 %v6337_v35  ;;  %v4573_v50 = vunpack.i.h.bf16 %v6225_v5 }
 0x268   : > { %v4846_v24 = vpop.permute.xlu1 %4845  ;;  %v6570_v59 = vpop.permute.xlu0 %4805 }
 0x269   : > { %1870 = vmatmul.f32.gmra.mxu0 %v1572_v57  ;;  %1915 = vmatmul.f32.gmra.mxu1 %v1587_v19  ;;  %v4848_v36 = vunpack.i.h.bf16 %v4846_v24  ;;  %v4847_v53 = vunpack.i.l.bf16 %v4846_v24  ;;  %v4643_v24 = vunpack.i.h.bf16 %v6245_v17  ;;  %v4603_v17 = vunpack.i.h.bf16 %v6128_v16 }
 0x26a   : > { %v1509_v16 = vsel %vm349_vm0, %v6307_v48, %v4567_v49  ;;  %v4687_v48 = vunpack.i.l.bf16 %v6321_v33 }
 0x26d   : > { %v4766_v61 = vpop.permute.xlu2 %4765 }
 0x26e   : > { %v4768_v10 = vunpack.i.h.bf16 %v4766_v61  ;;  %v4767_v45 = vunpack.i.l.bf16 %v4766_v61 }
 0x270   : > { %v1623_v57 = vsel %vm349_vm0, %v596_v21, %v4767_v45  ;;  %v1624_v19 = vsel %vm349_vm0, %v597_v39, %v4768_v10  ;;  %v1589_v10 = vsel %vm1560_vm3, %v1556_v58, %v4682_v62  ;;  %v467_v45 = vld [vmem:[#allocation2 + $0x158] sm:$0xff]  ;;  %v4683_v21 = vunpack.i.h.bf16 %v6241_v28 }
 0x271   : > { %1873 = vmatmul.f32.gmra.mxu0 %v1573_v4  ;;  %1918 = vmatmul.f32.gmra.mxu1 %v1588_v6  ;;  %v6561_v3 = vsel %vm1527_vm2, %v1623_v57, %v4847_v53  ;;  %v6564_v56 = vsel %vm1527_vm2, %v1624_v19, %v4848_v36  ;;  %v1541_v53 = vsel %vm1527_vm2, %v1508_v46, %v4563_v12  ;;  %v4558_v36 = vunpack.i.h.bf16 %v6208_v8  ;;  %v6590_v6 = vpop.permute.xlu0 %4820 }
 0x272   : > { %v1574_v60 = vsel %vm1560_vm3, %v1541_v53, %v4643_v24  ;;  %v4647_v39 = vunpack.i.l.bf16 %v6337_v35  ;;  %v1542_v57 = vsel %vm1527_vm2, %v1509_v16, %v4577_v44  ;;  %v4572_v19 = vunpack.i.l.bf16 %v6225_v5 }
 0x273   : > { %v1524_v54 = vsel %vm349_vm0, %v467_v45, %v4558_v36  ;;  %v4607_v28 = vunpack.i.l.bf16 %v6285_v7  ;;  %v1510_v53 = vsel %vm349_vm0, %v6309_v2, %v4568_v51  ;;  %v4608_v35 = vunpack.i.h.bf16 %v6285_v7 }
 0x274   : > { %v1557_v4 = vsel %vm1527_vm2, %v1524_v54, %v4603_v17  ;;  %v1575_v0 = vsel %vm1560_vm3, %v1542_v57, %v4647_v39  ;;  %v1525_v24 = vsel %vm349_vm0, %v468_v52, %v4572_v19  ;;  %v1543_v58 = vsel %vm1527_vm2, %v1510_v53, %v4578_v63 }
 0x275   : > { %v6572_v61 = vpop.permute.xlu2 %4780  ;;  %v1590_v12 = vsel %vm1560_vm3, %v1557_v4, %v4683_v21  ;;  %v1558_v46 = vsel %vm1527_vm2, %v1525_v24, %v4607_v28  ;;  %v1576_v32 = vsel %vm1560_vm3, %v1543_v58, %v4648_v25  ;;  %v4688_v17 = vunpack.i.h.bf16 %v6321_v33  ;;  %v566_v21 = vld [vmem:[#allocation2 + $0x19] sm:$0xff] }
 0x276   : > { %v1591_v36 = vsel %vm1560_vm3, %v1558_v46, %v4687_v48  ;;  %v4692_v5 = vunpack.i.l.bf16 %v6411_v40  ;;  %v4772_v39 = vunpack.i.l.bf16 %v6377_v20  ;;  %v4693_v57 = vunpack.i.h.bf16 %v6411_v40 }
 0x277   : > { %v4773_v63 = vunpack.i.h.bf16 %v6377_v20  ;;  %v4697_v40 = vunpack.i.l.bf16 %v6259_v9  ;;  %v4777_v46 = vunpack.i.l.bf16 %v6506_v41 }
 0x278   : > { %v1593_v7 = vsel %vm349_vm0, %v566_v21, %v4692_v5  ;;  %v4702_v21 = vunpack.i.l.bf16 %v6345_v27 }
 0x279   : > { %1876 = vmatmul.f32.gmra.mxu0 %v1574_v60  ;;  %1921 = vmatmul.f32.gmra.mxu1 %v1589_v10  ;;  %v6611_v60 = vpop.permute.xlu0 %4835  ;;  %v469_v10 = vld [vmem:[#allocation2 + $0x170] sm:$0xff]  ;;  %v1625_v33 = vsel %vm1527_vm2, %v1593_v7, %v4772_v39  ;;  %v4782_v39 = vunpack.i.l.bf16 %v6572_v61 }
 0x27a   : > { %v1526_v45 = vsel %vm349_vm0, %v469_v10, %v4573_v50  ;;  %v568_v50 = vld [vmem:[#allocation2 + $0x31] sm:$0xff]  ;;  %v4778_v10 = vunpack.i.h.bf16 %v6506_v41 }
 0x27b   : > { %v1559_v49 = vsel %vm1527_vm2, %v1526_v45, %v4608_v35  ;;  %v4698_v35 = vunpack.i.h.bf16 %v6259_v9  ;;  %v569_v45 = vld [vmem:[#allocation2 + $0x39] sm:$0xff]  ;;  %v1597_v9 = vsel %vm349_vm0, %v6393_v43, %v4702_v21  ;;  %v4707_v43 = vunpack.i.l.bf16 %v6437_v34 }
 0x27c   : > { %v1592_v44 = vsel %vm1560_vm3, %v1559_v49, %v4688_v17  ;;  %v1629_v41 = vsel %vm1527_vm2, %v1597_v9, %v4782_v39  ;;  %v4792_v21 = vunpack.i.l.bf16 %v6539_v23  ;;  %v574_v39 = vld [vmem:[#allocation2 + $0x79] sm:$0xff] }
 0x27d   : > { %v6585_v8 = vpop.permute.xlu2 %4795  ;;  %v1596_v5 = vsel %vm349_vm0, %v569_v45, %v4698_v35  ;;  %v4788_v35 = vunpack.i.h.bf16 %v6408_v11 }
 0x27f   : > { %v6620_v54 = vpop.f32.mrf.mxu1 }
 0x281   : > { %1879 = vmatmul.f32.gmra.mxu0 %v1575_v0  ;;  %1924 = vmatmul.f32.gmra.mxu1 %v1590_v12  ;;  %v4851_v4 = vpop.permute.xlu0 %4850  ;;  %v567_v12 = vld [vmem:[#allocation2 + $0x21] sm:$0xff] }
 0x282   : > { %v4852_v16 = vunpack.i.l.bf16 %v4851_v4  ;;  %v1594_v51 = vsel %vm349_vm0, %v567_v12, %v4693_v57  ;;  %v4853_v48 = vunpack.i.h.bf16 %v4851_v4  ;;  %v4861_v4 = vpop.permute.xlu1 %4860  ;;  %v4703_v57 = vunpack.i.h.bf16 %v6345_v27 }
 0x283   : > { %v1626_v52 = vsel %vm1527_vm2, %v1594_v51, %v4773_v63  ;;  %v4783_v12 = vunpack.i.h.bf16 %v6572_v61 }
 0x284   : > { %v1657_v0 = vsel %vm1560_vm3, %v1625_v33, %v4852_v16  ;;  %v1658_v25 = vsel %vm1560_vm3, %v1626_v52, %v4853_v48  ;;  %v4862_v33 = vunpack.i.l.bf16 %v4861_v4  ;;  %v1598_v51 = vsel %vm349_vm0, %v6387_v30, %v4703_v57 }
 0x285   : > { %v6602_v62 = vpop.permute.xlu2 %4810  ;;  %v1630_v63 = vsel %vm1527_vm2, %v1598_v51, %v4783_v12  ;;  %v4863_v52 = vunpack.i.h.bf16 %v4861_v4  ;;  %v4708_v30 = vunpack.i.h.bf16 %v6437_v34  ;;  %v4712_v34 = vunpack.i.l.bf16 %v6277_v15  ;;  %v575_v12 = vld [vmem:[#allocation2 + $0x81] sm:$0xff] }
 0x286   : > { %v4793_v57 = vunpack.i.h.bf16 %v6539_v23 }
 0x287   : > { %v6630_v28 = vpop.f32.mrf.mxu1  ;;  %v1601_v9 = vsel %vm349_vm0, %v574_v39, %v4712_v34 }
 0x289   : > { %1882 = vmatmul.f32.gmra.mxu0 %v1576_v32  ;;  %1927 = vmatmul.f32.gmra.mxu1 %v1591_v36  ;;  %v1595_v32 = vsel %vm349_vm0, %v568_v50, %v4697_v40  ;;  %v4787_v40 = vunpack.i.l.bf16 %v6408_v11  ;;  %v4866_v61 = vpop.permute.xlu0 %4865  ;;  %v1633_v11 = vsel %vm1527_vm2, %v1601_v9, %v4792_v21  ;;  %v4727_v9 = vunpack.i.l.bf16 %v6304_v1 }
 0x28a   : > { %v1627_v36 = vsel %vm1527_vm2, %v1595_v32, %v4777_v46 }
 0x28d   : > { %v6616_v2 = vpop.permute.xlu2 %4825 }
 0x28f   : > { %v6638_v53 = vpop.f32.mrf.mxu1 }
 0x291   : > { %1930 = vmatmul.f32.gmra.mxu1 %v1592_v44  ;;  %v1628_v44 = vsel %vm1527_vm2, %v1596_v5, %v4778_v10 }
 0x295   : > { %v6627_v19 = vpop.permute.xlu2 %4840 }
 0x297   : > { %v6645_v49 = vpop.f32.mrf.mxu1 }
 0x299   : > { %1950 = vmatmul.f32.vlgmr.msrb.gmra.mxu1 %v1657_v0  ;;  %v1661_v0 = vsel %vm1560_vm3, %v1629_v41, %v4862_v33  ;;  %v4713_v33 = vunpack.i.h.bf16 %v6277_v15 }
 0x29d   : > { %v4856_v24 = vpop.permute.xlu2 %4855 }
 0x29e   : > { %v4857_v58 = vunpack.i.l.bf16 %v4856_v24  ;;  %v4858_v17 = vunpack.i.h.bf16 %v4856_v24  ;;  %v572_v24 = vld [vmem:[#allocation2 + $0x61] sm:$0xff] }
 0x29f   : > { %v1599_v27 = vsel %vm349_vm0, %v572_v24, %v4707_v43  ;;  %v4717_v43 = vunpack.i.l.bf16 %v6371_v42  ;;  %v4797_v24 = vunpack.i.l.bf16 %v6585_v8 }
 0x2a0   : > { %v1659_v20 = vsel %vm1560_vm3, %v1627_v36, %v4857_v58  ;;  %v1660_v7 = vsel %vm1560_vm3, %v1628_v44, %v4858_v17  ;;  %v1631_v46 = vsel %vm1527_vm2, %v1599_v27, %v4787_v40  ;;  %v4867_v58 = vunpack.i.l.bf16 %v4866_v61  ;;  %v573_v36 = vld [vmem:[#allocation2 + $0x69] sm:$0xff]  ;;  %v4876_v27 = vpop.permute.xlu1 %4875 }
 0x2a1   : > { %1953 = vmatmul.f32.gmra.mxu1 %v1658_v25  ;;  %v1662_v25 = vsel %vm1560_vm3, %v1630_v63, %v4863_v52  ;;  %v4868_v17 = vunpack.i.h.bf16 %v4866_v61  ;;  %v1602_v63 = vsel %vm349_vm0, %v575_v12, %v4713_v33  ;;  %v1603_v15 = vsel %vm349_vm0, %v6416_v18, %v4717_v43 }
 0x2a2   : > { %v1663_v32 = vsel %vm1560_vm3, %v1631_v46, %v4867_v58  ;;  %v1634_v52 = vsel %vm1527_vm2, %v1602_v63, %v4793_v57  ;;  %v1635_v23 = vsel %vm1527_vm2, %v1603_v15, %v4797_v24  ;;  %v4877_v40 = vunpack.i.l.bf16 %v4876_v27  ;;  %v580_v57 = vld [vmem:[#allocation2 + $0xc1] sm:$0xff] }
 0x2a3   : > { %v4718_v46 = vunpack.i.h.bf16 %v6371_v42  ;;  %v4808_v43 = vunpack.i.h.bf16 %v6570_v59  ;;  %v2416_v24 = vld [vmem:[#allocation3 + $0xa] sm:$0xff] }
 0x2a4   : > { %v1667_v58 = vsel %vm1560_vm3, %v1635_v23, %v4877_v40 }
 0x2a5   : > { %v4871_v44 = vpop.permute.xlu2 %4870 }
 0x2a9   : > { %1956 = vmatmul.f32.gmra.mxu1 %v1659_v20  ;;  %v1600_v20 = vsel %vm349_vm0, %v573_v36, %v4708_v30  ;;  %v4798_v30 = vunpack.i.h.bf16 %v6585_v8 }
 0x2aa   : > { %v1632_v10 = vsel %vm1527_vm2, %v1600_v20, %v4788_v35  ;;  %v4878_v20 = vunpack.i.h.bf16 %v4876_v27  ;;  %v2383_v27 = vld [vmem:[#allocation3 + $0x1] sm:$0xff] }
 0x2ab   : > { %v1664_v5 = vsel %vm1560_vm3, %v1632_v10, %v4868_v17  ;;  %v4881_v10 = vpop.permute.xlu0 %4880  ;;  %v2064_v17 = vpop.f32.mrf.mxu2 }
 0x2ac   : > { %v4883_v34 = vunpack.i.h.bf16 %v4881_v10 }
 0x2ad   : > { %v4886_v39 = vpop.permute.xlu2 %4885 }
 0x2ae   : > { %v4887_v33 = vunpack.i.l.bf16 %v4886_v39  ;;  %v4888_v23 = vunpack.i.h.bf16 %v4886_v39 }
 0x2b1   : > { %1959 = vmatmul.f32.gmra.mxu1 %v1660_v7  ;;  %v4872_v7 = vunpack.i.l.bf16 %v4871_v44 }
 0x2b3   : > { %v1665_v41 = vsel %vm1560_vm3, %v1633_v11, %v4872_v7  ;;  %v6716_v21 = vpop.f32.mrf.mxu2  ;;  %v1670_v7 = vsel %vm1560_vm3, %v6491_v13, %v4883_v34  ;;  %v4807_v11 = vunpack.i.l.bf16 %v6570_v59  ;;  %v4728_v13 = vunpack.i.h.bf16 %v6304_v1 }
 0x2b4   : > { %v4732_v1 = vunpack.i.l.bf16 %v6403_v22 }
 0x2b6   : > { %v6655_v16 = vpop.f32.mrf.mxu1 }
 0x2b9   : > { %1962 = vmatmul.f32.gmra.mxu1 %v1661_v0  ;;  %v4873_v0 = vunpack.i.h.bf16 %v4871_v44  ;;  %v1838_v44 = vpop.f32.mrf.mxu0 }
 0x2be   : > { %v6664_v48 = vpop.f32.mrf.mxu1 }
 0x2c1   : > { %1965 = vmatmul.f32.gmra.mxu1 %v1662_v25  ;;  %v1666_v25 = vsel %vm1560_vm3, %v1634_v52, %v4873_v0  ;;  %v1607_v0 = vsel %vm349_vm0, %v580_v57, %v4727_v9  ;;  %v6727_v52 = vpop.f32.mrf.mxu2  ;;  %v4733_v57 = vunpack.i.h.bf16 %v6403_v22  ;;  %v6764_v22 = vld [vmem:[%s7906_s2 + $0x118] sm:$0xff] }
 0x2c2   : > { %v1639_v12 = vsel %vm1527_vm2, %v1607_v0, %v4807_v11  ;;  %3970 = vmatpush.msrb.mxu0 %v6764_v22 }
 0x2c3   : > { %v1671_v63 = vsel %vm1560_vm3, %v1639_v12, %v4887_v33  ;;  %v6748_v33 = vld [vmem:[%s7907_s3] ss:$0 sm:$0xff]  ;;  %v4813_v12 = vunpack.i.h.bf16 %v6602_v62 }
 0x2c6   : > { %v6671_v50 = vpop.f32.mrf.mxu1 }
 0x2c9   : > { %1968 = vmatmul.f32.gmra.mxu1 %v1663_v32  ;;  %v1604_v32 = vsel %vm349_vm0, %v6418_v37, %v4718_v46  ;;  %v2384_v46 = vld [vmem:[#allocation3 + $0x9] sm:$0xff] }
 0x2ca   : > { %v1636_v36 = vsel %vm1527_vm2, %v1604_v32, %v4798_v30  ;;  %v4929_v30 = vpack.i.bf16 %v2384_v46, %v2383_v27  ;;  %v6774_v27 = vld [vmem:[%s7906_s2 + $0x110] sm:$0xff] }
 0x2cb   : > { %v1668_v18 = vsel %vm1560_vm3, %v1636_v36, %v4878_v20  ;;  %3971 = vmatpush.msrb.mxu0 %v6774_v27 }
 0x2cc   : > { %4930 = vrot.lane.b32.xlu2 %v4929_v30, %s5457_s18 }
 0x2ce   : > { %v6677_v45 = vpop.f32.mrf.mxu1 }
 0x2d1   : > { %1971 = vmatmul.f32.gmra.mxu1 %v1664_v5  ;;  %v4882_v5 = vunpack.i.l.bf16 %v4881_v10  ;;  %v4891_v10 = vpop.permute.xlu1 %4890 }
 0x2d3   : > { %v1669_v8 = vsel %vm1560_vm3, %v6488_v29, %v4882_v5  ;;  %v6740_v5 = vpop.f32.mrf.mxu2 }
 0x2d6   : > { %v6682_v4 = vpop.f32.mrf.mxu1 }
 0x2d9   : > { %1974 = vmatmul.f32.gmra.mxu1 %v1665_v41  ;;  %v1841_v41 = vpop.f32.mrf.mxu0 }
 0x2de   : > { %v6689_v51 = vpop.f32.mrf.mxu1 }
 0x2e1   : > { %1977 = vmatmul.f32.gmra.mxu1 %v1666_v25  ;;  %v2415_v25 = vld [vmem:[#allocation3 + $0x2] sm:$0xff]  ;;  %v1844_v15 = vpop.f32.mrf.mxu0 }
 0x2e2   : > { %v4934_v40 = vpack.i.bf16 %v2416_v24, %v2415_v25  ;;  %v4893_v25 = vunpack.i.h.bf16 %v4891_v10 }
 0x2e4   : > { %4935 = vrot.lane.b32.xlu1 %v4934_v40, %s5459_s14 }
 0x2e6   : > { %v6699_v61 = vpop.f32.mrf.mxu1 }
 0x2e9   : > { %1980 = vmatmul.f32.gmra.mxu1 %v1667_v58  ;;  %v581_v58 = vld [vmem:[#allocation2 + $0xc9] sm:$0xff]  ;;  %v1847_v39 = vpop.f32.mrf.mxu0 }
 0x2ea   : > { %v1608_v36 = vsel %vm349_vm0, %v581_v58, %v4728_v13  ;;  %v1610_v13 = vsel %vm349_vm0, %v6445_v55, %v4733_v57  ;;  %v6781_v58 = vld [vmem:[%s7906_s2 + $0x108] sm:$0xff] }
 0x2eb   : > { %v1640_v20 = vsel %vm1527_vm2, %v1608_v36, %v4808_v43  ;;  %3972 = vmatpush.msrb.mxu0 %v6781_v58  ;;  %v4896_v36 = vpop.permute.xlu0 %4895 }
 0x2ec   : > { %v1672_v59 = vsel %vm1560_vm3, %v1640_v20, %v4888_v23 }
 0x2ee   : > { %v6707_v35 = vpop.f32.mrf.mxu1 }
 0x2f1   : > { %1983 = vmatmul.f32.gmra.mxu1 %v1668_v18  ;;  %v4812_v18 = vunpack.i.l.bf16 %v6602_v62  ;;  %v1642_v62 = vsel %vm1527_vm2, %v1610_v13, %v4813_v12  ;;  %v1850_v40 = vpop.f32.mrf.mxu0 }
 0x2f2   : > { %v1674_v46 = vsel %vm1560_vm3, %v1642_v62, %v4893_v25  ;;  %v4901_v25 = vpop.permute.xlu2 %4900 }
 0x2f6   : > { %v6710_v42 = vpop.f32.mrf.mxu1 }
 0x2f9   : > { %1986 = vmatmul.f32.gmra.mxu1 %v1669_v8  ;;  %v1609_v8 = vsel %vm349_vm0, %v6443_v14, %v4732_v1  ;;  %v6756_v14 = vld [vmem:[%s7908_s4] ss:$0 sm:$0xff] }
 0x2fa   : > { %v1641_v34 = vsel %vm1527_vm2, %v1609_v8, %v4812_v18 }
 0x2fe   : > { %v6714_v37 = vpop.f32.mrf.mxu1 }
 0x301   : > { %1989 = vmatmul.f32.gmra.mxu1 %v1670_v7  ;;  %v4892_v7 = vunpack.i.l.bf16 %v4891_v10 }
 0x303   : > { %v1673_v0 = vsel %vm1560_vm3, %v1641_v34, %v4892_v7 }
 0x306   : > { %v6722_v29 = vpop.f32.mrf.mxu1 }
 0x309   : > { %1992 = vmatmul.f32.gmra.mxu1 %v1671_v63 }
 0x30e   : > { %v6731_v32 = vpop.f32.mrf.mxu1 }
 0x311   : > { %1995 = vmatmul.f32.gmra.mxu1 %v1672_v59  ;;  %v4897_v59 = vunpack.i.l.bf16 %v4896_v36 }
 0x313   : > { %v1675_v34 = vsel %vm1560_vm3, %v6512_v38, %v4897_v59 }
 0x316   : > { %v1951_v9 = vpop.f32.mrf.mxu1 }
 0x317   : > { %v1952_v11 = vadd.f32 %v1951_v9, %v1838_v44  ;;  %v3631_v9 = vld [vmem:[%s7906_s2 + $0xf8] sm:$0xff] }
 0x318   : > { %3845 = vmatpush.msrb.mxu2 %v3631_v9 }
 0x319   : > { %v2065_v63 = vadd.f32 %v2064_v17, %v1952_v11  ;;  %1998 = vmatmul.f32.gmra.mxu1 %v1673_v0  ;;  %v6769_v17 = vpop.f32.mrf.mxu2  ;;  %v1853_v11 = vpop.f32.mrf.mxu0  ;;  %v4898_v0 = vunpack.i.h.bf16 %v4896_v36 }
 0x31b   : > { %v2164_v44 = vmul.f32 %v6748_v33, %v2065_v63  ;;  %v1676_v13 = vsel %vm1560_vm3, %v6515_v31, %v4898_v0  ;;  %v4822_v31 = vunpack.i.l.bf16 %v6590_v6 }
 0x31d   : > { %v2200_v43 = vadd.f32 %v6756_v14, %v2164_v44 }
 0x31e   : > { %v1954_v24 = vpop.f32.mrf.mxu1 }
 0x31f   : > { %v2232_v55 = vmax.f32 %v2200_v43, 0.0  ;;  %v1955_v23 = vadd.f32 %v1954_v24, %v1841_v41  ;;  %v6789_v41 = vld [vmem:[%s7906_s2 + $0x100] sm:$0xff] }
 0x320   : > { %3973 = vmatpush.msrb.mxu0 %v6789_v41 }
 0x321   : > { %2319 = vst.msk [vmem:[#allocation3 + $0x19] sm:$0xff] %vm349_vm0, %v2232_v55  ;;  %v2068_v30 = vadd.f32 %v6716_v21, %v1955_v23  ;;  %2001 = vmatmul.f32.gmra.mxu1 %v1674_v46  ;;  %v6794_v21 = vpop.f32.mrf.mxu2  ;;  %v3630_v46 = vld [vmem:[%s7906_s2 + $0xf0] sm:$0xff] }
 0x322   : > { %3846 = vmatpush.msrb.mxu2 %v3630_v46 }
 0x323   : > { %v2165_v20 = vmul.f32 %v6748_v33, %v2068_v30  ;;  %v7926_v30 = vld [vmem:[#allocation7_spill] sm:$0xff] }
 0x324   : > { %v4742_v36 = vunpack.i.l.bf16 %v7926_v30 }
 0x325   : > { %v2201_v1 = vadd.f32 %v6756_v14, %v2165_v20 }
 0x326   : > { %v1957_v18 = vpop.f32.mrf.mxu1 }
 0x327   : > { %v2233_v10 = vmax.f32 %v2201_v1, 0.0  ;;  %v1958_v8 = vadd.f32 %v1957_v18, %v1844_v15  ;;  %v1856_v1 = vpop.f32.mrf.mxu0  ;;  %v586_v18 = vld [vmem:[#allocation2 + $0x109] sm:$0xff] }
 0x328   : > { %v2385_v38 = vld [vmem:[#allocation3 + $0x19] sm:$0xff] }
 0x329   : > { %2320 = vst.msk [vmem:[#allocation3 + $0x21] sm:$0xff] %vm349_vm0, %v2233_v10  ;;  %v2071_v7 = vadd.f32 %v6727_v52, %v1958_v8  ;;  %2004 = vmatmul.f32.gmra.mxu1 %v1675_v34  ;;  %v1613_v8 = vsel %vm349_vm0, %v586_v18, %v4742_v36  ;;  %v2447_v0 = vld [vmem:[#allocation3 + $0x18] sm:$0xff] }
 0x32b   : > { %v2166_v57 = vmul.f32 %v6748_v33, %v2071_v7 }
 0x32d   : > { %v2202_v15 = vadd.f32 %v6756_v14, %v2166_v57  ;;  %v1645_v57 = vsel %vm1527_vm2, %v1613_v8, %v4822_v31 }
 0x32e   : > { %v1960_v12 = vpop.f32.mrf.mxu1 }
 0x32f   : > { %v2234_v63 = vmax.f32 %v2202_v15, 0.0  ;;  %v1961_v44 = vadd.f32 %v1960_v12, %v1847_v39  ;;  %v6812_v39 = vpop.f32.mrf.mxu2 }
 0x330   : > { %v2511_v52 = vld [vmem:[#allocation3 + $0x1a] sm:$0xff]  ;;  %v2512_v43 = vld [vmem:[#allocation3 + $0x22] sm:$0xff] }
 0x331   : > { %v2386_v62 = vld [vmem:[#allocation3 + $0x21] sm:$0xff]  ;;  %2321 = vst.msk [vmem:[#allocation3 + $0x31] sm:$0xff] %vm349_vm0, %v2234_v63  ;;  %v2074_v24 = vadd.f32 %v6740_v5, %v1961_v44  ;;  %2007 = vmatmul.f32.gmra.mxu1 %v1676_v13  ;;  %v4954_v55 = vpack.i.bf16 %v2512_v43, %v2511_v52  ;;  %v4902_v5 = vunpack.i.l.bf16 %v4901_v25  ;;  %v3629_v44 = vld [vmem:[%s7906_s2 + $0xe8] sm:$0xff]  ;;  %v4903_v43 = vunpack.i.h.bf16 %v4901_v25 }
 0x332   : > { %v4939_v23 = vpack.i.bf16 %v2386_v62, %v2385_v38  ;;  %v2448_v34 = vld [vmem:[#allocation3 + $0x20] sm:$0xff]  ;;  %v4743_v38 = vunpack.i.h.bf16 %v7926_v30  ;;  %3847 = vmatpush.msrb.mxu2 %v3629_v44 }
 0x333   : > { %v2167_v20 = vmul.f32 %v6748_v33, %v2074_v24  ;;  %4955 = vrot.lane.b32.xlu2 %v4954_v55, %s5457_s18  ;;  %4945 = vrot.lane.b32.xlu0 %v4954_v55, %s5459_s14  ;;  %v1677_v15 = vsel %vm1560_vm3, %v1645_v57, %v4902_v5  ;;  %v4949_v63 = vpack.i.bf16 %v2448_v34, %v2447_v0  ;;  %v587_v62 = vld [vmem:[#allocation2 + $0x111] sm:$0xff]  ;;  %v1859_v24 = vpop.f32.mrf.mxu0  ;;  %v4827_v5 = vunpack.i.l.bf16 %v6616_v2  ;;  %v4906_v57 = vpop.permute.xlu1 %4905 }
 0x334   : > { %4940 = vrot.lane.b32.xlu1 %v4939_v23, %s5457_s18  ;;  %v1614_v23 = vsel %vm349_vm0, %v587_v62, %v4743_v38  ;;  %v4907_v38 = vunpack.i.l.bf16 %v4906_v57 }
 0x335   : > { %v2203_v59 = vadd.f32 %v6756_v14, %v2167_v20 }
 0x336   : > { %v1963_v10 = vpop.f32.mrf.mxu1 }
 0x337   : > { %v2235_v7 = vmax.f32 %v2203_v59, 0.0  ;;  %v1964_v9 = vadd.f32 %v1963_v10, %v1850_v40  ;;  %v4823_v40 = vunpack.i.h.bf16 %v6590_v6  ;;  %v6833_v52 = vpop.f32.mrf.mxu2  ;;  %v7927_v6 = vld [vmem:[#allocation9_spill] sm:$0xff] }
 0x338   : > { %v2387_v31 = vld [vmem:[#allocation3 + $0x31] sm:$0xff]  ;;  %v4747_v20 = vunpack.i.l.bf16 %v7927_v6  ;;  %v4748_v62 = vunpack.i.h.bf16 %v7927_v6 }
 0x339   : > { %2322 = vst.msk [vmem:[#allocation3 + $0x39] sm:$0xff] %vm349_vm0, %v2235_v7  ;;  %v2077_v12 = vadd.f32 %v6769_v17, %v1964_v9  ;;  %2010 = vmatmul.f32.gmra.mxu1 %v1677_v15  ;;  %v1646_v30 = vsel %vm1527_vm2, %v1614_v23, %v4823_v40  ;;  %v3615_v7 = vld [vmem:[%s7906_s2 + $0x78] sm:$0xff]  ;;  %v3628_v9 = vld [vmem:[%s7906_s2 + $0xe0] sm:$0xff] }
 0x33a   : > { %v1678_v59 = vsel %vm1560_vm3, %v1646_v30, %v4903_v43  ;;  %3732 = vmatpush.msrb.mxu3 %v3615_v7  ;;  %3848 = vmatpush.msrb.mxu2 %v3628_v9 }
 0x33b   : > { %v2168_v13 = vmul.f32 %v6748_v33, %v2077_v12  ;;  %4950 = vrot.lane.b32.xlu0 %v4949_v63, %s5458_s13 }
 0x33d   : > { %v2204_v17 = vadd.f32 %v6756_v14, %v2168_v13 }
 0x33e   : > { %v1966_v55 = vpop.f32.mrf.mxu1 }
 0x33f   : > { %v2236_v46 = vmax.f32 %v2204_v17, 0.0  ;;  %v1967_v36 = vadd.f32 %v1966_v55, %v1853_v11  ;;  %v6858_v44 = vpop.f32.mrf.mxu2  ;;  %v1862_v55 = vpop.f32.mrf.mxu0 }
 0x340   : > { %v2608_v18 = vld [vmem:[#allocation3 + $0x32] sm:$0xff]  ;;  %v2420_v25 = vld [vmem:[#allocation3 + $0x3a] sm:$0xff] }
 0x341   : > { %v2388_v10 = vld [vmem:[#allocation3 + $0x39] sm:$0xff]  ;;  %2323 = vst.msk [vmem:[#allocation3 + $0x49] sm:$0xff] %vm349_vm0, %v2236_v46  ;;  %v2080_v8 = vadd.f32 %v6794_v21, %v1967_v36  ;;  %2013 = vmatmul.f32.gmra.mxu1 %v1678_v59  ;;  %4340 = vmatmul.msk.f32.vlgmr.msrb.gmra.mxu0 %vm349_vm0, %v2608_v18  ;;  %v4964_v11 = vpack.i.bf16 %v2420_v25, %v2608_v18  ;;  %v7928_v21 = vld [vmem:[#allocation10_spill] sm:$0xff]  ;;  %v2449_v46 = vld [vmem:[#allocation3 + $0x30] sm:$0xff]  ;;  %v4828_v36 = vunpack.i.h.bf16 %v6616_v2  ;;  %v4908_v59 = vunpack.i.h.bf16 %v4906_v57 }
 0x342   : > { %v4959_v34 = vpack.i.bf16 %v2388_v10, %v2387_v31  ;;  %v1615_v0 = vsel %vm349_vm0, %v7928_v21, %v4747_v20  ;;  %v2450_v13 = vld [vmem:[#allocation3 + $0x38] sm:$0xff]  ;;  %v7929_v2 = vld [vmem:[#allocation11_spill] sm:$0xff]  ;;  %v4752_v18 = vunpack.i.l.bf16 %v6525_v47 }
 0x343   : > { %v2169_v15 = vmul.f32 %v6748_v33, %v2080_v8  ;;  %4965 = vrot.lane.b32.xlu2 %v4964_v11, %s5459_s14  ;;  %4975 = vrot.lane.b32.xlu1 %v4964_v11, %s5457_s18  ;;  %v1647_v63 = vsel %vm1527_vm2, %v1615_v0, %v4827_v5  ;;  %v4969_v31 = vpack.i.bf16 %v2450_v13, %v2449_v46  ;;  %v590_v57 = vld [vmem:[#allocation2 + $0x139] sm:$0xff] }
 0x344   : > { %4960 = vrot.lane.b32.xlu0 %v4959_v34, %s5457_s18  ;;  %v1679_v23 = vsel %vm1560_vm3, %v1647_v63, %v4907_v38  ;;  %v1616_v20 = vsel %vm349_vm0, %v7929_v2, %v4748_v62  ;;  %v3627_v0 = vld [vmem:[%s7906_s2 + $0xd8] sm:$0xff]  ;;  %v1617_v63 = vsel %vm349_vm0, %v590_v57, %v4752_v18  ;;  %v4911_v38 = vpop.permute.xlu0 %4910  ;;  %v4753_v62 = vunpack.i.h.bf16 %v6525_v47  ;;  %v3626_v47 = vld [vmem:[%s7906_s2 + $0xd0] sm:$0xff] }
 0x345   : > { %v2205_v12 = vadd.f32 %v6756_v14, %v2169_v15  ;;  %v1648_v5 = vsel %vm1527_vm2, %v1616_v20, %v4828_v36  ;;  %3849 = vmatpush.msrb.mxu2 %v3627_v0 }
 0x346   : > { %v1969_v40 = vpop.f32.mrf.mxu1  ;;  %v1680_v7 = vsel %vm1560_vm3, %v1648_v5, %v4908_v59  ;;  %v591_v59 = vld [vmem:[#allocation2 + $0x141] sm:$0xff] }
 0x347   : > { %v2237_v43 = vmax.f32 %v2205_v12, 0.0  ;;  %v1970_v17 = vadd.f32 %v1969_v40, %v1856_v1  ;;  %v3614_v1 = vld [vmem:[%s7906_s2 + $0x70] sm:$0xff]  ;;  %v6877_v11 = vpop.f32.mrf.mxu2  ;;  %v1865_v12 = vpop.f32.mrf.mxu0  ;;  %3850 = vmatpush.msrb.mxu2 %v3626_v47 }
 0x348   : > { %3733 = vmatpush.msrb.mxu3 %v3614_v1  ;;  %v2389_v2 = vld [vmem:[#allocation3 + $0x49] sm:$0xff] }
 0x349   : > { %2324 = vst.msk [vmem:[#allocation3 + $0x51] sm:$0xff] %vm349_vm0, %v2237_v43  ;;  %v2083_v30 = vadd.f32 %v6812_v39, %v1970_v17  ;;  %2016 = vmatmul.f32.gmra.mxu1 %v1679_v23  ;;  %4341 = vmatmul.msk.f32.gmra.mxu0 %vm349_vm0, %v2420_v25  ;;  %v4912_v17 = vunpack.i.l.bf16 %v4911_v38 }
 0x34b   : > { %v2170_v6 = vmul.f32 %v6748_v33, %v2083_v30  ;;  %4970 = vrot.lane.b32.xlu2 %v4969_v31, %s5458_s13  ;;  %4985 = vrot.lane.b32.xlu1 %v4959_v34, %s5458_s13 }
 0x34d   : > { %v2206_v39 = vadd.f32 %v6756_v14, %v2170_v6 }
 0x34e   : > { %v1972_v25 = vpop.f32.mrf.mxu1 }
 0x34f   : > { %v2238_v10 = vmax.f32 %v2206_v39, 0.0  ;;  %v1973_v8 = vadd.f32 %v1972_v25, %v1859_v24  ;;  %v3613_v24 = vld [vmem:[%s7906_s2 + $0x68] sm:$0xff]  ;;  %v2094_v18 = vpop.f32.mrf.mxu2  ;;  %v1618_v25 = vsel %vm349_vm0, %v591_v59, %v4753_v62 }
 0x350   : > { %v2610_v9 = vld [vmem:[#allocation3 + $0x4a] sm:$0xff]  ;;  %v2516_v15 = vld [vmem:[#allocation3 + $0x52] sm:$0xff]  ;;  %3734 = vmatpush.msrb.mxu3 %v3613_v24 }
 0x351   : > { %2325 = vst.msk [vmem:[#allocation3 + $0x61] sm:$0xff] %vm349_vm0, %v2238_v10  ;;  %v2086_v34 = vadd.f32 %v6833_v52, %v1973_v8  ;;  %2019 = vmatmul.f32.gmra.mxu1 %v1680_v7  ;;  %4342 = vmatmul.msk.f32.gmra.mxu0 %vm349_vm0, %v2610_v9  ;;  %v5004_v21 = vpack.i.bf16 %v2516_v15, %v2610_v9  ;;  %v4832_v52 = vunpack.i.l.bf16 %v6518_v26  ;;  %v2390_v46 = vld [vmem:[#allocation3 + $0x51] sm:$0xff]  ;;  %v1868_v8 = vpop.f32.mrf.mxu0 }
 0x352   : > { %v2547_v36 = vld [vmem:[#allocation3 + $0x50] sm:$0xff]  ;;  %v4989_v39 = vpack.i.bf16 %v2390_v46, %v2389_v2  ;;  %v7930_v62 = vld [vmem:[#allocation8_spill] sm:$0xff]  ;;  %v4837_v46 = vunpack.i.l.bf16 %v6611_v60 }
 0x353   : > { %v2171_v40 = vmul.f32 %v6748_v33, %v2086_v34  ;;  %4980 = vrot.lane.b32.xlu2 %v4969_v31, %s5459_s14  ;;  %5005 = vrot.lane.b32.xlu0 %v5004_v21, %s5457_s18  ;;  %v1649_v43 = vsel %vm1527_vm2, %v1617_v63, %v4832_v52  ;;  %v2546_v31 = vld [vmem:[#allocation3 + $0x48] sm:$0xff] }
 0x354   : > { %4995 = vrot.lane.b32.xlu1 %v5004_v21, %s5459_s14  ;;  %v1681_v6 = vsel %vm1560_vm3, %v1649_v43, %v4912_v17  ;;  %v5009_v5 = vpack.i.bf16 %v2547_v36, %v2546_v31 }
 0x355   : > { %v2207_v13 = vadd.f32 %v6756_v14, %v2171_v40  ;;  %v4916_v40 = vpop.permute.xlu2 %4915 }
 0x356   : > { %v1975_v23 = vpop.f32.mrf.mxu1 }
 0x357   : > { %v2239_v30 = vmax.f32 %v2207_v13, 0.0  ;;  %v1976_v1 = vadd.f32 %v1975_v23, %v1862_v55  ;;  %v3612_v55 = vld [vmem:[%s7906_s2 + $0x60] sm:$0xff]  ;;  %v4757_v23 = vunpack.i.l.bf16 %v7930_v62  ;;  %v2097_v36 = vpop.f32.mrf.mxu2 }
 0x358   : > { %3735 = vmatpush.msrb.mxu3 %v3612_v55  ;;  %v2391_v0 = vld [vmem:[#allocation3 + $0x61] sm:$0xff] }
 0x359   : > { %2326 = vst.msk [vmem:[#allocation3 + $0x69] sm:$0xff] %vm349_vm0, %v2239_v30  ;;  %v2089_v20 = vadd.f32 %v6858_v44, %v1976_v1  ;;  %2022 = vmatmul.f32.gmra.mxu1 %v1681_v6  ;;  %4343 = vmatmul.msk.f32.gmra.mxu0 %vm349_vm0, %v2516_v15  ;;  %v4833_v44 = vunpack.i.h.bf16 %v6518_v26  ;;  %v4913_v15 = vunpack.i.h.bf16 %v4911_v38  ;;  %v3625_v38 = vld [vmem:[%s7906_s2 + $0xc8] sm:$0xff]  ;;  %v4917_v30 = vunpack.i.l.bf16 %v4916_v40  ;;  %v592_v6 = vld [vmem:[#allocation2 + $0x151] sm:$0xff]  ;;  %v1871_v2 = vpop.f32.mrf.mxu0 }
 0x35a   : > { %3851 = vmatpush.msrb.mxu2 %v3625_v38  ;;  %v7931_v38 = vld [vmem:[#allocation12_spill] sm:$0xff] }
 0x35b   : > { %v2172_v10 = vmul.f32 %v6748_v33, %v2089_v20  ;;  %4990 = vrot.lane.b32.xlu2 %v4989_v39, %s5457_s18  ;;  %5010 = vrot.lane.b32.xlu0 %v5009_v5, %s5459_s14  ;;  %v1650_v9 = vsel %vm1527_vm2, %v1618_v25, %v4833_v44  ;;  %v1619_v20 = vsel %vm349_vm0, %v592_v6, %v4757_v23  ;;  %v725_v25 = vld [vmem:[#allocation2 + $0x19a] sm:$0xff]  ;;  %v2453_v44 = vld [vmem:[#allocation3 + $0x60] sm:$0xff] }
 0x35c   : > { %5000 = vrot.lane.b32.xlu1 %v5009_v5, %s5458_s13  ;;  %v1682_v26 = vsel %vm1560_vm3, %v1650_v9, %v4913_v15  ;;  %v1651_v55 = vsel %vm1527_vm2, %v1619_v20, %v4837_v46  ;;  %4338 = vmatmul.msk.f32.gmra.mxu3 %vm349_vm0, %v725_v25  ;;  %v3610_v9 = vld [vmem:[%s7906_s2 + $0x50] sm:$0xff]  ;;  %v4758_v15 = vunpack.i.h.bf16 %v7930_v62  ;;  %v4762_v62 = vunpack.i.l.bf16 %v7931_v38  ;;  %v3623_v6 = vld [vmem:[%s7906_s2 + $0xb8] sm:$0xff] }
 0x35d   : > { %v2208_v7 = vadd.f32 %v6756_v14, %v2172_v10  ;;  %v594_v20 = vld [vmem:[#allocation2 + $0x169] sm:$0xff] }
 0x35e   : > { %v1978_v34 = vpop.f32.mrf.mxu1 }
 0x35f   : > { %v2240_v21 = vmax.f32 %v2208_v7, 0.0  ;;  %v1979_v57 = vadd.f32 %v1978_v34, %v1865_v12  ;;  %v3611_v12 = vld [vmem:[%s7906_s2 + $0x58] sm:$0xff]  ;;  %v4838_v34 = vunpack.i.h.bf16 %v6611_v60 }
 0x360   : > { %v2612_v24 = vld [vmem:[#allocation3 + $0x62] sm:$0xff]  ;;  %v2424_v63 = vld [vmem:[#allocation3 + $0x6a] sm:$0xff]  ;;  %3736 = vmatpush.msrb.mxu3 %v3611_v12  ;;  %v726_v12 = vld [vmem:[#allocation2 + $0x1a2] sm:$0xff] }
 0x361   : > { %v2392_v52 = vld [vmem:[#allocation3 + $0x69] sm:$0xff]  ;;  %2327 = vst.msk [vmem:[#allocation3 + $0x79] sm:$0xff] %vm349_vm0, %v2240_v21  ;;  %v2092_v13 = vadd.f32 %v6877_v11, %v1979_v57  ;;  %2025 = vmatmul.f32.gmra.mxu1 %v1682_v26  ;;  %4344 = vmatmul.msk.f32.gmra.mxu0 %vm349_vm0, %v2612_v24  ;;  %v5024_v43 = vpack.i.bf16 %v2424_v63, %v2612_v24  ;;  %v4918_v21 = vunpack.i.h.bf16 %v4916_v40  ;;  %v2100_v26 = vpop.f32.mrf.mxu2 }
 0x362   : > { %v5019_v17 = vpack.i.bf16 %v2392_v52, %v2391_v0  ;;  %v2454_v5 = vld [vmem:[#allocation3 + $0x68] sm:$0xff]  ;;  %3737 = vmatpush.msrb.mxu3 %v3610_v9 }
 0x363   : > { %v2173_v11 = vmul.f32 %v6748_v33, %v2092_v13  ;;  %5015 = vrot.lane.b32.xlu2 %v4989_v39, %s5458_s13  ;;  %5025 = vrot.lane.b32.xlu0 %v5024_v43, %s5459_s14  ;;  %v1683_v39 = vsel %vm1560_vm3, %v1651_v55, %v4917_v30  ;;  %v5029_v7 = vpack.i.bf16 %v2454_v5, %v2453_v44  ;;  %v593_v0 = vld [vmem:[#allocation2 + $0x159] sm:$0xff] }
 0x364   : > { %5020 = vrot.lane.b32.xlu1 %v5019_v17, %s5457_s18  ;;  %4339 = vmatmul.msk.f32.gmra.mxu3 %vm349_vm0, %v726_v12  ;;  %v1621_v5 = vsel %vm349_vm0, %v594_v20, %v4762_v62 }
 0x365   : > { %v2209_v1 = vadd.f32 %v6756_v14, %v2173_v11 }
 0x366   : > { %v1981_v31 = vpop.f32.mrf.mxu1 }
 0x367   : > { %v2241_v59 = vmax.f32 %v2209_v1, 0.0  ;;  %v1982_v47 = vadd.f32 %v1981_v31, %v1868_v8  ;;  %v3624_v8 = vld [vmem:[%s7906_s2 + $0xc0] sm:$0xff]  ;;  %v3609_v1 = vld [vmem:[%s7906_s2 + $0x48] sm:$0xff]  ;;  %v4921_v31 = vpop.permute.xlu1 %4920 }
 0x368   : > { %3852 = vmatpush.msrb.mxu2 %v3624_v8  ;;  %3738 = vmatpush.msrb.mxu3 %v3609_v1  ;;  %v4922_v55 = vunpack.i.l.bf16 %v4921_v31  ;;  %v4923_v62 = vunpack.i.h.bf16 %v4921_v31  ;;  %v3621_v31 = vld [vmem:[%s7906_s2 + $0xa8] sm:$0xff] }
 0x369   : > { %2328 = vst.msk [vmem:[#allocation3 + $0x81] sm:$0xff] %vm349_vm0, %v2241_v59  ;;  %v2095_v10 = vadd.f32 %v2094_v18, %v1982_v47  ;;  %2028 = vmatmul.f32.gmra.mxu1 %v1683_v39  ;;  %4345 = vmatmul.msk.f32.gmra.mxu0 %vm349_vm0, %v2424_v63  ;;  %v1620_v63 = vsel %vm349_vm0, %v593_v0, %v4758_v15  ;;  %v2103_v8 = vpop.f32.mrf.mxu2  ;;  %v4843_v15 = vunpack.i.h.bf16 %v6627_v19 }
 0x36a   : > { %v1652_v60 = vsel %vm1527_vm2, %v1620_v63, %v4838_v34  ;;  %3853 = vmatpush.msrb.mxu2 %v3623_v6  ;;  %v3622_v63 = vld [vmem:[%s7906_s2 + $0xb0] sm:$0xff] }
 0x36b   : > { %v2174_v18 = vmul.f32 %v6748_v33, %v2095_v10  ;;  %5045 = vrot.lane.b32.xlu2 %v5019_v17, %s5458_s13  ;;  %5030 = vrot.lane.b32.xlu0 %v5029_v7, %s5458_s13  ;;  %v1874_v17 = vpop.f32.mrf.mxu0  ;;  %v1684_v23 = vsel %vm1560_vm3, %v1652_v60, %v4918_v21  ;;  %v2393_v21 = vld [vmem:[#allocation3 + $0x79] sm:$0xff] }
 0x36c   : > { %5035 = vrot.lane.b32.xlu1 %v5024_v43, %s5457_s18  ;;  %v4842_v43 = vunpack.i.l.bf16 %v6627_v19  ;;  %v3607_v19 = vld [vmem:[%s7906_s2 + $0x38] sm:$0xff]  ;;  %3854 = vmatpush.msrb.mxu2 %v3622_v63 }
 0x36d   : > { %v2210_v57 = vadd.f32 %v6756_v14, %v2174_v18  ;;  %v2455_v18 = vld [vmem:[#allocation3 + $0x78] sm:$0xff] }
 0x36e   : > { %v1984_v24 = vpop.f32.mrf.mxu1  ;;  %v1653_v47 = vsel %vm1527_vm2, %v1621_v5, %v4842_v43  ;;  %3855 = vmatpush.msrb.mxu2 %v3621_v31 }
 0x36f   : > { %v2242_v52 = vmax.f32 %v2210_v57, 0.0  ;;  %v1985_v13 = vadd.f32 %v1984_v24, %v1871_v2  ;;  %v3608_v2 = vld [vmem:[%s7906_s2 + $0x40] sm:$0xff]  ;;  %v1685_v34 = vsel %vm1560_vm3, %v1653_v47, %v4922_v55 }
 0x370   : > { %v2614_v40 = vld [vmem:[#allocation3 + $0x7a] sm:$0xff]  ;;  %v2520_v46 = vld [vmem:[#allocation3 + $0x82] sm:$0xff]  ;;  %3739 = vmatpush.msrb.mxu3 %v3608_v2 }
 0x371   : > { %2329 = vst.msk [vmem:[#allocation3 + $0x91] sm:$0xff] %vm349_vm0, %v2242_v52  ;;  %v2098_v11 = vadd.f32 %v2097_v36, %v1985_v13  ;;  %2031 = vmatmul.f32.gmra.mxu1 %v1684_v23  ;;  %4346 = vmatmul.msk.f32.gmra.mxu0 %vm349_vm0, %v2614_v40  ;;  %v5064_v30 = vpack.i.bf16 %v2520_v46, %v2614_v40  ;;  %v2456_v39 = vld [vmem:[#allocation3 + $0x80] sm:$0xff] }
 0x372   : > { %v2394_v44 = vld [vmem:[#allocation3 + $0x81] sm:$0xff]  ;;  %v5059_v0 = vpack.i.bf16 %v2456_v39, %v2455_v18  ;;  %3740 = vmatpush.msrb.mxu3 %v3607_v19 }
 0x373   : > { %v2175_v36 = vmul.f32 %v6748_v33, %v2098_v11  ;;  %5040 = vrot.lane.b32.xlu0 %v5029_v7, %s5459_s14  ;;  %5055 = vrot.lane.b32.xlu2 %v5064_v30, %s5459_s14  ;;  %v4763_v7 = vunpack.i.h.bf16 %v7931_v38  ;;  %v5049_v24 = vpack.i.bf16 %v2394_v44, %v2393_v21  ;;  %v1877_v52 = vpop.f32.mrf.mxu0  ;;  %v3606_v2 = vld [vmem:[%s7906_s2 + $0x30] sm:$0xff]  ;;  %v3620_v21 = vld [vmem:[%s7906_s2 + $0xa0] sm:$0xff] }
 0x374   : > { %5065 = vrot.lane.b32.xlu1 %v5064_v30, %s5457_s18  ;;  %v4926_v30 = vpop.permute.xlu0 %4925  ;;  %3741 = vmatpush.msrb.mxu3 %v3606_v2 }
 0x375   : > { %v2211_v59 = vadd.f32 %v6756_v14, %v2175_v36  ;;  %v2106_v36 = vpop.f32.mrf.mxu2  ;;  %v4927_v5 = vunpack.i.l.bf16 %v4926_v30  ;;  %3856 = vmatpush.msrb.mxu2 %v3620_v21  ;;  %v4928_v19 = vunpack.i.h.bf16 %v4926_v30  ;;  %v3600_v30 = vld [vmem:[%s7906_s2] sm:$0xff] }
 0x376   : > { %v1987_v25 = vpop.f32.mrf.mxu1 }
 0x377   : > { %v2243_v10 = vmax.f32 %v2211_v59, 0.0  ;;  %v1988_v9 = vadd.f32 %v1987_v25, %v1874_v17 }
 0x378   : > { %v2457_v18 = vld [vmem:[#allocation3 + $0x90] sm:$0xff] }
 0x379   : > { %2330 = vst.msk [vmem:[#allocation3 + $0x99] sm:$0xff] %vm349_vm0, %v2243_v10  ;;  %v2101_v57 = vadd.f32 %v2100_v26, %v1988_v9  ;;  %2034 = vmatmul.f32.gmra.mxu1 %v1685_v34  ;;  %4347 = vmatmul.msk.f32.gmra.mxu0 %vm349_vm0, %v2520_v46  ;;  %v595_v26 = vld [vmem:[#allocation2 + $0x171] sm:$0xff]  ;;  %v1687_v9 = vsel %vm1560_vm3, %v6561_v3, %v4927_v5  ;;  %v3604_v3 = vld [vmem:[%s7906_s2 + $0x20] sm:$0xff] }
 0x37a   : > { %v1622_v60 = vsel %vm349_vm0, %v595_v26, %v4763_v7  ;;  %v3605_v7 = vld [vmem:[%s7906_s2 + $0x28] sm:$0xff] }
 0x37b   : > { %v2176_v13 = vmul.f32 %v6748_v33, %v2101_v57  ;;  %5060 = vrot.lane.b32.xlu2 %v5059_v0, %s5458_s13  ;;  %5050 = vrot.lane.b32.xlu0 %v5049_v24, %s5457_s18  ;;  %v1654_v38 = vsel %vm1527_vm2, %v1622_v60, %v4843_v15  ;;  %v1880_v59 = vpop.f32.mrf.mxu0 }
 0x37c   : > { %v1686_v46 = vsel %vm1560_vm3, %v1654_v38, %v4923_v62  ;;  %3742 = vmatpush.msrb.mxu3 %v3605_v7 }
 0x37d   : > { %v2212_v12 = vadd.f32 %v6756_v14, %v2176_v13  ;;  %v2109_v63 = vpop.f32.mrf.mxu2 }
 0x37e   : > { %v1990_v17 = vpop.f32.mrf.mxu1  ;;  %3743 = vmatpush.msrb.mxu3 %v3604_v3 }
 0x37f   : > { %v2244_v23 = vmax.f32 %v2212_v12, 0.0  ;;  %v1991_v40 = vadd.f32 %v1990_v17, %v1877_v52  ;;  %v3603_v52 = vld [vmem:[%s7906_s2 + $0x18] sm:$0xff]  ;;  %v3602_v12 = vld [vmem:[%s7906_s2 + $0x10] sm:$0xff]  ;;  %v1688_v17 = vsel %vm1560_vm3, %v6564_v56, %v4928_v19  ;;  %v4936_v19 = vpop.permute.xlu1 %4935 }
 0x380   : > { %v2616_v43 = vld [vmem:[#allocation3 + $0x92] sm:$0xff]  ;;  %v2428_v11 = vld [vmem:[#allocation3 + $0x9a] sm:$0xff]  ;;  %3744 = vmatpush.msrb.mxu3 %v3603_v52 }
 0x381   : > { %2331 = vst.msk [vmem:[#allocation3 + $0xa9] sm:$0xff] %vm349_vm0, %v2244_v23  ;;  %v2104_v1 = vadd.f32 %v2103_v8, %v1991_v40  ;;  %2037 = vmatmul.f32.gmra.mxu1 %v1686_v46  ;;  %4348 = vmatmul.msk.f32.gmra.mxu0 %vm349_vm0, %v2616_v43  ;;  %v5084_v6 = vpack.i.bf16 %v2428_v11, %v2616_v43  ;;  %v2585_v25 = vld [vmem:[#allocation3 + $0x99] sm:$0xff]  ;;  %v2584_v8 = vld [vmem:[#allocation3 + $0x91] sm:$0xff] }
 0x382   : > { %v2458_v10 = vld [vmem:[#allocation3 + $0x98] sm:$0xff]  ;;  %v5099_v34 = vpack.i.bf16 %v2585_v25, %v2584_v8  ;;  %3745 = vmatpush.msrb.mxu3 %v3602_v12 }
 0x383   : > { %v2177_v20 = vmul.f32 %v6748_v33, %v2104_v1  ;;  %5075 = vrot.lane.b32.xlu2 %v5049_v24, %s5458_s13  ;;  %5070 = vrot.lane.b32.xlu0 %v5059_v0, %s5459_s14  ;;  %v5089_v57 = vpack.i.bf16 %v2458_v10, %v2457_v18  ;;  %v7020_v0 = vpop.permute.xlu2 %4930  ;;  %v1883_v26 = vpop.f32.mrf.mxu0 }
 0x384   : > { %5085 = vrot.lane.b32.xlu1 %v5084_v6, %s5459_s14  ;;  %v7046_v1 = vpop.f32.mrf.mxu3 }
 0x385   : > { %v2213_v47 = vadd.f32 %v6756_v14, %v2177_v20 }
 0x386   : > { %v1993_v55 = vpop.f32.mrf.mxu1 }
 0x387   : > { %v2245_v39 = vmax.f32 %v2213_v47, 0.0  ;;  %v1994_v44 = vadd.f32 %v1993_v55, %v1880_v59 }
 0x388   : > { %v2459_v55 = vld [vmem:[#allocation3 + $0xa8] sm:$0xff] }
 0x389   : > { %2332 = vst.msk [vmem:[#allocation3 + $0xb1] sm:$0xff] %vm349_vm0, %v2245_v39  ;;  %v2107_v15 = vadd.f32 %v2106_v36, %v1994_v44  ;;  %2040 = vmatmul.f32.gmra.mxu1 %v1687_v9  ;;  %4349 = vmatmul.msk.f32.gmra.mxu0 %vm349_vm0, %v2428_v11  ;;  %v3601_v11 = vld [vmem:[%s7906_s2 + $0x8] sm:$0xff]  ;;  %v2112_v36 = vpop.f32.mrf.mxu2  ;;  %v2397_v44 = vld [vmem:[#allocation3 + $0xa9] sm:$0xff] }
 0x38a   : > { %3746 = vmatpush.msrb.mxu3 %v3601_v11 }
 0x38b   : > { %v2178_v24 = vmul.f32 %v6748_v33, %v2107_v15  ;;  %5100 = vrot.lane.b32.xlu0 %v5099_v34, %s5458_s13  ;;  %5080 = vrot.lane.b32.xlu2 %v5099_v34, %s5457_s18 }
 0x38c   : > { %5090 = vrot.lane.b32.xlu1 %v5089_v57, %s5458_s13  ;;  %3747 = vmatpush.msrb.mxu3 %v3600_v30  ;;  %v2121_v8 = vpop.f32.mrf.mxu3  ;;  %v4937_v30 = vunpack.i.l.bf16 %v4936_v19 }
 0x38d   : > { %v2214_v13 = vadd.f32 %v6756_v14, %v2178_v24  ;;  %v7049_v2 = vpop.permute.xlu2 %4955  ;;  %v3617_v24 = vld [vmem:[%s7906_s2 + $0x88] sm:$0xff] }
 0x38e   : > { %v1996_v60 = vpop.f32.mrf.mxu1  ;;  %4399 = vmatpush.msra.mxu3 %v6764_v22  ;;  %v3619_v22 = vld [vmem:[%s7906_s2 + $0x98] sm:$0xff] }
 0x38f   : > { %v2246_v38 = vmax.f32 %v2214_v13, 0.0  ;;  %v1997_v62 = vadd.f32 %v1996_v60, %v1883_v26  ;;  %3857 = vmatpush.msrb.mxu2 %v3619_v22  ;;  %v4932_v60 = vunpack.i.l.bf16 %v7020_v0 }
 0x390   : > { %v2618_v23 = vld [vmem:[#allocation3 + $0xaa] sm:$0xff]  ;;  %v2430_v40 = vld [vmem:[#allocation3 + $0xb2] sm:$0xff]  ;;  %4400 = vmatpush.msra.mxu3 %v6774_v27 }
 0x391   : > { %2333 = vst.msk [vmem:[#allocation3 + $0xc1] sm:$0xff] %vm349_vm0, %v2246_v38  ;;  %v2110_v46 = vadd.f32 %v2109_v63, %v1997_v62  ;;  %2043 = vmatmul.f32.gmra.mxu1 %v1688_v17  ;;  %4350 = vmatmul.msk.f32.gmra.mxu0 %vm349_vm0, %v2618_v23  ;;  %v5114_v43 = vpack.i.bf16 %v2430_v40, %v2618_v23  ;;  %v2460_v5 = vld [vmem:[#allocation3 + $0xb0] sm:$0xff]  ;;  %v2115_v18 = vpop.f32.mrf.mxu2 }
 0x392   : > { %v5119_v39 = vpack.i.bf16 %v2460_v5, %v2459_v55  ;;  %4401 = vmatpush.msra.mxu3 %v6781_v58  ;;  %v3618_v58 = vld [vmem:[%s7906_s2 + $0x90] sm:$0xff]  ;;  %v3616_v63 = vld [vmem:[%s7906_s2 + $0x80] sm:$0xff] }
 0x393   : > { %v2179_v56 = vmul.f32 %v6748_v33, %v2110_v46  ;;  %5105 = vrot.lane.b32.xlu2 %v5084_v6, %s5457_s18  ;;  %5115 = vrot.lane.b32.xlu0 %v5114_v43, %s5459_s14  ;;  %v2398_v6 = vld [vmem:[#allocation3 + $0xb1] sm:$0xff] }
 0x394   : > { %5095 = vrot.lane.b32.xlu1 %v5089_v57, %s5459_s14  ;;  %v5109_v10 = vpack.i.bf16 %v2398_v6, %v2397_v44  ;;  %4402 = vmatpush.msra.mxu3 %v6789_v41  ;;  %v2124_v46 = vpop.f32.mrf.mxu3  ;;  %v4933_v6 = vunpack.i.h.bf16 %v7020_v0 }
 0x395   : > { %v2215_v31 = vadd.f32 %v6756_v14, %v2179_v56  ;;  %3858 = vmatpush.msrb.mxu2 %v3618_v58  ;;  %v4938_v58 = vunpack.i.h.bf16 %v4936_v19 }
 0x396   : > { %v1999_v20 = vpop.f32.mrf.mxu1 }
 0x397   : > { %v2247_v59 = vmax.f32 %v2215_v31, 0.0  ;;  %v2000_v47 = vadd.f32 %v1999_v20, %v6620_v54  ;;  %3859 = vmatpush.msrb.mxu2 %v3617_v24 }
 0x398   : > { %v2399_v11 = vld [vmem:[#allocation3 + $0xc1] sm:$0xff] }
 0x399   : > { %2334 = vst.msk [vmem:[#allocation3 + $0xc9] sm:$0xff] %vm349_vm0, %v2247_v59  ;;  %v2113_v25 = vadd.f32 %v2112_v36, %v2000_v47  ;;  %4351 = vmatmul.msk.f32.gmra.mxu0 %vm349_vm0, %v2430_v40  ;;  %3860 = vmatpush.msrb.mxu2 %v3616_v63  ;;  %v2351_v40 = vld [vmem:[#allocation3] sm:$0xff] }
 0x39a   : > { %v3408_v20 = vsel %vm349_vm0, %v2351_v40, %v4932_v60 }
 0x39b   : > { %v2180_v54 = vmul.f32 %v6748_v33, %v2113_v25  ;;  %5135 = vrot.lane.b32.xlu2 %v5114_v43, %s5457_s18  ;;  %5120 = vrot.lane.b32.xlu0 %v5119_v39, %s5458_s13  ;;  %v2556_v43 = vld [vmem:[#allocation3 + $0xc0] sm:$0xff] }
 0x39c   : > { %5110 = vrot.lane.b32.xlu1 %v5109_v10, %s5457_s18 }
 0x39d   : > { %v2216_v27 = vadd.f32 %v6756_v14, %v2180_v54  ;;  %v7067_v9 = vpop.permute.xlu2 %4965 }
 0x39e   : > { %v2002_v7 = vpop.f32.mrf.mxu1 }
 0x39f   : > { %v2248_v15 = vmax.f32 %v2216_v27, 0.0  ;;  %v2003_v34 = vadd.f32 %v2002_v7, %v6630_v28 }
 0x3a0   : > { %v2620_v21 = vld [vmem:[#allocation3 + $0xc2] sm:$0xff]  ;;  %v2432_v57 = vld [vmem:[#allocation3 + $0xca] sm:$0xff] }
 0x3a1   : > { %2335 = vst.msk [vmem:[#allocation3 + $0xd9] sm:$0xff] %vm349_vm0, %v2248_v15  ;;  %v2116_v41 = vadd.f32 %v2115_v18, %v2003_v34  ;;  %4352 = vmatmul.msk.f32.gmra.mxu0 %vm349_vm0, %v2620_v21  ;;  %v5144_v3 = vpack.i.bf16 %v2432_v57, %v2620_v21  ;;  %v2557_v38 = vld [vmem:[#allocation3 + $0xc8] sm:$0xff]  ;;  %v2127_v34 = vpop.f32.mrf.mxu3 }
 0x3a2   : > { %v2400_v62 = vld [vmem:[#allocation3 + $0xc9] sm:$0xff]  ;;  %v5154_v31 = vpack.i.bf16 %v2557_v38, %v2556_v43 }
 0x3a3   : > { %v2181_v28 = vmul.f32 %v6748_v33, %v2116_v41  ;;  %5130 = vrot.lane.b32.xlu0 %v5109_v10, %s5458_s13  ;;  %5145 = vrot.lane.b32.xlu2 %v5144_v3, %s5459_s14  ;;  %v5139_v36 = vpack.i.bf16 %v2400_v62, %v2399_v11  ;;  %v2352_v10 = vld [vmem:[#allocation3 + $0x8] sm:$0xff]  ;;  %v4957_v11 = vunpack.i.l.bf16 %v7049_v2 }
 0x3a4   : > { %5125 = vrot.lane.b32.xlu1 %v5119_v39, %s5459_s14  ;;  %v3409_v18 = vsel %vm349_vm0, %v2352_v10, %v4933_v6 }
 0x3a5   : > { %v2217_v52 = vadd.f32 %v6756_v14, %v2181_v28  ;;  %v7086_v13 = vpop.permute.xlu2 %4970  ;;  %v7088_v26 = vpop.permute.xlu0 %4945  ;;  %v3441_v41 = vsel %vm1527_vm2, %v3409_v18, %v4938_v58 }
 0x3a6   : > { %v2005_v12 = vpop.f32.mrf.mxu1  ;;  %v7105_v55 = vpop.permute.xlu1 %4940  ;;  %v4947_v38 = vunpack.i.l.bf16 %v7088_v26 }
 0x3a7   : > { %v2249_v17 = vmax.f32 %v2217_v52, 0.0  ;;  %v2006_v23 = vadd.f32 %v2005_v12, %v6638_v53  ;;  %v4942_v24 = vunpack.i.l.bf16 %v7105_v55 }
 0x3a8   : > { %v2401_v12 = vld [vmem:[#allocation3 + $0xd9] sm:$0xff] }
 0x3a9   : > { %2336 = vst.msk [vmem:[#allocation3 + $0xe1] sm:$0xff] %vm349_vm0, %v2249_v17  ;;  %v2119_v56 = vadd.f32 %v7046_v1, %v2006_v23  ;;  %4353 = vmatmul.msk.f32.gmra.mxu0 %vm349_vm0, %v2432_v57  ;;  %v3440_v1 = vsel %vm1527_vm2, %v3408_v20, %v4937_v30  ;;  %v2463_v62 = vld [vmem:[#allocation3 + $0xd8] sm:$0xff]  ;;  %v7131_v40 = vpop.f32.mrf.mxu3  ;;  %v7138_v30 = vld [vmem:[%s7907_s3] ss:$0 sm:$0xff] }
 0x3aa   : > { %v2353_v23 = vld [vmem:[#allocation3 + $0x18] sm:$0xff] }
 0x3ab   : > { %v2182_v5 = vmul.f32 %v6748_v33, %v2119_v56  ;;  %5150 = vrot.lane.b32.xlu2 %v5154_v31, %s5458_s13  ;;  %5140 = vrot.lane.b32.xlu0 %v5139_v36, %s5457_s18 }
 0x3ac   : > { %5155 = vrot.lane.b32.xlu1 %v5154_v31, %s5459_s14 }
 0x3ad   : > { %v2218_v53 = vadd.f32 %v6756_v14, %v2182_v5  ;;  %v7101_v59 = vpop.permute.xlu2 %4980  ;;  %v4951_v47 = vpop.permute.xlu0 %4950 }
 0x3ae   : > { %v4952_v25 = vunpack.i.l.bf16 %v4951_v47  ;;  %v2008_v39 = vpop.f32.mrf.mxu1  ;;  %v4982_v56 = vunpack.i.l.bf16 %v7101_v59 }
 0x3af   : > { %v2250_v44 = vmax.f32 %v2218_v53, 0.0  ;;  %v2009_v22 = vadd.f32 %v2008_v39, %v6645_v49  ;;  %v4953_v49 = vunpack.i.h.bf16 %v4951_v47  ;;  %v4972_v47 = vunpack.i.l.bf16 %v7086_v13  ;;  %v2479_v39 = vld [vmem:[#allocation3 + $0x19] sm:$0xff] }
 0x3b0   : > { %v3472_v54 = vsel %vm1560_vm3, %v3440_v1, %v4952_v25  ;;  %v2622_v27 = vld [vmem:[#allocation3 + $0xda] sm:$0xff]  ;;  %v2434_v7 = vld [vmem:[#allocation3 + $0xe2] sm:$0xff]  ;;  %v4943_v1 = vunpack.i.h.bf16 %v7105_v55 }
 0x3b1   : > { %2337 = vst.msk [vmem:[#allocation3 + $0xf1] sm:$0xff] %vm349_vm0, %v2250_v44  ;;  %v2122_v15 = vadd.f32 %v2121_v8, %v2009_v22  ;;  %3748 = vmatmul.f32.vlgmr.msrb.gmra.mxu3 %v3472_v54  ;;  %4354 = vmatmul.msk.f32.gmra.mxu0 %vm349_vm0, %v2622_v27  ;;  %v7111_v0 = vpack.i.bf16 %v2434_v7, %v2622_v27  ;;  %v2464_v52 = vld [vmem:[#allocation3 + $0xe0] sm:$0xff]  ;;  %v4948_v27 = vunpack.i.h.bf16 %v7088_v26  ;;  %v4958_v26 = vunpack.i.h.bf16 %v7049_v2 }
 0x3b2   : > { %v3473_v60 = vsel %vm1560_vm3, %v3441_v41, %v4953_v49  ;;  %v5179_v43 = vpack.i.bf16 %v2464_v52, %v2463_v62  ;;  %v3504_v54 = vsel %vm349_vm0, %v2479_v39, %v4957_v11  ;;  %v4973_v52 = vunpack.i.h.bf16 %v7086_v13 }
 0x3b3   : > { %v2183_v21 = vmul.f32 %v6748_v33, %v2122_v15  ;;  %5165 = vrot.lane.b32.xlu2 %v5144_v3, %s5457_s18  ;;  %5160 = vrot.lane.b32.xlu0 %v5139_v36, %s5458_s13  ;;  %v2402_v33 = vld [vmem:[#allocation3 + $0xe1] sm:$0xff]  ;;  %v7150_v36 = vld [vmem:[%s7908_s4] ss:$0 sm:$0xff]  ;;  %v3536_v58 = vsel %vm1527_vm2, %v3504_v54, %v4982_v56 }
 0x3b4   : > { %5175 = vrot.lane.b32.xlu1 %v7111_v0, %s5459_s14  ;;  %v5169_v17 = vpack.i.bf16 %v2402_v33, %v2401_v12  ;;  %v2480_v12 = vld [vmem:[#allocation3 + $0x21] sm:$0xff] }
 0x3b5   : > { %v2219_v8 = vadd.f32 %v6756_v14, %v2183_v21  ;;  %v7120_v57 = vpop.permute.xlu2 %4990  ;;  %v7124_v63 = vpop.permute.xlu1 %4975  ;;  %v3505_v62 = vsel %vm349_vm0, %v2480_v12, %v4958_v26  ;;  %v2482_v12 = vld [vmem:[#allocation3 + $0x39] sm:$0xff] }
 0x3b6   : > { %v2011_v28 = vpop.f32.mrf.mxu1  ;;  %v7145_v31 = vpop.permute.xlu0 %4960 }
 0x3b7   : > { %v2251_v19 = vmax.f32 %v2219_v8, 0.0  ;;  %v2012_v3 = vadd.f32 %v2011_v28, %v6655_v16  ;;  %v3410_v16 = vsel %vm349_vm0, %v2353_v23, %v4942_v24  ;;  %v4983_v24 = vunpack.i.h.bf16 %v7101_v59 }
 0x3b8   : > { %v3442_v53 = vsel %vm1527_vm2, %v3410_v16, %v4947_v38  ;;  %v4962_v23 = vunpack.i.l.bf16 %v7145_v31  ;;  %v2465_v11 = vld [vmem:[#allocation3 + $0xf0] sm:$0xff] }
 0x3b9   : > { %2338 = vst.msk [vmem:[#allocation3 + $0xf9] sm:$0xff] %vm349_vm0, %v2251_v19  ;;  %v2125_v14 = vadd.f32 %v2124_v46, %v2012_v3  ;;  %3751 = vmatmul.f32.gmra.mxu3 %v3473_v60  ;;  %4355 = vmatmul.msk.f32.gmra.mxu0 %vm349_vm0, %v2434_v7  ;;  %v3474_v7 = vsel %vm1560_vm3, %v3442_v53, %v4972_v47 }
 0x3ba   : > { %v3537_v16 = vsel %vm1527_vm2, %v3505_v62, %v4983_v24  ;;  %v4978_v24 = vunpack.i.h.bf16 %v7124_v63 }
 0x3bb   : > { %v2184_v46 = vmul.f32 %v7138_v30, %v2125_v14  ;;  %5170 = vrot.lane.b32.xlu2 %v5169_v17, %s5457_s18  ;;  %5190 = vrot.lane.b32.xlu0 %v5169_v17, %s5458_s13 }
 0x3bc   : > { %5180 = vrot.lane.b32.xlu1 %v5179_v43, %s5458_s13 }
 0x3bd   : > { %v2220_v20 = vadd.f32 %v7150_v36, %v2184_v46  ;;  %v7153_v5 = vpop.permute.xlu2 %5015  ;;  %v4986_v6 = vpop.permute.xlu1 %4985 }
 0x3be   : > { %v2014_v25 = vpop.f32.mrf.mxu1  ;;  %v4987_v22 = vunpack.i.l.bf16 %v4986_v6  ;;  %v4988_v28 = vunpack.i.h.bf16 %v4986_v6 }
 0x3bf   : > { %v2252_v44 = vmax.f32 %v2220_v20, 0.0  ;;  %v2015_v10 = vadd.f32 %v2014_v25, %v6664_v48  ;;  %v2354_v48 = vld [vmem:[#allocation3 + $0x20] sm:$0xff]  ;;  %v4977_v20 = vunpack.i.l.bf16 %v7124_v63 }
 0x3c0   : > { %v2624_v15 = vld [vmem:[#allocation3 + $0xf2] sm:$0xff]  ;;  %v2436_v18 = vld [vmem:[#allocation3 + $0xfa] sm:$0xff]  ;;  %v3568_v21 = vsel %vm1560_vm3, %v3536_v58, %v4987_v22  ;;  %v3411_v8 = vsel %vm349_vm0, %v2354_v48, %v4943_v1  ;;  %v3569_v46 = vsel %vm1560_vm3, %v3537_v16, %v4988_v28 }
 0x3c1   : > { %2339 = vst.msk [vmem:[#allocation3 + $0x109] sm:$0xff] %vm349_vm0, %v2252_v44  ;;  %v2128_v55 = vadd.f32 %v2127_v34, %v2015_v10  ;;  %3754 = vmatmul.f32.gmra.mxu3 %v3474_v7  ;;  %4356 = vmatmul.msk.f32.gmra.mxu0 %vm349_vm0, %v2624_v15  ;;  %v5204_v49 = vpack.i.bf16 %v2436_v18, %v2624_v15  ;;  %v2133_v34 = vpop.f32.mrf.mxu3  ;;  %v2466_v38 = vld [vmem:[#allocation3 + $0xf8] sm:$0xff]  ;;  %v4967_v10 = vunpack.i.l.bf16 %v7067_v9  ;;  %v5017_v15 = vunpack.i.l.bf16 %v7153_v5 }
 0x3c2   : > { %3861 = vmatmul.f32.vlgmr.msrb.gmra.mxu2 %v3568_v21  ;;  %v3443_v2 = vsel %vm1527_vm2, %v3411_v8, %v4948_v27  ;;  %v2404_v17 = vld [vmem:[#allocation3 + $0xf9] sm:$0xff]  ;;  %v5209_v56 = vpack.i.bf16 %v2466_v38, %v2465_v11  ;;  %v2481_v22 = vld [vmem:[#allocation3 + $0x31] sm:$0xff]  ;;  %v4968_v38 = vunpack.i.h.bf16 %v7067_v9 }
 0x3c3   : > { %v2185_v41 = vmul.f32 %v7138_v30, %v2128_v55  ;;  %5195 = vrot.lane.b32.xlu2 %v7111_v0, %s5457_s18  ;;  %5205 = vrot.lane.b32.xlu0 %v5204_v49, %s5459_s14  ;;  %v3506_v58 = vsel %vm349_vm0, %v2481_v22, %v4977_v20 }
 0x3c4   : > { %5185 = vrot.lane.b32.xlu1 %v5179_v43, %s5459_s14  ;;  %v3475_v43 = vsel %vm1560_vm3, %v3443_v2, %v4973_v52 }
 0x3c5   : > { %v2221_v33 = vadd.f32 %v7150_v36, %v2185_v41  ;;  %v7175_v19 = vpop.permute.xlu0 %5005  ;;  %v7177_v3 = vpop.permute.xlu2 %5045 }
 0x3c6   : > { %v7181_v60 = vpop.permute.xlu1 %4995  ;;  %v2017_v0 = vpop.f32.mrf.mxu1 }
 0x3c7   : > { %v2253_v14 = vmax.f32 %v2221_v33, 0.0  ;;  %v2018_v59 = vadd.f32 %v2017_v0, %v6671_v50  ;;  %v2403_v50 = vld [vmem:[#allocation3 + $0xf1] sm:$0xff]  ;;  %v4997_v22 = vunpack.i.l.bf16 %v7181_v60 }
 0x3c8   : > { %v5199_v53 = vpack.i.bf16 %v2404_v17, %v2403_v50  ;;  %v2356_v0 = vld [vmem:[#allocation3 + $0x38] sm:$0xff]  ;;  %v3507_v17 = vsel %vm349_vm0, %v2482_v12, %v4978_v24  ;;  %v2358_v12 = vld [vmem:[#allocation3 + $0x50] sm:$0xff] }
 0x3c9   : > { %2340 = vst.msk [vmem:[#allocation3 + $0x111] sm:$0xff] %vm349_vm0, %v2253_v14  ;;  %v2131_v13 = vadd.f32 %v7131_v40, %v2018_v59  ;;  %3757 = vmatmul.f32.gmra.mxu3 %v3475_v43  ;;  %4357 = vmatmul.msk.f32.gmra.mxu0 %vm349_vm0, %v2436_v18  ;;  %v2136_v1 = vpop.f32.mrf.mxu3  ;;  %v2355_v40 = vld [vmem:[#allocation3 + $0x30] sm:$0xff] }
 0x3ca   : > { %3864 = vmatmul.f32.gmra.mxu2 %v3569_v46  ;;  %v3412_v44 = vsel %vm349_vm0, %v2355_v40, %v4962_v23 }
 0x3cb   : > { %v2186_v47 = vmul.f32 %v7138_v30, %v2131_v13  ;;  %5225 = vrot.lane.b32.xlu2 %v5204_v49, %s5457_s18  ;;  %5210 = vrot.lane.b32.xlu0 %v5209_v56, %s5458_s13  ;;  %v4963_v49 = vunpack.i.h.bf16 %v7145_v31  ;;  %v3444_v48 = vsel %vm1527_vm2, %v3412_v44, %v4967_v10  ;;  %v5018_v13 = vunpack.i.h.bf16 %v7153_v5 }
 0x3cc   : > { %5200 = vrot.lane.b32.xlu1 %v5199_v53, %s5457_s18  ;;  %v4992_v5 = vunpack.i.l.bf16 %v7120_v57 }
 0x3cd   : > { %v2222_v6 = vadd.f32 %v7150_v36, %v2186_v47  ;;  %v5011_v25 = vpop.permute.xlu0 %5010  ;;  %v7198_v39 = vpop.permute.xlu2 %5055 }
 0x3ce   : > { %v5012_v54 = vunpack.i.l.bf16 %v5011_v25  ;;  %v5001_v27 = vpop.permute.xlu1 %5000  ;;  %v2020_v7 = vpop.f32.mrf.mxu1 }
 0x3cf   : > { %v2254_v18 = vmax.f32 %v2222_v6, 0.0  ;;  %v5002_v55 = vunpack.i.l.bf16 %v5001_v27  ;;  %v2021_v21 = vadd.f32 %v2020_v7, %v6677_v45  ;;  %v5013_v45 = vunpack.i.h.bf16 %v5011_v25  ;;  %v2562_v6 = vld [vmem:[#allocation3 + $0x108] sm:$0xff] }
 0x3d0   : > { %v2626_v8 = vld [vmem:[#allocation3 + $0x10a] sm:$0xff]  ;;  %v3538_v26 = vsel %vm1527_vm2, %v3506_v58, %v5012_v54  ;;  %v2438_v41 = vld [vmem:[#allocation3 + $0x112] sm:$0xff]  ;;  %v5003_v63 = vunpack.i.h.bf16 %v5001_v27 }
 0x3d1   : > { %2341 = vst.msk [vmem:[#allocation3 + $0x121] sm:$0xff] %vm349_vm0, %v2254_v18  ;;  %v2134_v28 = vadd.f32 %v2133_v34, %v2021_v21  ;;  %v3476_v33 = vsel %vm1560_vm3, %v3444_v48, %v5002_v55  ;;  %4358 = vmatmul.msk.f32.gmra.mxu0 %vm349_vm0, %v2626_v8  ;;  %v3570_v2 = vsel %vm1560_vm3, %v3538_v26, %v5017_v15  ;;  %v2139_v23 = vpop.f32.mrf.mxu3  ;;  %v2406_v11 = vld [vmem:[#allocation3 + $0x111] sm:$0xff]  ;;  %v2357_v7 = vld [vmem:[#allocation3 + $0x48] sm:$0xff] }
 0x3d2   : > { %3760 = vmatmul.f32.gmra.mxu3 %v3476_v33  ;;  %3867 = vmatmul.f32.gmra.mxu2 %v3570_v2  ;;  %v7213_v31 = vpack.i.bf16 %v2438_v41, %v2626_v8  ;;  %v3413_v34 = vsel %vm349_vm0, %v2356_v0, %v4963_v49  ;;  %v3539_v16 = vsel %vm1527_vm2, %v3507_v17, %v5013_v45  ;;  %v4993_v33 = vunpack.i.h.bf16 %v7120_v57 }
 0x3d3   : > { %v2187_v52 = vmul.f32 %v7138_v30, %v2134_v28  ;;  %5220 = vrot.lane.b32.xlu0 %v5199_v53, %s5458_s13  ;;  %v3445_v9 = vsel %vm1527_vm2, %v3413_v34, %v4968_v38  ;;  %v2405_v53 = vld [vmem:[#allocation3 + $0x109] sm:$0xff]  ;;  %v3571_v40 = vsel %vm1560_vm3, %v3539_v16, %v5018_v13  ;;  %v3414_v55 = vsel %vm349_vm0, %v2357_v7, %v4992_v5 }
 0x3d4   : > { %5215 = vrot.lane.b32.xlu1 %v5209_v56, %s5459_s14  ;;  %5235 = vrot.lane.b32.xlu2 %v7213_v31, %s5459_s14  ;;  %v2563_v56 = vld [vmem:[#allocation3 + $0x110] sm:$0xff]  ;;  %v3477_v20 = vsel %vm1560_vm3, %v3445_v9, %v5003_v63  ;;  %v5229_v25 = vpack.i.bf16 %v2406_v11, %v2405_v53  ;;  %v3446_v48 = vsel %vm1527_vm2, %v3414_v55, %v4997_v22  ;;  %v5007_v2 = vunpack.i.l.bf16 %v7175_v19 }
 0x3d5   : > { %v2223_v14 = vadd.f32 %v7150_v36, %v2187_v52  ;;  %v7223_v59 = vpop.permute.xlu0 %5025  ;;  %v7225_v62 = vpop.permute.xlu2 %5060 }
 0x3d6   : > { %v2023_v43 = vpop.f32.mrf.mxu1  ;;  %v7237_v44 = vpop.permute.xlu1 %5020 }
 0x3d7   : > { %v2255_v46 = vmax.f32 %v2223_v14, 0.0  ;;  %v2024_v50 = vadd.f32 %v2023_v43, %v6682_v4  ;;  %v5244_v4 = vpack.i.bf16 %v2563_v56, %v2562_v6  ;;  %v5022_v38 = vunpack.i.l.bf16 %v7237_v44  ;;  %v2483_v43 = vld [vmem:[#allocation3 + $0x49] sm:$0xff] }
 0x3d8   : > { %v5008_v56 = vunpack.i.h.bf16 %v7175_v19 }
 0x3d9   : > { %2342 = vst.msk [vmem:[#allocation3 + $0x129] sm:$0xff] %vm349_vm0, %v2255_v46  ;;  %v2137_v47 = vadd.f32 %v2136_v1, %v2024_v50  ;;  %4359 = vmatmul.msk.f32.gmra.mxu0 %vm349_vm0, %v2438_v41  ;;  %v2142_v58 = vpop.f32.mrf.mxu3  ;;  %v3508_v46 = vsel %vm349_vm0, %v2483_v43, %v5007_v2  ;;  %v5063_v43 = vunpack.i.h.bf16 %v7225_v62 }
 0x3da   : > { %3763 = vmatmul.f32.gmra.mxu3 %v3477_v20  ;;  %3870 = vmatmul.f32.gmra.mxu2 %v3571_v40  ;;  %v5027_v40 = vunpack.i.l.bf16 %v7223_v59 }
 0x3db   : > { %v2188_v10 = vmul.f32 %v7138_v30, %v2137_v47  ;;  %5230 = vrot.lane.b32.xlu0 %v5229_v25, %s5457_s18  ;;  %v2407_v47 = vld [vmem:[#allocation3 + $0x121] sm:$0xff] }
 0x3dc   : > { %5245 = vrot.lane.b32.xlu1 %v5244_v4, %s5459_s14  ;;  %5240 = vrot.lane.b32.xlu2 %v5244_v4, %s5458_s13  ;;  %v2359_v4 = vld [vmem:[#allocation3 + $0x60] sm:$0xff] }
 0x3dd   : > { %v2224_v1 = vadd.f32 %v7150_v36, %v2188_v10  ;;  %v5031_v54 = vpop.permute.xlu0 %5030  ;;  %v7245_v27 = vpop.permute.xlu2 %5075  ;;  %v3416_v10 = vsel %vm349_vm0, %v2359_v4, %v5022_v38 }
 0x3de   : > { %v5032_v15 = vunpack.i.l.bf16 %v5031_v54  ;;  %v2026_v18 = vpop.f32.mrf.mxu1  ;;  %v5033_v52 = vunpack.i.h.bf16 %v5031_v54  ;;  %v7260_v0 = vpop.permute.xlu1 %5035  ;;  %v2484_v54 = vld [vmem:[#allocation3 + $0x51] sm:$0xff] }
 0x3df   : > { %v2256_v21 = vmax.f32 %v2224_v1, 0.0  ;;  %v2027_v49 = vadd.f32 %v2026_v18, %v6689_v51  ;;  %v4998_v51 = vunpack.i.h.bf16 %v7181_v60  ;;  %v5047_v60 = vunpack.i.l.bf16 %v7177_v3 }
 0x3e0   : > { %v3478_v8 = vsel %vm1560_vm3, %v3446_v48, %v5032_v15  ;;  %v2628_v26 = vld [vmem:[#allocation3 + $0x122] sm:$0xff]  ;;  %v2440_v41 = vld [vmem:[#allocation3 + $0x12a] sm:$0xff]  ;;  %v3448_v18 = vsel %vm1527_vm2, %v3416_v10, %v5027_v40  ;;  %v3509_v55 = vsel %vm349_vm0, %v2484_v54, %v5008_v56  ;;  %v2361_v54 = vld [vmem:[#allocation3 + $0x78] sm:$0xff] }
 0x3e1   : > { %2343 = vst.msk [vmem:[#allocation3 + $0x139] sm:$0xff] %vm349_vm0, %v2256_v21  ;;  %v2140_v24 = vadd.f32 %v2139_v23, %v2027_v49  ;;  %4360 = vmatmul.msk.f32.gmra.mxu0 %vm349_vm0, %v2628_v26  ;;  %v7253_v28 = vpack.i.bf16 %v2440_v41, %v2628_v26  ;;  %v3415_v23 = vsel %vm349_vm0, %v2358_v12, %v4993_v33  ;;  %v2408_v16 = vld [vmem:[#allocation3 + $0x129] sm:$0xff]  ;;  %v2145_v9 = vpop.f32.mrf.mxu3  ;;  %v5023_v21 = vunpack.i.h.bf16 %v7237_v44 }
 0x3e2   : > { %3766 = vmatmul.f32.gmra.mxu3 %v3478_v8  ;;  %v2470_v50 = vld [vmem:[#allocation3 + $0x128] sm:$0xff]  ;;  %v5259_v5 = vpack.i.bf16 %v2408_v16, %v2407_v47  ;;  %v5062_v49 = vunpack.i.l.bf16 %v7225_v62  ;;  %v5038_v47 = vunpack.i.h.bf16 %v7260_v0 }
 0x3e3   : > { %v2189_v45 = vmul.f32 %v7138_v30, %v2140_v24  ;;  %5250 = vrot.lane.b32.xlu0 %v5229_v25, %s5458_s13  ;;  %v2469_v25 = vld [vmem:[#allocation3 + $0x120] sm:$0xff] }
 0x3e4   : > { %5265 = vrot.lane.b32.xlu1 %v7253_v28, %s5459_s14  ;;  %5255 = vrot.lane.b32.xlu2 %v7213_v31, %s5457_s18  ;;  %v3447_v31 = vsel %vm1527_vm2, %v3415_v23, %v4998_v51  ;;  %v5269_v19 = vpack.i.bf16 %v2470_v50, %v2469_v25  ;;  %v3480_v51 = vsel %vm1560_vm3, %v3448_v18, %v5062_v49  ;;  %v7322_v50 = vpop.f32.mrf.mxu0 }
 0x3e5   : > { %v2225_v57 = vadd.f32 %v7150_v36, %v2189_v45  ;;  %v5041_v63 = vpop.permute.xlu0 %5040  ;;  %v7267_v34 = vpop.permute.xlu2 %5080  ;;  %v3479_v20 = vsel %vm1560_vm3, %v3447_v31, %v5033_v52  ;;  %v2485_v31 = vld [vmem:[#allocation3 + $0x61] sm:$0xff] }
 0x3e6   : > { %v5042_v14 = vunpack.i.l.bf16 %v5041_v63  ;;  %v2029_v17 = vpop.f32.mrf.mxu1  ;;  %v5043_v22 = vunpack.i.h.bf16 %v5041_v63  ;;  %v7296_v48 = vpop.permute.xlu1 %5065 }
 0x3e7   : > { %v2257_v11 = vmax.f32 %v2225_v57, 0.0  ;;  %v2030_v13 = vadd.f32 %v2029_v17, %v6699_v61  ;;  %v5028_v57 = vunpack.i.h.bf16 %v7223_v59 }
 0x3e8   : > { %v3540_v53 = vsel %vm1527_vm2, %v3508_v46, %v5042_v14  ;;  %v3541_v26 = vsel %vm1527_vm2, %v3509_v55, %v5043_v22  ;;  %v2409_v4 = vld [vmem:[#allocation3 + $0x139] sm:$0xff] }
 0x3e9   : > { %2344 = vst.msk [vmem:[#allocation3 + $0x141] sm:$0xff] %vm349_vm0, %v2257_v11  ;;  %v2143_v6 = vadd.f32 %v2142_v58, %v2030_v13  ;;  %4361 = vmatmul.msk.f32.gmra.mxu0 %vm349_vm0, %v2440_v41  ;;  %v3572_v61 = vsel %vm1560_vm3, %v3540_v53, %v5047_v60  ;;  %v5048_v41 = vunpack.i.h.bf16 %v7177_v3  ;;  %v2148_v2 = vpop.f32.mrf.mxu3  ;;  %v2360_v60 = vld [vmem:[#allocation3 + $0x68] sm:$0xff]  ;;  %v5037_v3 = vunpack.i.l.bf16 %v7260_v0 }
 0x3ea   : > { %3769 = vmatmul.f32.gmra.mxu3 %v3479_v20  ;;  %3873 = vmatmul.f32.gmra.mxu2 %v3572_v61  ;;  %v7331_v61 = vld [vmem:[#allocation3 + $0x138] sm:$0xff] }
 0x3eb   : > { %v2190_v1 = vmul.f32 %v7138_v30, %v2143_v6  ;;  %5280 = vrot.lane.b32.xlu0 %v5259_v5, %s5458_s13  ;;  %v3573_v63 = vsel %vm1560_vm3, %v3541_v26, %v5048_v41  ;;  %v3510_v20 = vsel %vm349_vm0, %v2485_v31, %v5037_v3  ;;  %v5057_v26 = vunpack.i.l.bf16 %v7198_v39 }
 0x3ec   : > { %5270 = vrot.lane.b32.xlu1 %v5269_v19, %s5458_s13  ;;  %5260 = vrot.lane.b32.xlu2 %v5259_v5, %s5457_s18  ;;  %v5078_v41 = vunpack.i.h.bf16 %v7245_v27 }
 0x3ed   : > { %v2226_v7 = vadd.f32 %v7150_v36, %v2190_v1  ;;  %v7288_v58 = vpop.permute.xlu0 %5050  ;;  %v7290_v15 = vpop.permute.xlu2 %5105  ;;  %v2486_v1 = vld [vmem:[#allocation3 + $0x69] sm:$0xff] }
 0x3ee   : > { %v2032_v8 = vpop.f32.mrf.mxu1  ;;  %v5052_v62 = vunpack.i.l.bf16 %v7288_v58 }
 0x3ef   : > { %v2258_v24 = vmax.f32 %v2226_v7, 0.0  ;;  %v2033_v33 = vadd.f32 %v2032_v8, %v6707_v35  ;;  %v3417_v35 = vsel %vm349_vm0, %v2360_v60, %v5023_v21  ;;  %v3511_v7 = vsel %vm349_vm0, %v2486_v1, %v5038_v47  ;;  %v7356_v60 = vpop.f32.mrf.mxu0 }
 0x3f0   : > { %v2630_v45 = vld [vmem:[#allocation3 + $0x13a] sm:$0xff]  ;;  %v2442_v52 = vld [vmem:[#allocation3 + $0x142] sm:$0xff]  ;;  %v3449_v23 = vsel %vm1527_vm2, %v3417_v35, %v5028_v57  ;;  %v3418_v49 = vsel %vm349_vm0, %v2361_v54, %v5052_v62 }
 0x3f1   : > { %2345 = vst.msk [vmem:[#allocation3 + $0x151] sm:$0xff] %vm349_vm0, %v2258_v24  ;;  %v2146_v44 = vadd.f32 %v2145_v9, %v2033_v33  ;;  %4362 = vmatmul.msk.f32.gmra.mxu0 %vm349_vm0, %v2630_v45  ;;  %v5294_v12 = vpack.i.bf16 %v2442_v52, %v2630_v45  ;;  %v7320_v46 = vld [vmem:[#allocation3 + $0x140] sm:$0xff]  ;;  %v3481_v40 = vsel %vm1560_vm3, %v3449_v23, %v5063_v43  ;;  %v2151_v22 = vpop.f32.mrf.mxu3  ;;  %v5058_v43 = vunpack.i.h.bf16 %v7198_v39 }
 0x3f2   : > { %3772 = vmatmul.f32.gmra.mxu3 %v3480_v51  ;;  %3876 = vmatmul.f32.gmra.mxu2 %v3573_v63  ;;  %v2410_v53 = vld [vmem:[#allocation3 + $0x141] sm:$0xff]  ;;  %v5299_v0 = vpack.i.bf16 %v7320_v46, %v7331_v61  ;;  %v3450_v57 = vsel %vm1527_vm2, %v3418_v49, %v5057_v26 }
 0x3f3   : > { %v2191_v38 = vmul.f32 %v7138_v30, %v2146_v44  ;;  %5295 = vrot.lane.b32.xlu0 %v5294_v12, %s5459_s14 }
 0x3f4   : > { %5275 = vrot.lane.b32.xlu1 %v5269_v19, %s5459_s14  ;;  %5285 = vrot.lane.b32.xlu2 %v7253_v28, %s5457_s18  ;;  %v5077_v28 = vunpack.i.l.bf16 %v7245_v27  ;;  %v5289_v19 = vpack.i.bf16 %v2410_v53, %v2409_v4 }
 0x3f5   : > { %v2227_v59 = vadd.f32 %v7150_v36, %v2191_v38  ;;  %v5071_v14 = vpop.permute.xlu0 %5070  ;;  %v7314_v17 = vpop.permute.xlu2 %5135  ;;  %v2362_v38 = vld [vmem:[#allocation3 + $0x80] sm:$0xff] }
 0x3f6   : > { %v5072_v16 = vunpack.i.l.bf16 %v5071_v14  ;;  %v7318_v11 = vpop.permute.xlu1 %5085  ;;  %v2035_v13 = vpop.f32.mrf.mxu1  ;;  %v5073_v25 = vunpack.i.h.bf16 %v5071_v14 }
 0x3f7   : > { %v2259_v9 = vmax.f32 %v2227_v59, 0.0  ;;  %v2036_v56 = vadd.f32 %v2035_v13, %v6710_v42  ;;  %v5067_v59 = vunpack.i.l.bf16 %v7296_v48 }
 0x3f8   : > { %v3542_v6 = vsel %vm1527_vm2, %v3510_v20, %v5072_v16  ;;  %v3543_v8 = vsel %vm1527_vm2, %v3511_v7, %v5073_v25  ;;  %v7399_v7 = vpop.f32.mrf.mxu0 }
 0x3f9   : > { %2346 = vst.msk [vmem:[#allocation3 + $0x159] sm:$0xff] %vm349_vm0, %v2259_v9  ;;  %v2149_v5 = vadd.f32 %v2148_v2, %v2036_v56  ;;  %4363 = vmatmul.msk.f32.gmra.mxu0 %vm349_vm0, %v2442_v52  ;;  %v3574_v42 = vsel %vm1560_vm3, %v3542_v6, %v5077_v28  ;;  %v5053_v52 = vunpack.i.h.bf16 %v7288_v58  ;;  %v3575_v63 = vsel %vm1560_vm3, %v3543_v8, %v5078_v41 }
 0x3fa   : > { %3775 = vmatmul.f32.gmra.mxu3 %v3481_v40  ;;  %3879 = vmatmul.f32.gmra.mxu2 %v3574_v42  ;;  %v2487_v40 = vld [vmem:[#allocation3 + $0x79] sm:$0xff]  ;;  %v7385_v42 = vld [vmem:[#allocation3 + $0x151] sm:$0xff] }
 0x3fb   : > { %v2192_v10 = vmul.f32 %v7138_v30, %v2149_v5  ;;  %5300 = vrot.lane.b32.xlu0 %v5299_v0, %s5458_s13  ;;  %v3419_v23 = vsel %vm349_vm0, %v2362_v38, %v5053_v52  ;;  %v3512_v5 = vsel %vm349_vm0, %v2487_v40, %v5067_v59 }
 0x3fc   : > { %5290 = vrot.lane.b32.xlu1 %v5289_v19, %s5457_s18  ;;  %5315 = vrot.lane.b32.xlu2 %v5294_v12, %s5457_s18  ;;  %v3451_v62 = vsel %vm1527_vm2, %v3419_v23, %v5058_v43 }
 0x3fd   : > { %v2228_v18 = vadd.f32 %v7150_v36, %v2192_v10  ;;  %v7344_v55 = vpop.permute.xlu0 %5100  ;;  %v7346_v21 = vpop.permute.xlu2 %5145  ;;  %v5082_v10 = vunpack.i.l.bf16 %v7267_v34 }
 0x3fe   : > { %v5091_v24 = vpop.permute.xlu1 %5090  ;;  %v2038_v33 = vpop.f32.mrf.mxu1  ;;  %v5102_v39 = vunpack.i.l.bf16 %v7344_v55 }
 0x3ff   : > { %v2260_v2 = vmax.f32 %v2228_v18, 0.0  ;;  %v5092_v51 = vunpack.i.l.bf16 %v5091_v24  ;;  %v2039_v45 = vadd.f32 %v2038_v33, %v6714_v37  ;;  %v2154_v37 = vpop.f32.mrf.mxu3  ;;  %v5093_v14 = vunpack.i.h.bf16 %v5091_v24  ;;  %v2363_v33 = vld [vmem:[#allocation3 + $0x90] sm:$0xff] }
 0x400   : > { %v2632_v44 = vld [vmem:[#allocation3 + $0x152] sm:$0xff]  ;;  %v2444_v12 = vld [vmem:[#allocation3 + $0x15a] sm:$0xff]  ;;  %v5087_v18 = vunpack.i.l.bf16 %v7318_v11 }
 0x401   : > { %2347 = vst.msk [vmem:[#allocation3 + $0x169] sm:$0xff] %vm349_vm0, %v2260_v2  ;;  %v2152_v35 = vadd.f32 %v2151_v22, %v2039_v45  ;;  %v3482_v27 = vsel %vm1560_vm3, %v3450_v57, %v5092_v51  ;;  %4364 = vmatmul.msk.f32.gmra.mxu0 %vm349_vm0, %v2632_v44  ;;  %v7361_v3 = vpack.i.bf16 %v2444_v12, %v2632_v44  ;;  %v7376_v56 = vld [vmem:[#allocation3 + $0x159] sm:$0xff]  ;;  %v2488_v2 = vld [vmem:[#allocation3 + $0x81] sm:$0xff] }
 0x402   : > { %3778 = vmatmul.f32.gmra.mxu3 %v3482_v27  ;;  %3882 = vmatmul.f32.gmra.mxu2 %v3575_v63  ;;  %v7380_v6 = vld [vmem:[#allocation3 + $0x158] sm:$0xff]  ;;  %v3483_v25 = vsel %vm1560_vm3, %v3451_v62, %v5093_v14  ;;  %v5319_v22 = vpack.i.bf16 %v7376_v56, %v7385_v42  ;;  %v3420_v57 = vsel %vm349_vm0, %v2363_v33, %v5082_v10 }
 0x403   : > { %v2193_v58 = vmul.f32 %v7138_v30, %v2152_v35  ;;  %5310 = vrot.lane.b32.xlu0 %v5289_v19, %s5458_s13  ;;  %v5068_v19 = vunpack.i.h.bf16 %v7296_v48  ;;  %v3452_v35 = vsel %vm1527_vm2, %v3420_v57, %v5087_v18  ;;  %v2574_v14 = vld [vmem:[#allocation3 + $0x198] sm:$0xff] }
 0x404   : > { %5305 = vrot.lane.b32.xlu1 %v5299_v0, %s5459_s14  ;;  %5325 = vrot.lane.b32.xlu2 %v7361_v3, %s5459_s14  ;;  %v7390_v0 = vld [vmem:[#allocation3 + $0x150] sm:$0xff]  ;;  %v2490_v33 = vld [vmem:[#allocation3 + $0x99] sm:$0xff] }
 0x405   : > { %v2229_v16 = vadd.f32 %v7150_v36, %v2193_v58  ;;  %v7372_v13 = vpop.permute.xlu0 %5115  ;;  %v7374_v31 = vpop.permute.xlu2 %5150  ;;  %v5334_v54 = vpack.i.bf16 %v7380_v6, %v7390_v0  ;;  %v3513_v44 = vsel %vm349_vm0, %v2488_v2, %v5068_v19 }
 0x406   : > { %v5096_v28 = vpop.permute.xlu1 %5095  ;;  %v2041_v9 = vpop.f32.mrf.mxu1 }
 0x407   : > { %v2261_v20 = vmax.f32 %v2229_v16, 0.0  ;;  %v5097_v53 = vunpack.i.l.bf16 %v5096_v28  ;;  %v2042_v47 = vadd.f32 %v2041_v9, %v6722_v29  ;;  %v5098_v49 = vunpack.i.h.bf16 %v5096_v28  ;;  %v2157_v48 = vpop.f32.mrf.mxu3  ;;  %v7429_v28 = vpop.f32.mrf.mxu0 }
 0x408   : > { %v5088_v16 = vunpack.i.h.bf16 %v7318_v11  ;;  %v7444_v10 = vld [vmem:[#allocation3 + $0x169] sm:$0xff] }
 0x409   : > { %2348 = vst.msk [vmem:[#allocation3 + $0x171] sm:$0xff] %vm349_vm0, %v2261_v20  ;;  %v2155_v4 = vadd.f32 %v2154_v37, %v2042_v47  ;;  %4365 = vmatmul.msk.f32.gmra.mxu0 %vm349_vm0, %v2444_v12  ;;  %v3544_v29 = vsel %vm1527_vm2, %v3512_v5, %v5097_v53  ;;  %v3545_v27 = vsel %vm1527_vm2, %v3513_v44, %v5098_v49  ;;  %v5103_v37 = vunpack.i.h.bf16 %v7344_v55  ;;  %v2364_v47 = vld [vmem:[#allocation3 + $0x98] sm:$0xff] }
 0x40a   : > { %3781 = vmatmul.f32.gmra.mxu3 %v3483_v25  ;;  %v3576_v1 = vsel %vm1560_vm3, %v3544_v29, %v5102_v39  ;;  %v5107_v55 = vunpack.i.l.bf16 %v7290_v15  ;;  %v2489_v5 = vld [vmem:[#allocation3 + $0x91] sm:$0xff] }
 0x40b   : > { %v2194_v8 = vmul.f32 %v7138_v30, %v2155_v4  ;;  %3885 = vmatmul.f32.gmra.mxu2 %v3576_v1  ;;  %5320 = vrot.lane.b32.xlu0 %v5319_v22, %s5457_s18  ;;  %v3577_v23 = vsel %vm1560_vm3, %v3545_v27, %v5103_v37  ;;  %v5108_v1 = vunpack.i.h.bf16 %v7290_v15 }
 0x40c   : > { %5335 = vrot.lane.b32.xlu1 %v5334_v54, %s5459_s14  ;;  %5330 = vrot.lane.b32.xlu2 %v5334_v54, %s5458_s13 }
 0x40d   : > { %v2230_v26 = vadd.f32 %v7150_v36, %v2194_v8  ;;  %v5121_v41 = vpop.permute.xlu0 %5120  ;;  %v7407_v24 = vpop.permute.xlu2 %5165  ;;  %v2365_v8 = vld [vmem:[#allocation3 + $0xa8] sm:$0xff]  ;;  %v3515_v57 = vsel %vm349_vm0, %v2490_v33, %v5108_v1 }
 0x40e   : > { %v5122_v51 = vunpack.i.l.bf16 %v5121_v41  ;;  %v7409_v45 = vpop.permute.xlu1 %5110  ;;  %v2044_v52 = vpop.f32.mrf.mxu1  ;;  %v5123_v9 = vunpack.i.h.bf16 %v5121_v41  ;;  %v5117_v41 = vunpack.i.l.bf16 %v7372_v13 }
 0x40f   : > { %v2262_v63 = vmax.f32 %v2230_v26, 0.0  ;;  %v2045_v12 = vadd.f32 %v2044_v52, %v6731_v32  ;;  %v5083_v32 = vunpack.i.h.bf16 %v7267_v34  ;;  %v5112_v62 = vunpack.i.l.bf16 %v7409_v45  ;;  %v7465_v44 = vpop.f32.mrf.mxu0 }
 0x410   : > { %v3484_v58 = vsel %vm1560_vm3, %v3452_v35, %v5122_v51  ;;  %v2634_v38 = vld [vmem:[#allocation3 + $0x16a] sm:$0xff]  ;;  %v2635_v25 = vld [vmem:[#allocation3 + $0x172] sm:$0xff] }
 0x411   : > { %2349 = vst.msk [vmem:[#allocation3 + $0x181] sm:$0xff] %vm349_vm0, %v2262_v63  ;;  %v2158_v59 = vadd.f32 %v2157_v48, %v2045_v12  ;;  %4366 = vmatmul.msk.f32.gmra.mxu0 %vm349_vm0, %v2634_v38  ;;  %v3421_v11 = vsel %vm349_vm0, %v2364_v47, %v5083_v32  ;;  %v7434_v4 = vld [vmem:[#allocation3 + $0x171] sm:$0xff]  ;;  %v7448_v18 = vpack.i.bf16 %v2635_v25, %v2634_v38  ;;  %v5152_v63 = vunpack.i.l.bf16 %v7374_v31  ;;  %v7474_v38 = vld [vmem:[#allocation3 + $0x168] sm:$0xff] }
 0x412   : > { %3784 = vmatmul.f32.gmra.mxu3 %v3484_v58  ;;  %v3453_v29 = vsel %vm1527_vm2, %v3421_v11, %v5088_v16  ;;  %v5349_v49 = vpack.i.bf16 %v7434_v4, %v7444_v10  ;;  %v3422_v26 = vsel %vm349_vm0, %v2365_v8, %v5112_v62  ;;  %v5113_v12 = vunpack.i.h.bf16 %v7409_v45  ;;  %v7470_v27 = vld [vmem:[#allocation3 + $0x170] sm:$0xff] }
 0x413   : > { %v2195_v43 = vmul.f32 %v7138_v30, %v2158_v59  ;;  %3888 = vmatmul.f32.gmra.mxu2 %v3577_v23  ;;  %5340 = vrot.lane.b32.xlu0 %v5319_v22, %s5458_s13  ;;  %v3485_v22 = vsel %vm1560_vm3, %v3453_v29, %v5123_v9  ;;  %v3454_v52 = vsel %vm1527_vm2, %v3422_v26, %v5117_v41  ;;  %v5137_v59 = vunpack.i.l.bf16 %v7314_v17 }
 0x414   : > { %3244 = vrot.lane.b32.xlu1 %v2574_v14, %s5459_s14  ;;  %5345 = vrot.lane.b32.xlu2 %v7361_v3, %s5457_s18  ;;  %v3486_v58 = vsel %vm1560_vm3, %v3454_v52, %v5152_v63  ;;  %v5359_v45 = vpack.i.bf16 %v7470_v27, %v7474_v38  ;;  %v5118_v9 = vunpack.i.h.bf16 %v7372_v13  ;;  %v5147_v26 = vunpack.i.l.bf16 %v7346_v21 }
 0x415   : > { %v2231_v20 = vadd.f32 %v7150_v36, %v2195_v43  ;;  %v5131_v34 = vpop.permute.xlu0 %5130  ;;  %v7436_v3 = vpop.permute.xlu2 %5170  ;;  %v3514_v36 = vsel %vm349_vm0, %v2489_v5, %v5107_v55  ;;  %v2366_v43 = vld [vmem:[#allocation3 + $0xb0] sm:$0xff] }
 0x416   : > { %v5132_v53 = vunpack.i.l.bf16 %v5131_v34  ;;  %v5126_v30 = vpop.permute.xlu1 %5125  ;;  %v5133_v2 = vunpack.i.h.bf16 %v5131_v34  ;;  %v3423_v16 = vsel %vm349_vm0, %v2366_v43, %v5113_v12  ;;  %v2491_v34 = vld [vmem:[#allocation3 + $0xa9] sm:$0xff] }
 0x417   : > { %v2263_v40 = vmax.f32 %v2231_v20, 0.0  ;;  %v5127_v39 = vunpack.i.l.bf16 %v5126_v30  ;;  %v5128_v48 = vunpack.i.h.bf16 %v5126_v30  ;;  %v3455_v47 = vsel %vm1527_vm2, %v3423_v16, %v5118_v9  ;;  %v7498_v5 = vpop.f32.mrf.mxu0 }
 0x418   : > { %v2572_v32 = vld [vmem:[#allocation3 + $0x180] sm:$0xff]  ;;  %v3516_v62 = vsel %vm349_vm0, %v2491_v34, %v5137_v59  ;;  %v5167_v59 = vunpack.i.l.bf16 %v7407_v24 }
 0x419   : > { %2350 = vst.msk [vmem:[#allocation3 + $0x189] sm:$0xff] %vm349_vm0, %v2263_v40  ;;  %4367 = vmatmul.msk.f32.gmra.mxu0 %vm349_vm0, %v2635_v25  ;;  %v3546_v19 = vsel %vm1527_vm2, %v3514_v36, %v5127_v39  ;;  %v3547_v35 = vsel %vm1527_vm2, %v3515_v57, %v5128_v48  ;;  %v5153_v39 = vunpack.i.h.bf16 %v7374_v31  ;;  %v5138_v31 = vunpack.i.h.bf16 %v7314_v17  ;;  %v2492_v17 = vld [vmem:[#allocation3 + $0xb1] sm:$0xff]  ;;  %v2493_v34 = vld [vmem:[#allocation3 + $0xc1] sm:$0xff] }
 0x41a   : > { %3787 = vmatmul.f32.gmra.mxu3 %v3485_v22  ;;  %v3578_v54 = vsel %vm1560_vm3, %v3546_v19, %v5132_v53  ;;  %v3579_v23 = vsel %vm1560_vm3, %v3547_v35, %v5133_v2  ;;  %v7504_v19 = vld [vmem:[#allocation3 + $0x181] sm:$0xff] }
 0x41b   : > { %3891 = vmatmul.f32.gmra.mxu2 %v3578_v54  ;;  %3364 = vrot.lane.b32.xlu0 %v7444_v10, %s5458_s13  ;;  %v3487_v36 = vsel %vm1560_vm3, %v3455_v47, %v5153_v39  ;;  %v2367_v54 = vld [vmem:[#allocation3 + $0xc0] sm:$0xff]  ;;  %v3517_v57 = vsel %vm349_vm0, %v2492_v17, %v5138_v31 }
 0x41c   : > { %5355 = vrot.lane.b32.xlu1 %v7448_v18, %s5459_s14  ;;  %5350 = vrot.lane.b32.xlu2 %v5349_v49, %s5457_s18  ;;  %v2606_v47 = vld [vmem:[#allocation3 + $0x199] sm:$0xff] }
 0x41d   : > { %v7459_v15 = vpop.permute.xlu0 %5140  ;;  %v7477_v14 = vpop.permute.xlu2 %5195 }
 0x41e   : > { %v7461_v51 = vpop.permute.xlu1 %5155  ;;  %v5142_v29 = vunpack.i.l.bf16 %v7459_v15  ;;  %v5143_v63 = vunpack.i.h.bf16 %v7459_v15 }
 0x41f   : > { %v5157_v55 = vunpack.i.l.bf16 %v7461_v51  ;;  %v5158_v49 = vunpack.i.h.bf16 %v7461_v51 }
 0x420   : > { %v2636_v37 = vld [vmem:[#allocation3 + $0x182] sm:$0xff]  ;;  %v2637_v11 = vld [vmem:[#allocation3 + $0x18a] sm:$0xff]  ;;  %v3424_v48 = vsel %vm349_vm0, %v2367_v54, %v5142_v29 }
 0x421   : > { %4368 = vmatmul.msk.f32.gmra.mxu0 %vm349_vm0, %v2636_v37  ;;  %v7493_v40 = vld [vmem:[#allocation3 + $0x188] sm:$0xff]  ;;  %v3548_v13 = vsel %vm1527_vm2, %v3516_v62, %v5157_v55  ;;  %v3456_v52 = vsel %vm1527_vm2, %v3424_v48, %v5147_v26  ;;  %v3549_v51 = vsel %vm1527_vm2, %v3517_v57, %v5158_v49  ;;  %v5148_v55 = vunpack.i.h.bf16 %v7346_v21  ;;  %v2575_v57 = vld [vmem:[#allocation3 + $0x1a0] sm:$0xff] }
 0x422   : > { %3790 = vmatmul.f32.gmra.mxu3 %v3486_v58  ;;  %v5374_v22 = vpack.i.bf16 %v7493_v40, %v2572_v32  ;;  %v7524_v58 = vld [vmem:[#allocation3 + $0x189] sm:$0xff]  ;;  %v5172_v21 = vunpack.i.l.bf16 %v7436_v3 }
 0x423   : > { %3894 = vmatmul.f32.gmra.mxu2 %v3579_v23  ;;  %3240 = vrot.lane.b32.xlu0 %v2572_v32, %s5459_s14  ;;  %v2368_v23 = vld [vmem:[#allocation3 + $0xc8] sm:$0xff] }
 0x424   : > { %5360 = vrot.lane.b32.xlu1 %v5359_v45, %s5458_s13  ;;  %3366 = vrot.lane.b32.xlu2 %v7434_v4, %s5458_s13  ;;  %v3425_v43 = vsel %vm349_vm0, %v2368_v23, %v5143_v63  ;;  %v2494_v54 = vld [vmem:[#allocation3 + $0xc9] sm:$0xff] }
 0x425   : > { %v5161_v20 = vpop.permute.xlu0 %5160  ;;  %v7508_v1 = vpop.permute.xlu2 %5225 }
 0x426   : > { %v7489_v53 = vpop.permute.xlu1 %5175  ;;  %v5162_v30 = vunpack.i.l.bf16 %v5161_v20  ;;  %v5163_v41 = vunpack.i.h.bf16 %v5161_v20 }
 0x427   : > { %v5177_v29 = vunpack.i.l.bf16 %v7489_v53 }
 0x428   : > { %v3580_v25 = vsel %vm1560_vm3, %v3548_v13, %v5162_v30  ;;  %v3581_v35 = vsel %vm1560_vm3, %v3549_v51, %v5163_v41  ;;  %v5168_v13 = vunpack.i.h.bf16 %v7407_v24  ;;  %v2369_v24 = vld [vmem:[#allocation3 + $0xd8] sm:$0xff]  ;;  %v5197_v51 = vunpack.i.l.bf16 %v7477_v14 }
 0x429   : > { %4369 = vmatmul.msk.f32.gmra.mxu0 %vm349_vm0, %v2637_v11  ;;  %v3426_v26 = vsel %vm349_vm0, %v2369_v24, %v5172_v21  ;;  %v2371_v21 = vld [vmem:[#allocation3 + $0xf0] sm:$0xff] }
 0x42a   : > { %3793 = vmatmul.f32.gmra.mxu3 %v3487_v36  ;;  %v3519_v41 = vsel %vm349_vm0, %v2494_v54, %v5168_v13  ;;  %v2496_v54 = vld [vmem:[#allocation3 + $0xe1] sm:$0xff] }
 0x42b   : > { %3897 = vmatmul.f32.gmra.mxu2 %v3580_v25  ;;  %5375 = vrot.lane.b32.xlu0 %v5374_v22, %s5458_s13 }
 0x42c   : > { %5365 = vrot.lane.b32.xlu1 %v5359_v45, %s5459_s14  ;;  %3368 = vrot.lane.b32.xlu2 %v7504_v19, %s5458_s13 }
 0x42d   : > { %v7514_v8 = vpop.permute.xlu0 %5190 }
 0x42e   : > { %v5181_v33 = vpop.permute.xlu1 %5180  ;;  %v7538_v16 = vpop.permute.xlu2 %5235  ;;  %v5192_v30 = vunpack.i.l.bf16 %v7514_v8  ;;  %v5193_v17 = vunpack.i.h.bf16 %v7514_v8 }
 0x42f   : > { %v5182_v2 = vunpack.i.l.bf16 %v5181_v33  ;;  %v5183_v45 = vunpack.i.h.bf16 %v5181_v33  ;;  %v3458_v33 = vsel %vm1527_vm2, %v3426_v26, %v5177_v29 }
 0x431   : > { %v3488_v12 = vsel %vm1560_vm3, %v3456_v52, %v5182_v2  ;;  %v2607_v52 = vld [vmem:[#allocation3 + $0x1a1] sm:$0xff] }
 0x432   : > { %3796 = vmatmul.f32.gmra.mxu3 %v3488_v12  ;;  %v5173_v12 = vunpack.i.h.bf16 %v7436_v3 }
 0x433   : > { %3900 = vmatmul.f32.gmra.mxu2 %v3581_v35  ;;  %3370 = vrot.lane.b32.xlu0 %v7524_v58, %s5458_s13  ;;  %v5178_v35 = vunpack.i.h.bf16 %v7489_v53 }
 0x434   : > { %5370 = vrot.lane.b32.xlu1 %v7448_v18, %s5457_s18  ;;  %3116 = vrot.lane.b32.xlu2 %v2636_v37, %s5457_s18  ;;  %v7532_v15 = vpop.f32.mrf.mxu3  ;;  %v3457_v18 = vsel %vm1527_vm2, %v3425_v43, %v5148_v55  ;;  %v3518_v37 = vsel %vm349_vm0, %v2493_v34, %v5167_v59  ;;  %v2370_v55 = vld [vmem:[#allocation3 + $0xe0] sm:$0xff] }
 0x435   : > { %v7534_v32 = vpop.permute.xlu0 %5205  ;;  %v3489_v62 = vsel %vm1560_vm3, %v3457_v18, %v5183_v45  ;;  %v3427_v3 = vsel %vm349_vm0, %v2370_v55, %v5173_v12 }
 0x436   : > { %v5186_v9 = vpop.permute.xlu1 %5185  ;;  %v3459_v18 = vsel %vm1527_vm2, %v3427_v3, %v5178_v35  ;;  %v5208_v35 = vunpack.i.h.bf16 %v7534_v32  ;;  %v2497_v3 = vld [vmem:[#allocation3 + $0xf1] sm:$0xff] }
 0x437   : > { %v5187_v20 = vunpack.i.l.bf16 %v5186_v9  ;;  %v5188_v36 = vunpack.i.h.bf16 %v5186_v9 }
 0x439   : > { %v3550_v39 = vsel %vm1527_vm2, %v3518_v37, %v5187_v20  ;;  %v3551_v2 = vsel %vm1527_vm2, %v3519_v41, %v5188_v36  ;;  %v5207_v36 = vunpack.i.l.bf16 %v7534_v32 }
 0x43a   : > { %3799 = vmatmul.f32.gmra.mxu3 %v3489_v62  ;;  %v3582_v25 = vsel %vm1560_vm3, %v3550_v39, %v5192_v30  ;;  %v3583_v63 = vsel %vm1560_vm3, %v3551_v2, %v5193_v17  ;;  %v2495_v30 = vld [vmem:[#allocation3 + $0xd9] sm:$0xff]  ;;  %v5198_v62 = vunpack.i.h.bf16 %v7477_v14 }
 0x43b   : > { %3903 = vmatmul.f32.gmra.mxu2 %v3582_v25  ;;  %3372 = vrot.lane.b32.xlu0 %v2606_v47, %s5458_s13  ;;  %v3520_v37 = vsel %vm349_vm0, %v2495_v30, %v5197_v51  ;;  %v5227_v51 = vunpack.i.l.bf16 %v7508_v1 }
 0x43c   : > { %3242 = vrot.lane.b32.xlu1 %v7493_v40, %s5459_s14  ;;  %3118 = vrot.lane.b32.xlu2 %v2637_v11, %s5457_s18  ;;  %v7553_v22 = vpop.f32.mrf.mxu3  ;;  %v7560_v40 = vpop.permute.xlu2 %5240  ;;  %v3521_v41 = vsel %vm349_vm0, %v2496_v54, %v5198_v62  ;;  %v5237_v54 = vunpack.i.l.bf16 %v7538_v16  ;;  %s5408_s18 = scalar_lea.hbm %s5407_s20, 64 }
 0x43d   : > { %v5211_v31 = vpop.permute.xlu0 %5210  ;;  %p5409_p11 = scmp.ne.s32.totalorder %s5407_s20, %s5408_s18  ;;  %p5414_p1 = scmp.lt.s32.totalorder %s5412_s22, %s5408_s18 }
 0x43e   : > { %v5201_v49 = vpop.permute.xlu1 %5200  ;;  %v5212_v48 = vunpack.i.l.bf16 %v5211_v31  ;;  %v5213_v59 = vunpack.i.h.bf16 %v5211_v31 }
 0x43f   : > { %v5202_v9 = vunpack.i.l.bf16 %v5201_v49  ;;  %v5203_v2 = vunpack.i.h.bf16 %v5201_v49  ;;  %p5410_p12 = pnand %p5409_p11, %p5541_p5  ;;  %p5415_p2 = por %p5414_p1, %p5413_p0 }
 0x440   : > { %v3490_v11 = vsel %vm1560_vm3, %v3458_v33, %v5212_v48  ;;  %v3491_v53 = vsel %vm1560_vm3, %v3459_v18, %v5213_v59  ;;  %v5242_v33 = vunpack.i.l.bf16 %v7560_v40  ;;  %v3522_v18 = vsel %vm349_vm0, %v2497_v3, %v5227_v51 }
 0x441   : > { %v3428_v29 = vsel %vm349_vm0, %v2371_v21, %v5202_v9  ;;  %v5243_v9 = vunpack.i.h.bf16 %v7560_v40  ;;  %v2373_v21 = vld [vmem:[#allocation3 + $0x108] sm:$0xff]  ;;  %p5411_p13 = pneg %p5410_p12 }
 0x442   : > { %3802 = vmatmul.f32.gmra.mxu3 %v3490_v11  ;;  %v3460_v14 = vsel %vm1527_vm2, %v3428_v29, %v5207_v36 }
 0x443   : > { %3906 = vmatmul.f32.gmra.mxu2 %v3583_v63  ;;  %3374 = vrot.lane.b32.xlu0 %v2607_v52, %s5458_s13  ;;  %v3492_v52 = vsel %vm1560_vm3, %v3460_v14, %v5242_v33  ;;  %v2372_v63 = vld [vmem:[#allocation3 + $0xf8] sm:$0xff]  ;;  %p5416_p3 = pnand %p5415_p2, %p5411_p13 }
 0x444   : > { %3246 = vrot.lane.b32.xlu1 %v2575_v57, %s5459_s14  ;;  %v7569_v8 = vpop.f32.mrf.mxu3  ;;  %v7577_v39 = vpop.permute.xlu2 %5255  ;;  %v3429_v12 = vsel %vm349_vm0, %v2372_v63, %v5203_v2 }
 0x445   : > { %v5221_v23 = vpop.permute.xlu0 %5220  ;;  %v3862_v20 = vpop.f32.mrf.mxu2  ;;  %v3461_v55 = vsel %vm1527_vm2, %v3429_v12, %v5208_v35  ;;  %v5257_v51 = vunpack.i.l.bf16 %v7577_v39 }
 0x446   : > { %v5216_v45 = vpop.permute.xlu1 %5215  ;;  %v5222_v43 = vunpack.i.l.bf16 %v5221_v23  ;;  %v5223_v48 = vunpack.i.h.bf16 %v5221_v23  ;;  %v3863_v40 = vadd.f32 %v3862_v20, %v7532_v15 }
 0x447   : > { %v5217_v34 = vunpack.i.l.bf16 %v5216_v45  ;;  %v5218_v25 = vunpack.i.h.bf16 %v5216_v45  ;;  %v7599_v45 = vpop.f32.mrf.mxu0 }
 0x449   : > { %v3552_v47 = vsel %vm1527_vm2, %v3520_v37, %v5217_v34  ;;  %v3553_v17 = vsel %vm1527_vm2, %v3521_v41, %v5218_v25  ;;  %v3493_v37 = vsel %vm1560_vm3, %v3461_v55, %v5243_v9 }
 0x44a   : > { %3805 = vmatmul.f32.gmra.mxu3 %v3491_v53  ;;  %v3584_v13 = vsel %vm1560_vm3, %v3552_v47, %v5222_v43  ;;  %v3585_v57 = vsel %vm1560_vm3, %v3553_v17, %v5223_v48  ;;  %v2498_v17 = vld [vmem:[#allocation3 + $0xf9] sm:$0xff] }
 0x44b   : > { %3909 = vmatmul.f32.gmra.mxu2 %v3584_v13  ;;  %v5228_v13 = vunpack.i.h.bf16 %v7508_v1  ;;  %v3976_v1 = vadd.f32 %v7322_v50, %v3863_v40  ;;  %v2374_v50 = vld [vmem:[#allocation3 + $0x110] sm:$0xff] }
 0x44c   : > { %v7582_v31 = vpop.f32.mrf.mxu3  ;;  %v7595_v59 = vpop.permute.xlu2 %5260 }
 0x44d   : > { %v7584_v24 = vpop.permute.xlu0 %5230  ;;  %v3865_v11 = vpop.f32.mrf.mxu2  ;;  %v3523_v20 = vsel %vm349_vm0, %v2498_v17, %v5228_v13  ;;  %v2500_v17 = vld [vmem:[#allocation3 + $0x111] sm:$0xff] }
 0x44e   : > { %v5246_v26 = vpop.permute.xlu1 %5245  ;;  %v5232_v32 = vunpack.i.l.bf16 %v7584_v24  ;;  %v3866_v35 = vadd.f32 %v3865_v11, %v7553_v22 }
 0x44f   : > { %v5247_v23 = vunpack.i.l.bf16 %v5246_v26  ;;  %v5248_v25 = vunpack.i.h.bf16 %v5246_v26  ;;  %v5233_v26 = vunpack.i.h.bf16 %v7584_v24 }
 0x450   : > { %v3430_v36 = vsel %vm349_vm0, %v2373_v21, %v5232_v32  ;;  %v2499_v32 = vld [vmem:[#allocation3 + $0x109] sm:$0xff] }
 0x451   : > { %v3554_v53 = vsel %vm1527_vm2, %v3522_v18, %v5247_v23  ;;  %v3462_v15 = vsel %vm1527_vm2, %v3430_v36, %v5237_v54  ;;  %v3555_v63 = vsel %vm1527_vm2, %v3523_v20, %v5248_v25  ;;  %v3431_v24 = vsel %vm349_vm0, %v2374_v50, %v5233_v26  ;;  %v2375_v20 = vld [vmem:[#allocation3 + $0x120] sm:$0xff] }
 0x452   : > { %3808 = vmatmul.f32.gmra.mxu3 %v3492_v52  ;;  %v7618_v52 = vpop.f32.mrf.mxu0  ;;  %v3524_v11 = vsel %vm349_vm0, %v2499_v32, %v5257_v51  ;;  %v5262_v36 = vunpack.i.l.bf16 %v7595_v59 }
 0x453   : > { %3912 = vmatmul.f32.gmra.mxu2 %v3585_v57 }
 0x454   : > { %v7616_v48 = vpop.permute.xlu2 %5285 }
 0x455   : > { %v7597_v49 = vpop.f32.mrf.mxu3  ;;  %v5251_v34 = vpop.permute.xlu0 %5250 }
 0x456   : > { %v7601_v43 = vpop.permute.xlu1 %5265  ;;  %v5252_v30 = vunpack.i.l.bf16 %v5251_v34  ;;  %v3868_v62 = vpop.f32.mrf.mxu2  ;;  %v5253_v14 = vunpack.i.h.bf16 %v5251_v34  ;;  %v5238_v34 = vunpack.i.h.bf16 %v7538_v16  ;;  %v5258_v16 = vunpack.i.h.bf16 %v7577_v39 }
 0x457   : > { %v3869_v54 = vadd.f32 %v3868_v62, %v7569_v8  ;;  %v3432_v8 = vsel %vm349_vm0, %v2375_v20, %v5262_v36 }
 0x458   : > { %v3586_v47 = vsel %vm1560_vm3, %v3554_v53, %v5252_v30  ;;  %v3587_v12 = vsel %vm1560_vm3, %v3555_v63, %v5253_v14  ;;  %v3463_v22 = vsel %vm1527_vm2, %v3431_v24, %v5238_v34  ;;  %v5267_v14 = vunpack.i.l.bf16 %v7601_v43 }
 0x459   : > { %v3525_v39 = vsel %vm349_vm0, %v2500_v17, %v5258_v16  ;;  %v5268_v34 = vunpack.i.h.bf16 %v7601_v43 }
 0x45a   : > { %3811 = vmatmul.f32.gmra.mxu3 %v3493_v37  ;;  %v3979_v37 = vadd.f32 %v7356_v60, %v3866_v35  ;;  %v7642_v21 = vpop.f32.mrf.mxu0  ;;  %v3464_v62 = vsel %vm1527_vm2, %v3432_v8, %v5267_v14 }
 0x45b   : > { %3915 = vmatmul.f32.gmra.mxu2 %v3586_v47 }
 0x45c   : > { %v7636_v53 = vpop.permute.xlu2 %5315 }
 0x45d   : > { %v7612_v29 = vpop.f32.mrf.mxu3  ;;  %v5281_v2 = vpop.permute.xlu0 %5280 }
 0x45e   : > { %v5271_v41 = vpop.permute.xlu1 %5270  ;;  %v3871_v23 = vpop.f32.mrf.mxu2  ;;  %v5282_v47 = vunpack.i.l.bf16 %v5281_v2  ;;  %v5283_v63 = vunpack.i.h.bf16 %v5281_v2 }
 0x45f   : > { %v5272_v33 = vunpack.i.l.bf16 %v5271_v41  ;;  %v5273_v55 = vunpack.i.h.bf16 %v5271_v41  ;;  %v3872_v2 = vadd.f32 %v3871_v23, %v7582_v31 }
 0x461   : > { %v3494_v57 = vsel %vm1560_vm3, %v3462_v15, %v5272_v33  ;;  %v3495_v13 = vsel %vm1560_vm3, %v3463_v22, %v5273_v55  ;;  %v5263_v55 = vunpack.i.h.bf16 %v7595_v59 }
 0x462   : > { %4071 = vxpose.xlu2.b32.start [1/16] (narrow) %v3976_v1, 32  ;;  %3814 = vmatmul.f32.gmra.mxu3 %v3494_v57  ;;  %v3982_v57 = vadd.f32 %v7399_v7, %v3869_v54  ;;  %v7663_v24 = vpop.f32.mrf.mxu0  ;;  %v5287_v7 = vunpack.i.l.bf16 %v7616_v48 }
 0x463   : > { %3918 = vmatmul.f32.gmra.mxu2 %v3587_v12 }
 0x464   : > { %v7658_v51 = vpop.permute.xlu2 %5325 }
 0x465   : > { %v7629_v9 = vpop.f32.mrf.mxu3  ;;  %v7633_v18 = vpop.permute.xlu0 %5295 }
 0x466   : > { %v5276_v3 = vpop.permute.xlu1 %5275 }
 0x467   : > { %v5277_v30 = vunpack.i.l.bf16 %v5276_v3  ;;  %v5278_v60 = vunpack.i.h.bf16 %v5276_v3 }
 0x469   : > { %v3556_v40 = vsel %vm1527_vm2, %v3524_v11, %v5277_v30  ;;  %v3557_v26 = vsel %vm1527_vm2, %v3525_v39, %v5278_v60  ;;  %v5288_v60 = vunpack.i.h.bf16 %v7616_v48  ;;  %v2502_v48 = vld [vmem:[#allocation3 + $0x129] sm:$0xff] }
 0x46a   : > { %4072 = vxpose.xlu2.b32.cont [2/16] (narrow) %v3979_v37, 32  ;;  %3817 = vmatmul.f32.gmra.mxu3 %v3495_v13  ;;  %v3588_v25 = vsel %vm1560_vm3, %v3556_v40, %v5282_v47  ;;  %v3589_v50 = vsel %vm1560_vm3, %v3557_v26, %v5283_v63  ;;  %v2376_v47 = vld [vmem:[#allocation3 + $0x128] sm:$0xff]  ;;  %v3985_v40 = vadd.f32 %v7429_v28, %v3872_v2  ;;  %v7686_v8 = vpop.f32.mrf.mxu0  ;;  %v5317_v2 = vunpack.i.l.bf16 %v7636_v53 }
 0x46b   : > { %3921 = vmatmul.f32.gmra.mxu2 %v3588_v25  ;;  %v3433_v59 = vsel %vm349_vm0, %v2376_v47, %v5263_v55  ;;  %v2501_v13 = vld [vmem:[#allocation3 + $0x121] sm:$0xff] }
 0x46c   : > { %v3526_v31 = vsel %vm349_vm0, %v2501_v13, %v5287_v7  ;;  %v3465_v43 = vsel %vm1527_vm2, %v3433_v59, %v5268_v34  ;;  %v5331_v28 = vpop.permute.xlu2 %5330  ;;  %v2503_v13 = vld [vmem:[#allocation3 + $0x139] sm:$0xff] }
 0x46d   : > { %v7649_v41 = vpop.f32.mrf.mxu3  ;;  %v3874_v33 = vpop.f32.mrf.mxu2 }
 0x46e   : > { %v7651_v1 = vpop.permute.xlu1 %5290  ;;  %v5301_v15 = vpop.permute.xlu0 %5300  ;;  %v3875_v17 = vadd.f32 %v3874_v33, %v7597_v49  ;;  %v5332_v33 = vunpack.i.l.bf16 %v5331_v28 }
 0x46f   : > { %v5302_v12 = vunpack.i.l.bf16 %v5301_v15  ;;  %v5303_v32 = vunpack.i.h.bf16 %v5301_v15  ;;  %v5292_v16 = vunpack.i.l.bf16 %v7651_v1  ;;  %v5297_v15 = vunpack.i.l.bf16 %v7633_v18 }
 0x471   : > { %v3496_v35 = vsel %vm1560_vm3, %v3464_v62, %v5302_v12  ;;  %v3497_v36 = vsel %vm1560_vm3, %v3465_v43, %v5303_v32  ;;  %v3434_v39 = vsel %vm349_vm0, %v7331_v61, %v5292_v16  ;;  %v3527_v12 = vsel %vm349_vm0, %v2502_v48, %v5288_v60 }
 0x472   : > { %4073 = vxpose.xlu2.b32.cont [3/16] (narrow) %v3982_v57, 32  ;;  %3820 = vmatmul.f32.gmra.mxu3 %v3496_v35  ;;  %v3466_v35 = vsel %vm1527_vm2, %v3434_v39, %v5297_v15  ;;  %v3988_v61 = vadd.f32 %v7465_v44, %v3875_v17  ;;  %v5318_v43 = vunpack.i.h.bf16 %v7636_v53  ;;  %v2504_v17 = vld [vmem:[#allocation3 + $0x141] sm:$0xff] }
 0x473   : > { %3924 = vmatmul.f32.gmra.mxu2 %v3589_v50  ;;  %v5293_v50 = vunpack.i.h.bf16 %v7651_v1  ;;  %v3498_v55 = vsel %vm1560_vm3, %v3466_v35, %v5332_v33  ;;  %v5327_v35 = vunpack.i.l.bf16 %v7658_v51 }
 0x474   : > { %v3529_v15 = vsel %vm349_vm0, %v2504_v17, %v5318_v43  ;;  %v5346_v48 = vpop.permute.xlu2 %5345 }
 0x475   : > { %v7668_v3 = vpop.f32.mrf.mxu3  ;;  %v3877_v30 = vpop.f32.mrf.mxu2  ;;  %v3435_v32 = vsel %vm349_vm0, %v7320_v46, %v5293_v50 }
 0x476   : > { %v5306_v37 = vpop.permute.xlu1 %5305  ;;  %v5311_v11 = vpop.permute.xlu0 %5310  ;;  %v3878_v34 = vadd.f32 %v3877_v30, %v7612_v29  ;;  %v3528_v29 = vsel %vm349_vm0, %v2503_v13, %v5317_v2  ;;  %v5328_v13 = vunpack.i.h.bf16 %v7658_v51  ;;  %v5348_v51 = vunpack.i.h.bf16 %v5346_v48 }
 0x477   : > { %v5307_v22 = vunpack.i.l.bf16 %v5306_v37  ;;  %v5312_v25 = vunpack.i.l.bf16 %v5311_v11  ;;  %v5308_v14 = vunpack.i.h.bf16 %v5306_v37  ;;  %v5313_v57 = vunpack.i.h.bf16 %v5311_v11  ;;  %v7708_v30 = vpop.f32.mrf.mxu0 }
 0x478   : > { %v5298_v37 = vunpack.i.h.bf16 %v7633_v18  ;;  %v3991_v16 = vadd.f32 %v7498_v5, %v3878_v34 }
 0x479   : > { %v3558_v23 = vsel %vm1527_vm2, %v3526_v31, %v5307_v22  ;;  %v3559_v49 = vsel %vm1527_vm2, %v3527_v12, %v5308_v14 }
 0x47a   : > { %4074 = vxpose.xlu2.b32.cont [4/16] (narrow) %v3985_v40, 32  ;;  %v3590_v54 = vsel %vm1560_vm3, %v3558_v23, %v5312_v25  ;;  %3823 = vmatmul.f32.gmra.mxu3 %v3497_v36  ;;  %v3591_v7 = vsel %vm1560_vm3, %v3559_v49, %v5313_v57  ;;  %v3467_v59 = vsel %vm1527_vm2, %v3435_v32, %v5298_v37  ;;  %v5333_v40 = vunpack.i.h.bf16 %v5331_v28 }
 0x47b   : > { %3927 = vmatmul.f32.gmra.mxu2 %v3590_v54  ;;  %v5347_v37 = vunpack.i.l.bf16 %v5346_v48  ;;  %v3531_v48 = vsel %vm349_vm0, %v7376_v56, %v5348_v51 }
 0x47c   : > { %v3499_v18 = vsel %vm1560_vm3, %v3467_v59, %v5333_v40  ;;  %v5351_v32 = vpop.permute.xlu2 %5350 }
 0x47d   : > { %v7683_v20 = vpop.f32.mrf.mxu3  ;;  %v3880_v26 = vpop.f32.mrf.mxu2  ;;  %v5352_v43 = vunpack.i.l.bf16 %v5351_v32 }
 0x47e   : > { %v5336_v63 = vpop.permute.xlu1 %5335  ;;  %v7688_v62 = vpop.permute.xlu0 %5320  ;;  %v3881_v23 = vadd.f32 %v3880_v26, %v7629_v9 }
 0x47f   : > { %v5337_v47 = vunpack.i.l.bf16 %v5336_v63  ;;  %v5338_v60 = vunpack.i.h.bf16 %v5336_v63  ;;  %v5322_v57 = vunpack.i.l.bf16 %v7688_v62  ;;  %v7724_v26 = vpop.f32.mrf.mxu0  ;;  %v5323_v34 = vunpack.i.h.bf16 %v7688_v62 }
 0x480   : > { %v3994_v39 = vadd.f32 %v7599_v45, %v3881_v23 }
 0x481   : > { %v3560_v46 = vsel %vm1527_vm2, %v3528_v29, %v5337_v47  ;;  %v3561_v53 = vsel %vm1527_vm2, %v3529_v15, %v5338_v60  ;;  %v3436_v45 = vsel %vm349_vm0, %v7390_v0, %v5322_v57  ;;  %v3437_v59 = vsel %vm349_vm0, %v7380_v6, %v5323_v34 }
 0x482   : > { %4075 = vxpose.xlu2.b32.cont [5/16] (narrow) %v3988_v61, 32  ;;  %3826 = vmatmul.f32.gmra.mxu3 %v3498_v55  ;;  %v5460_v61 = vmov 0   ;;  %v3468_v2 = vsel %vm1527_vm2, %v3436_v45, %v5327_v35  ;;  %v3469_v29 = vsel %vm1527_vm2, %v3437_v59, %v5328_v13  ;;  %v4137_v45 = vld [vmem:[%s7909_s5 + $0x10] sm:$0xff] }
 0x483   : > { %3930 = vmatmul.f32.gmra.mxu2 %v3591_v7  ;;  %5379 = vset.pattern.permute.xlu0 %v5460_v61 }
 0x485   : > { %v7701_v44 = vpop.f32.mrf.mxu3  ;;  %v3883_v1 = vpop.f32.mrf.mxu2 }
 0x486   : > { %v7703_v22 = vpop.permute.xlu1 %3244  ;;  %v5341_v11 = vpop.permute.xlu0 %5340  ;;  %v3884_v63 = vadd.f32 %v3883_v1, %v7649_v41  ;;  %v4135_v41 = vld [vmem:[%s7909_s5] sm:$0xff] }
 0x487   : > { %v5342_v25 = vunpack.i.l.bf16 %v5341_v11  ;;  %v5343_v36 = vunpack.i.h.bf16 %v5341_v11  ;;  %4141 = vperm.xlu0 %5379, %v4135_v41  }
 0x488   : > { %v3997_v55 = vadd.f32 %v7618_v52, %v3884_v63  ;;  %v7742_v52 = vpop.f32.mrf.mxu0 }
 0x489   : > { %v3592_v31 = vsel %vm1560_vm3, %v3560_v46, %v5342_v25  ;;  %v3593_v9 = vsel %vm1560_vm3, %v3561_v53, %v5343_v36  ;;  %v4136_v46 = vld [vmem:[%s7909_s5 + $0x8] sm:$0xff]  ;;  %v3367_v36 = vpop.permute.xlu2 %3366 }
 0x48a   : > { %4076 = vxpose.xlu2.b32.cont [6/16] (narrow) %v3991_v16, 32  ;;  %3829 = vmatmul.f32.gmra.mxu3 %v3499_v18 }
 0x48b   : > { %3933 = vmatmul.f32.gmra.mxu2 %v3592_v31 }
 0x48d   : > { %v7715_v5 = vpop.f32.mrf.mxu3 }
 0x48e   : > { %v3886_v54 = vpop.f32.mrf.mxu2  ;;  %v7717_v14 = vpop.permute.xlu1 %5355 }
 0x48f   : > { %v3365_v28 = vpop.permute.xlu0 %3364  ;;  %v3887_v47 = vadd.f32 %v3886_v54, %v7668_v3  ;;  %v3530_v3 = vsel %vm349_vm0, %v7385_v42, %v5347_v37  ;;  %4146 = vperm.xlu0 %5379, %v4136_v46   ;;  %v5357_v42 = vunpack.i.l.bf16 %v7717_v14 }
 0x490   : > { %v7765_v57 = vpop.f32.mrf.mxu0 }
 0x491   : > { %v4000_v25 = vadd.f32 %v7642_v21, %v3887_v47  ;;  %v3369_v41 = vpop.permute.xlu2 %3368 }
 0x492   : > { %4077 = vxpose.xlu2.b32.cont [7/16] (narrow) %v3994_v39, 32 }
 0x493   : > { %3936 = vmatmul.f32.gmra.mxu2 %v3593_v9 }
 0x495   : > { %v7727_v12 = vpop.f32.mrf.mxu3 }
 0x496   : > { %v3889_v49 = vpop.f32.mrf.mxu2  ;;  %v5361_v33 = vpop.permute.xlu1 %5360 }
 0x497   : > { %v5362_v50 = vunpack.i.l.bf16 %v5361_v33  ;;  %v7733_v7 = vpop.permute.xlu0 %3240  ;;  %v5363_v1 = vunpack.i.h.bf16 %v5361_v33  ;;  %v3890_v60 = vadd.f32 %v3889_v49, %v7683_v20  ;;  %4151 = vperm.xlu0 %5379, %v4137_v45   ;;  %v5353_v49 = vunpack.i.h.bf16 %v5351_v32 }
 0x498   : > { %v5358_v33 = vunpack.i.h.bf16 %v7717_v14  ;;  %v7793_v32 = vpop.f32.mrf.mxu0 }
 0x499   : > { %v3500_v0 = vsel %vm1560_vm3, %v3468_v2, %v5362_v50  ;;  %v3501_v18 = vsel %vm1560_vm3, %v3469_v29, %v5363_v1  ;;  %v4003_v9 = vadd.f32 %v7663_v24, %v3890_v60  ;;  %v3439_v34 = vsel %vm349_vm0, %v7470_v27, %v5353_v49  ;;  %v4167_v29 = vld [vmem:[%s7910_s6] sm:$0xff] }
 0x49a   : > { %4078 = vxpose.xlu2.b32.cont [8/16] (narrow) %v3997_v55, 32  ;;  %3832 = vmatmul.f32.gmra.mxu3 %v3500_v0 }
 0x49d   : > { %v7744_v11 = vpop.f32.mrf.mxu3 }
 0x49e   : > { %v3892_v62 = vpop.f32.mrf.mxu2  ;;  %v5366_v40 = vpop.permute.xlu1 %5365 }
 0x49f   : > { %v5367_v16 = vunpack.i.l.bf16 %v5366_v40  ;;  %v5376_v31 = vpop.permute.xlu0 %5375  ;;  %v5368_v23 = vunpack.i.h.bf16 %v5366_v40  ;;  %v3893_v24 = vadd.f32 %v3892_v62, %v7701_v44  ;;  %v3471_v44 = vsel %vm1527_vm2, %v3439_v34, %v5358_v33 }
 0x4a0   : > { %v5377_v54 = vunpack.i.l.bf16 %v5376_v31  ;;  %v5378_v50 = vunpack.i.h.bf16 %v5376_v31  ;;  %v4023_v46 = vpop.f32.mrf.mxu0 }
 0x4a1   : > { %v3562_v6 = vsel %vm1527_vm2, %v3530_v3, %v5367_v16  ;;  %v3563_v53 = vsel %vm1527_vm2, %v3531_v48, %v5368_v23  ;;  %v4006_v14 = vadd.f32 %v7686_v8, %v3893_v24  ;;  %v2639_v16 = vld [vmem:[#allocation3 + $0x1a2] sm:$0xff]  ;;  %v3117_v3 = vpop.permute.xlu2 %3116 }
 0x4a2   : > { %4079 = vxpose.xlu2.b32.cont [9/16] (narrow) %v4000_v25, 32  ;;  %3835 = vmatmul.f32.gmra.mxu3 %v3501_v18  ;;  %v3594_v21 = vsel %vm1560_vm3, %v3562_v6, %v3365_v28  ;;  %v3438_v28 = vsel %vm349_vm0, %v7474_v38, %v5352_v43  ;;  %v3595_v56 = vsel %vm1560_vm3, %v3563_v53, %v3367_v36  ;;  %v2638_v38 = vld [vmem:[#allocation3 + $0x19a] sm:$0xff] }
 0x4a3   : > { %3939 = vmatmul.f32.gmra.mxu2 %v3594_v21  ;;  %v3470_v20 = vsel %vm1527_vm2, %v3438_v28, %v5357_v42  ;;  %4370 = vmatmul.msk.f32.gmra.mxu0 %vm349_vm0, %v2638_v38  ;;  %v3503_v37 = vsel %vm1560_vm3, %v3471_v44, %v5378_v50  ;;  %v4168_v21 = vld [vmem:[%s7910_s6 + $0x8] sm:$0xff]  ;;  %v4169_v48 = vld [vmem:[%s7910_s6 + $0x10] sm:$0xff] }
 0x4a4   : > { %v3502_v35 = vsel %vm1560_vm3, %v3470_v20, %v5377_v54 }
 0x4a5   : > { %v7761_v17 = vpop.f32.mrf.mxu3 }
 0x4a6   : > { %v3895_v39 = vpop.f32.mrf.mxu2  ;;  %v5371_v15 = vpop.permute.xlu1 %5370 }
 0x4a7   : > { %v5372_v63 = vunpack.i.l.bf16 %v5371_v15  ;;  %v5373_v47 = vunpack.i.h.bf16 %v5371_v15  ;;  %v3371_v1 = vpop.permute.xlu0 %3370  ;;  %v3896_v8 = vadd.f32 %v3895_v39, %v7715_v5 }
 0x4a9   : > { %v3532_v61 = vsel %vm349_vm0, %v7444_v10, %v5372_v63  ;;  %v4138_v10 = vld [vmem:[%s7909_s5 + $0x18] sm:$0xff]  ;;  %v3533_v13 = vsel %vm349_vm0, %v7434_v4, %v5373_v47  ;;  %v4009_v25 = vadd.f32 %v7708_v30, %v3896_v8  ;;  %v3534_v30 = vsel %vm349_vm0, %v7504_v19, %v3117_v3  ;;  %v4026_v19 = vpop.f32.mrf.mxu0 }
 0x4aa   : > { %4080 = vxpose.xlu2.b32.cont [10/16] (narrow) %v4003_v9, 32  ;;  %3838 = vmatmul.f32.gmra.mxu3 %v3502_v35  ;;  %v3564_v0 = vsel %vm1527_vm2, %v3532_v61, %v7733_v7  ;;  %v3566_v43 = vsel %vm1527_vm2, %v3534_v30, %v7703_v22 }
 0x4ab   : > { %3942 = vmatmul.f32.gmra.mxu2 %v3595_v56  ;;  %4156 = vperm.xlu0 %5379, %v4138_v10   ;;  %v3596_v27 = vsel %vm1560_vm3, %v3564_v0, %v3369_v41 }
 0x4ad   : > { %v7782_v55 = vpop.f32.mrf.mxu3 }
 0x4ae   : > { %v3898_v2 = vpop.f32.mrf.mxu2  ;;  %v3243_v7 = vpop.permute.xlu1 %3242 }
 0x4af   : > { %v3565_v40 = vsel %vm1527_vm2, %v3533_v13, %v3243_v7  ;;  %v3899_v4 = vadd.f32 %v3898_v2, %v7727_v12  ;;  %v3373_v18 = vpop.permute.xlu0 %3372  ;;  %v3119_v12 = vpop.permute.xlu2 %3118 }
 0x4b0   : > { %v3597_v5 = vsel %vm1560_vm3, %v3565_v40, %v3371_v1  ;;  %v3598_v23 = vsel %vm1560_vm3, %v3566_v43, %v3373_v18 }
 0x4b1   : > { %v4012_v31 = vadd.f32 %v7724_v26, %v3899_v4  ;;  %v3535_v26 = vsel %vm349_vm0, %v7524_v58, %v3119_v12  ;;  %v4029_v58 = vpop.f32.mrf.mxu0 }
 0x4b2   : > { %4081 = vxpose.xlu2.b32.cont [11/16] (narrow) %v4006_v14, 32  ;;  %3841 = vmatmul.f32.gmra.mxu3 %v3503_v37 }
 0x4b3   : > { %3945 = vmatmul.f32.gmra.mxu2 %v3596_v27  ;;  %4173 = vperm.xlu0 %5379, %v4167_v29  }
 0x4b5   : > { %v3797_v59 = vpop.f32.mrf.mxu3 }
 0x4b6   : > { %v3901_v62 = vpop.f32.mrf.mxu2  ;;  %v3247_v42 = vpop.permute.xlu1 %3246 }
 0x4b7   : > { %v3902_v60 = vadd.f32 %v3901_v62, %v7744_v11  ;;  %v3567_v39 = vsel %vm1527_vm2, %v3535_v26, %v3247_v42  ;;  %v3375_v15 = vpop.permute.xlu0 %3374 }
 0x4b8   : > { %v3599_v28 = vsel %vm1560_vm3, %v3567_v39, %v3375_v15 }
 0x4b9   : > { %v4015_v22 = vadd.f32 %v7742_v52, %v3902_v60  ;;  %v4170_v52 = vld [vmem:[%s7910_s6 + $0x18] sm:$0xff]  ;;  %v4032_v38 = vpop.f32.mrf.mxu0 }
 0x4ba   : > { %4082 = vxpose.xlu2.b32.cont [12/16] (narrow) %v4009_v25, 32  ;;  %4371 = vmatmul.msk.f32.vlgmr.msra.gmra.mxu3 %vm349_vm0, %v2639_v16 }
 0x4bb   : > { %3948 = vmatmul.f32.gmra.mxu2 %v3597_v5  ;;  %4178 = vperm.xlu0 %5379, %v4168_v21  }
 0x4bd   : > { %v3800_v6 = vpop.f32.mrf.mxu3 }
 0x4be   : > { %v3904_v51 = vpop.f32.mrf.mxu2 }
 0x4bf   : > { %v3905_v11 = vadd.f32 %v3904_v51, %v7761_v17 }
 0x4c1   : > { %v4018_v63 = vadd.f32 %v7765_v57, %v3905_v11  ;;  %v4035_v2 = vpop.f32.mrf.mxu0 }
 0x4c2   : > { %4083 = vxpose.xlu2.b32.cont [13/16] (narrow) %v4012_v31, 32 }
 0x4c3   : > { %3951 = vmatmul.f32.gmra.mxu2 %v3598_v23  ;;  %4183 = vperm.xlu0 %5379, %v4169_v48  }
 0x4c5   : > { %v3803_v36 = vpop.f32.mrf.mxu3 }
 0x4c6   : > { %v3907_v54 = vpop.f32.mrf.mxu2 }
 0x4c7   : > { %v3908_v35 = vadd.f32 %v3907_v54, %v7782_v55 }
 0x4c9   : > { %v4021_v17 = vadd.f32 %v7793_v32, %v3908_v35  ;;  %v4038_v55 = vpop.f32.mrf.mxu0 }
 0x4ca   : > { %4084 = vxpose.xlu2.b32.cont [14/16] (narrow) %v4015_v22, 32 }
 0x4cb   : > { %3954 = vmatmul.f32.gmra.mxu2 %v3599_v28  ;;  %4188 = vperm.xlu0 %5379, %v4170_v52  }
 0x4cd   : > { %v3806_v20 = vpop.f32.mrf.mxu3 }
 0x4ce   : > { %v3910_v53 = vpop.f32.mrf.mxu2 }
 0x4cf   : > { %v3911_v9 = vadd.f32 %v3910_v53, %v3797_v59 }
 0x4d1   : > { %v4024_v45 = vadd.f32 %v4023_v46, %v3911_v9  ;;  %v4041_v27 = vpop.f32.mrf.mxu0  ;;  %v5384_v9 = vld [vmem:[%s5564_s17] sm:$0xff] }
 0x4d2   : > { %4085 = vxpose.xlu2.b32.cont [15/16] (narrow) %v4018_v63, 32 }
 0x4d3   : > { %4103 = vxpose.xlu1.b32.start [1/16] (narrow) %v4024_v45, 32 }
 0x4d5   : > { %v3809_v24 = vpop.f32.mrf.mxu3 }
 0x4d6   : > { %v3913_v56 = vpop.f32.mrf.mxu2 }
 0x4d7   : > { %v3914_v49 = vadd.f32 %v3913_v56, %v3800_v6 }
 0x4d9   : > { %v4027_v33 = vadd.f32 %v4026_v19, %v3914_v49  ;;  %v4044_v62 = vpop.f32.mrf.mxu0 }
 0x4da   : > { %4086 = vxpose.xlu2.b32.end [16/16] (narrow) %v4021_v17, 32 }
 0x4db   : > { %4104 = vxpose.xlu1.b32.cont [2/16] (narrow) %v4027_v33, 32 }
 0x4dd   : > { %v3812_v41 = vpop.f32.mrf.mxu3 }
 0x4de   : > { %v3916_v57 = vpop.f32.mrf.mxu2 }
 0x4df   : > { %v3917_v61 = vadd.f32 %v3916_v57, %v3803_v36  ;;  %v5385_v57 = vld [vmem:[%s5564_s17 + $0x10] sm:$0xff] }
 0x4e1   : > { %v4030_v50 = vadd.f32 %v4029_v58, %v3917_v61  ;;  %v4047_v5 = vpop.f32.mrf.mxu0 }
 0x4e3   : > { %4105 = vxpose.xlu1.b32.cont [3/16] (narrow) %v4030_v50, 32 }
 0x4e5   : > { %v3815_v44 = vpop.f32.mrf.mxu3 }
 0x4e6   : > { %v3919_v34 = vpop.f32.mrf.mxu2 }
 0x4e7   : > { %v3920_v0 = vadd.f32 %v3919_v34, %v3806_v20 }
 0x4e9   : > { %v4033_v14 = vadd.f32 %v4032_v38, %v3920_v0  ;;  %v4050_v31 = vpop.f32.mrf.mxu0 }
 0x4eb   : > { %4106 = vxpose.xlu1.b32.cont [4/16] (narrow) %v4033_v14, 32 }
 0x4ed   : > { %v3818_v8 = vpop.f32.mrf.mxu3 }
 0x4ee   : > { %v3922_v10 = vpop.f32.mrf.mxu2 }
 0x4ef   : > { %v3923_v37 = vadd.f32 %v3922_v10, %v3809_v24 }
 0x4f1   : > { %v4036_v32 = vadd.f32 %v4035_v2, %v3923_v37  ;;  %v4053_v60 = vpop.f32.mrf.mxu0 }
 0x4f3   : > { %4107 = vxpose.xlu1.b32.cont [5/16] (narrow) %v4036_v32, 32  ;;  %v5386_v32 = vld [vmem:[%s5564_s17 + $0x20] sm:$0xff] }
 0x4f5   : > { %v3821_v16 = vpop.f32.mrf.mxu3 }
 0x4f6   : > { %v3925_v47 = vpop.f32.mrf.mxu2 }
 0x4f7   : > { %v3926_v1 = vadd.f32 %v3925_v47, %v3812_v41 }
 0x4f9   : > { %v4039_v7 = vadd.f32 %v4038_v55, %v3926_v1  ;;  %v7833_v46 = vpop.permute.xlu0 %4141  ;;  %v4056_v48 = vpop.f32.mrf.mxu0 }
 0x4fb   : > { %4108 = vxpose.xlu1.b32.cont [6/16] (narrow) %v4039_v7, 32  ;;  %v4087_v39 = vpop.trf.xlu2 }
 0x4fc   : > { %v4159_v22 = vmul.f32 %v7833_v46, %v4087_v39 }
 0x4fd   : > { %v3824_v4 = vpop.f32.mrf.mxu3 }
 0x4fe   : > { %v3928_v59 = vpop.f32.mrf.mxu2 }
 0x4ff   : > { %v3929_v13 = vadd.f32 %v3928_v59, %v3815_v44 }
 0x501   : > { %v4042_v40 = vadd.f32 %v4041_v27, %v3929_v13  ;;  %v7835_v51 = vpop.permute.xlu0 %4146  ;;  %v4059_v17 = vpop.f32.mrf.mxu0 }
 0x503   : > { %4109 = vxpose.xlu1.b32.cont [7/16] (narrow) %v4042_v40, 32  ;;  %v4088_v52 = vpop.trf.xlu2 }
 0x504   : > { %v4161_v35 = vmul.f32 %v7835_v51, %v4088_v52 }
 0x505   : > { %v3827_v21 = vpop.f32.mrf.mxu3 }
 0x506   : > { %v3931_v25 = vpop.f32.mrf.mxu2 }
 0x507   : > { %v3932_v29 = vadd.f32 %v3931_v25, %v3818_v8 }
 0x509   : > { %v4045_v3 = vadd.f32 %v4044_v62, %v3932_v29  ;;  %v7837_v42 = vpop.permute.xlu0 %4151  ;;  %v4062_v10 = vpop.f32.mrf.mxu0  ;;  %v5387_v29 = vld [vmem:[%s5564_s17 + $0x30] sm:$0xff] }
 0x50b   : > { %4110 = vxpose.xlu1.b32.cont [8/16] (narrow) %v4045_v3, 32  ;;  %v4089_v2 = vpop.trf.xlu2 }
 0x50c   : > { %v4163_v34 = vmul.f32 %v7837_v42, %v4089_v2 }
 0x50d   : > { %v3830_v19 = vpop.f32.mrf.mxu3 }
 0x50e   : > { %v3934_v18 = vpop.f32.mrf.mxu2 }
 0x50f   : > { %v3935_v6 = vadd.f32 %v3934_v18, %v3821_v16 }
 0x511   : > { %v4048_v30 = vadd.f32 %v4047_v5, %v3935_v6 }
 0x513   : > { %4111 = vxpose.xlu1.b32.cont [9/16] (narrow) %v4048_v30, 32  ;;  %v4090_v1 = vpop.trf.xlu2 }
 0x516   : > { %v3937_v43 = vpop.f32.mrf.mxu2 }
 0x517   : > { %v3938_v23 = vadd.f32 %v3937_v43, %v3824_v4 }
 0x519   : > { %v4051_v12 = vadd.f32 %v4050_v31, %v3938_v23 }
 0x51b   : > { %4112 = vxpose.xlu1.b32.cont [10/16] (narrow) %v4051_v12, 32 }
 0x51d   : > { %v7839_v26 = vpop.permute.xlu0 %4156  ;;  %v3833_v15 = vpop.f32.mrf.mxu3 }
 0x51e   : > { %v4165_v7 = vmul.f32 %v7839_v26, %v4090_v1 }
 0x520   : > { %v4065_v40 = vpop.f32.mrf.mxu0 }
 0x525   : > { %v4174_v11 = vpop.permute.xlu0 %4173  ;;  %v3836_v49 = vpop.f32.mrf.mxu3 }
 0x526   : > { %v3940_v36 = vpop.f32.mrf.mxu2  ;;  %v4191_v53 = vadd.f32 %v4174_v11, %v4159_v22  ;;  %v5389_v22 = vld [vmem:[%s5564_s17 + $0x18] sm:$0xff] }
 0x527   : > { %v3941_v54 = vadd.f32 %v3940_v36, %v3827_v21 }
 0x528   : > { %v4199_v63 = vadd.f32 %v5384_v9, %v4191_v53 }
 0x529   : > { %v4054_v28 = vadd.f32 %v4053_v60, %v3941_v54  ;;  %v5388_v60 = vld [vmem:[%s5564_s17 + $0x8] sm:$0xff] }
 0x52a   : > { %v4207_v45 = vmax.f32 %v4199_v63, 0.0 }
 0x52b   : > { %4113 = vxpose.xlu1.b32.cont [11/16] (narrow) %v4054_v28, 32 }
 0x52c   : > { %4215 = vst [vmem:[%s7847_s23] sm:$0xff] %v4207_v45 }
 0x52d   : > { %v4179_v38 = vpop.permute.xlu0 %4178  ;;  %v3839_v55 = vpop.f32.mrf.mxu3 }
 0x52e   : > { %v3943_v58 = vpop.f32.mrf.mxu2  ;;  %v4193_v33 = vadd.f32 %v4179_v38, %v4161_v35 }
 0x52f   : > { %v3944_v20 = vadd.f32 %v3943_v58, %v3830_v19  ;;  %v5390_v58 = vld [vmem:[%s5564_s17 + $0x28] sm:$0xff] }
 0x530   : > { %v4201_v61 = vadd.f32 %v5385_v57, %v4193_v33 }
 0x531   : > { %v4057_v56 = vadd.f32 %v4056_v48, %v3944_v20 }
 0x532   : > { %v4209_v41 = vmax.f32 %v4201_v61, 0.0 }
 0x533   : > { %4114 = vxpose.xlu1.b32.cont [12/16] (narrow) %v4057_v56, 32 }
 0x534   : > { %4217 = vst [vmem:[%s7847_s23 + $0x10] sm:$0xff] %v4209_v41 }
 0x535   : > { %v4184_v14 = vpop.permute.xlu0 %4183  ;;  %v3842_v16 = vpop.f32.mrf.mxu3 }
 0x536   : > { %v3946_v24 = vpop.f32.mrf.mxu2  ;;  %v4195_v44 = vadd.f32 %v4184_v14, %v4163_v34 }
 0x537   : > { %v3947_v50 = vadd.f32 %v3946_v24, %v3833_v15 }
 0x538   : > { %v4203_v47 = vadd.f32 %v5386_v32, %v4195_v44 }
 0x539   : > { %v4060_v0 = vadd.f32 %v4059_v17, %v3947_v50 }
 0x53a   : > { %v4211_v8 = vmax.f32 %v4203_v47, 0.0 }
 0x53b   : > { %4115 = vxpose.xlu1.b32.cont [13/16] (narrow) %v4060_v0, 32 }
 0x53c   : > { %4219 = vst [vmem:[%s7847_s23 + $0x20] sm:$0xff] %v4211_v8 }
 0x53d   : > { %v4189_v13 = vpop.permute.xlu0 %4188  ;;  %v4068_v30 = vpop.f32.mrf.mxu3 }
 0x53e   : > { %v3949_v37 = vpop.f32.mrf.mxu2  ;;  %v4197_v62 = vadd.f32 %v4189_v13, %v4165_v7 }
 0x53f   : > { %v3950_v27 = vadd.f32 %v3949_v37, %v3836_v49 }
 0x540   : > { %v4205_v3 = vadd.f32 %v5387_v29, %v4197_v62 }
 0x541   : > { %v4063_v59 = vadd.f32 %v4062_v10, %v3950_v27 }
 0x542   : > { %v4213_v4 = vmax.f32 %v4205_v3, 0.0 }
 0x543   : > { %4116 = vxpose.xlu1.b32.cont [14/16] (narrow) %v4063_v59, 32 }
 0x544   : > { %4221 = vst [vmem:[%s7847_s23 + $0x30] sm:$0xff] %v4213_v4 }
 0x546   : > { %v3952_v25 = vpop.f32.mrf.mxu2 }
 0x547   : > { %v3953_v5 = vadd.f32 %v3952_v25, %v3839_v55 }
 0x549   : > { %v4066_v18 = vadd.f32 %v4065_v40, %v3953_v5 }
 0x54b   : > { %4117 = vxpose.xlu1.b32.cont [15/16] (narrow) %v4066_v18, 32 }
 0x54e   : > { %v3955_v6 = vpop.f32.mrf.mxu2 }
 0x54f   : > { %v3956_v31 = vadd.f32 %v3955_v6, %v3842_v16 }
 0x551   : > { %v4069_v21 = vadd.f32 %v4068_v30, %v3956_v31 }
 0x553   : > { %4118 = vxpose.xlu1.b32.end [16/16] (narrow) %v4069_v21, 32 }
 0x57f   : > { %v4119_v43 = vpop.trf.xlu1 }
 0x580   : > { %v4160_v23 = vmul.f32 %v7833_v46, %v4119_v43 }
 0x582   : > { %v4192_v12 = vadd.f32 %v4174_v11, %v4160_v23 }
 0x584   : > { %v4200_v19 = vadd.f32 %v5388_v60, %v4192_v12 }
 0x586   : > { %v4208_v36 = vmax.f32 %v4200_v19, 0.0 }
 0x587   : > { %v4120_v54 = vpop.trf.xlu1 }
 0x588   : > { %4216 = vst [vmem:[%s7847_s23 + $0x8] sm:$0xff] %v4208_v36  ;;  %v4162_v39 = vmul.f32 %v7835_v51, %v4120_v54 }
 0x58a   : > { %v4194_v15 = vadd.f32 %v4179_v38, %v4162_v39 }
 0x58c   : > { %v4202_v48 = vadd.f32 %v5389_v22, %v4194_v15 }
 0x58e   : > { %v4210_v28 = vmax.f32 %v4202_v48, 0.0 }
 0x58f   : > { %v4121_v53 = vpop.trf.xlu1 }
 0x590   : > { %4218 = vst [vmem:[%s7847_s23 + $0x18] sm:$0xff] %v4210_v28  ;;  %v4164_v46 = vmul.f32 %v7837_v42, %v4121_v53  ;;  %v5391_v42 = vld [vmem:[%s5564_s17 + $0x38] sm:$0xff] }
 0x592   : > { %v4196_v11 = vadd.f32 %v4184_v14, %v4164_v46 }
 0x594   : > { %v4204_v9 = vadd.f32 %v5390_v58, %v4196_v11 }
 0x596   : > { %v4212_v63 = vmax.f32 %v4204_v9, 0.0 }
 0x597   : > { %v4122_v20 = vpop.trf.xlu1 }
 0x598   : > { %4220 = vst [vmem:[%s7847_s23 + $0x28] sm:$0xff] %v4212_v63  ;;  %v4166_v51 = vmul.f32 %v7839_v26, %v4122_v20 }
 0x59a   : > { %v4198_v52 = vadd.f32 %v4189_v13, %v4166_v51 }
 0x59c   : > { %v4206_v45 = vadd.f32 %v5391_v42, %v4198_v52 }
 0x59e   : > { %v4214_v35 = vmax.f32 %v4206_v45, 0.0 }
 0x5a0   : > { %4222 = vst [vmem:[%s7847_s23 + $0x38] sm:$0xff] %v4214_v35 }
 0x5a1   : > { %5419 = shalt.err (!%p5416_p3)
}
 0x5a2   : > { %s5461_s21 = smov 256   ;;  %s5462_s23 = smov 16  }
 0x5a3   : > { %4403 = dma.vmem_to_hbm [thread:$0]  (%p5541_p5), %s4237_s16, 1024, %s4239_s19, %s4224_s28, %s5461_s21, %s5461_s21, %s5462_s23  }
 0x5a4 PF: > { %p4409_p4 = scmp.ge.s32.totalorder %s5454_s27, 2  ;;  %s4253_s8 = sand.u32 1, %s5442_s24  }
 0x5a5   : > { %s4254_s9 = scalar_lea.sflag [#allocation5], %s4253_s8 }
 0x5a6   : > { %p4406_p7 = pnand %p4409_p4, %p5545_p6 }
 0x5a8   : > { %p4407_p8 = pneg %p4406_p7 }
 0x5aa   : > { %5437 = dma.done.wait (%p4407_p8), %s4254_s9, 1024  }
 0x5ab   : > { %5439 = vsyncadd (%p4407_p8), %s4254_s9, 4294966272  ;;  %p17_p9 = scmp.ge.s32.totalorder %s5528_s30, 4   ;;  %s7932_s24 = smov %s5446_s25 }
 0x5ac   : > { %s7933_s25 = smov %s5450_s26  ;;  %s7934_s26 = smov %s5539_s10 }
 0x5ad   : > { %s7935_s27 = smov %s5528_s30  ;;  %19 = sbr.rel (!%p17_p9) target bundleno = 3 (0x3), region = 87 }
 0x5b2   :  { %4260 = vsyncpa [#allocation5], 1 }
 0x5b3   :  { %4262 = vsyncpa [#allocation5 + $0x1], 1 }

</bundles_post_ra>
